<compile_context>
chip_gen: v7x
topology: tpu7x:2x2x1
jax: 0.10.0
libtpu: 0.0.40
codegen_flags: <defaults>
</compile_context>

<pallas_src>
import functools

import jax
import jax.numpy as jnp
from jax.experimental import pallas as pl
from jax.experimental.pallas import tpu as pltpu


# ----------------------------------------------------------------------------
# Kernel 1: spectral complex multiply as ONE real block-structured matmul.
#   out = x_in @ w_big,  x_in: (B, 2*Cin*M), w_big: (2*Cin*M, 2*Cout*M)
# ----------------------------------------------------------------------------
def _spec_mm_kernel(x_ref, w_ref, o_ref):
    o_ref[...] = jnp.dot(x_ref[...], w_ref[...],
                         preferred_element_type=jnp.float32)


def spectral_conv2d(x, w_big, modes1, modes2, out_channels):
    """SpectralConv2d.forward. x: (B, Cin, H, W) float32.
    w_big: (2*Cin*M, 2*Cout*M) block-diagonal real weight, M = 2*modes1*modes2
    (both frequency corners stacked along the modes1 axis, corner1 then corner2)."""
    B, Cin, H, W = x.shape
    Cout = out_channels
    Wf = W // 2 + 1
    M = 2 * modes1 * modes2

    # TODO(synk): FFT/iFFT have no clean Pallas equivalent; they stay in XLA.
    x_ft = jnp.fft.rfft2(x)  # (B, Cin, H, Wf) complex64

    # Both corners, native (B, Cin, modes, modes2) order -> flat reshape (free).
    x_c = jnp.concatenate([x_ft[:, :, :modes1, :modes2],
                           x_ft[:, :, H - modes1:, :modes2]],
                          axis=2)                          # (B, Cin, 2*m1, m2)
    xr = jnp.real(x_c).reshape(B, Cin * M).astype(jnp.float32)
    xi = jnp.imag(x_c).reshape(B, Cin * M).astype(jnp.float32)
    x_in = jnp.concatenate([xr, xi], axis=1)               # (B, 2*Cin*M)

    K = 2 * Cin * M
    N = 2 * Cout * M

    # Split output columns across >=2 "parallel" grid steps when lane-dense
    # tiles are possible (v7x: two TensorCores).  Otherwise single step.
    n_split = 2 if (N % 256 == 0) else 1
    tn = N // n_split

    # TODO(synk): for production mode counts (M in the hundreds) the dense
    # block-diagonal weight grows quadratically; switch to mode-group tiling.
    out = pl.pallas_call(
        _spec_mm_kernel,
        out_shape=jax.ShapeDtypeStruct((B, N), jnp.float32),
        grid=(n_split,),
        in_specs=[pl.BlockSpec((B, K), lambda j: (0, 0)),
                  pl.BlockSpec((K, tn), lambda j: (0, j))],
        out_specs=pl.BlockSpec((B, tn), lambda j: (0, j)),
        compiler_params=pltpu.CompilerParams(
            dimension_semantics=("parallel",)),
        cost_estimate=pl.CostEstimate(
            flops=2 * B * K * N,
            transcendentals=0,
            bytes_accessed=4 * (B * K + K * N + B * N)),
    )(x_in, w_big)

    out_r = out[:, :Cout * M].reshape(B, Cout, 2 * modes1, modes2)
    out_i = out[:, Cout * M:].reshape(B, Cout, 2 * modes1, modes2)
    out_c = (out_r + 1j * out_i).astype(jnp.complex64)

    out_ft = jnp.zeros((B, Cout, H, Wf), dtype=jnp.complex64)
    out_ft = out_ft.at[:, :, :modes1, :modes2].set(out_c[:, :, :modes1])
    out_ft = out_ft.at[:, :, H - modes1:, :modes2].set(out_c[:, :, modes1:])

    return jnp.fft.irfft2(out_ft, s=(H, W)).astype(jnp.float32)


# ----------------------------------------------------------------------------
# Kernel 2: 1x1 conv (channel matmul) + bias + spectral-branch add + exact GELU
# NCHW-native, lane-dense (spatial dim last), tiled over (batch, spatial).
# ----------------------------------------------------------------------------
_INV_SQRT2 = 0.7071067811865476


def _gelu_erf(y):
    # gelu(y) = 0.5*y*(1 + erf(y/sqrt(2)))
    # erf via Abramowitz & Stegun 7.1.26 (|err| < 1.5e-7); the odd symmetry of
    # erf is folded into |y| so no sign/select is needed:
    #   gelu(y) = 0.5*y + 0.5*|y| - 0.5*|y| * poly(t) * exp(-y^2/2)
    ay = jnp.abs(y)
    u = ay * _INV_SQRT2
    # approx=False kept for numeric parity with torch's erf GELU; approx=True
    # is a further EUP-side trim once the parity threshold is validated.
    t = pl.reciprocal(1.0 + 0.3275911 * u, approx=False)
    poly = ((((1.061405429 * t - 1.453152027) * t + 1.421413741) * t
             - 0.284496736) * t + 0.254829592) * t
    e = jnp.exp(-0.5 * (y * y))                      # EUP; == exp(-u^2)
    h = 0.5 * ay
    return 0.5 * y + h - h * poly * e


def _pw_kernel(x_ref, w_ref, b_ref, x1_ref, o_ref, *, apply_gelu):
    x = x_ref[...]                                   # (Cin, TN), TN lane-dense
    # Kept f32 on the MXU for strict numeric parity; bf16 operands with f32
    # accumulation are a further (v6e/v7x) option once parity is validated.
    y = jnp.dot(w_ref[...], x, preferred_element_type=jnp.float32)   # (Cout, TN)
    y = y + b_ref[...] + x1_ref[...]
    if apply_gelu:
        y = _gelu_erf(y)
    o_ref[...] = y


def pointwise_add_gelu(x, x1, w, b, apply_gelu, tile_hw=8192):
    """x: (B, Cin, H, W), x1: (B, Cout, H, W) spectral branch,
    w: (Cout, Cin), b: (Cout, 1). Computes gelu(conv1x1(x) + x1) (gelu optional),
    entirely in the native NCHW layout (no wrapper transposes)."""
    B, Cin, H, W = x.shape
    Cout = w.shape[0]
    HW = H * W

    x3 = x.reshape(B, Cin, HW)
    x13 = x1.reshape(B, Cout, HW)

    # Lane tile: full spatial extent if it fits, else a multiple of 128 so all
    # stores stay unmasked (biggest measured lever, esp. on v5e's single vst).
    if HW <= tile_hw:
        tn = HW
    else:
        tn = (tile_hw // 128) * 128
    # v7x megacore: with B<=2 keep >=2 spatial tiles per batch so the
    # ("parallel","parallel") grid has enough steps for both TensorCores.
    if B <= 2 and tn == HW and HW % 256 == 0:
        tn = HW // 2
    n_t = pl.cdiv(HW, tn)

    flops = 2 * B * Cout * Cin * HW + 4 * B * Cout * HW
    transcendentals = (2 * B * Cout * HW) if apply_gelu else 0
    bytes_accessed = 4 * (B * Cin * HW + 2 * B * Cout * HW + Cout * Cin + Cout)

    y = pl.pallas_call(
        functools.partial(_pw_kernel, apply_gelu=apply_gelu),
        out_shape=jax.ShapeDtypeStruct((B, Cout, HW), jnp.float32),
        grid=(B, n_t),
        in_specs=[pl.BlockSpec((pl.Squeezed(), Cin, tn),
                               lambda bi, ti: (bi, 0, ti)),
                  pl.BlockSpec((Cout, Cin), lambda bi, ti: (0, 0)),
                  pl.BlockSpec((Cout, 1), lambda bi, ti: (0, 0)),
                  pl.BlockSpec((pl.Squeezed(), Cout, tn),
                               lambda bi, ti: (bi, 0, ti))],
        out_specs=pl.BlockSpec((pl.Squeezed(), Cout, tn),
                               lambda bi, ti: (bi, 0, ti)),
        compiler_params=pltpu.CompilerParams(
            dimension_semantics=("parallel", "parallel")),
        cost_estimate=pl.CostEstimate(flops=flops,
                                      transcendentals=transcendentals,
                                      bytes_accessed=bytes_accessed),
    )(x3, w, b, x13)

    return y.reshape(B, Cout, H, W)


# ----------------------------------------------------------------------------
# Module-level forward functions (plain-JAX glue around the Pallas kernels)
# ----------------------------------------------------------------------------
def fno_layer(x, params, modes1, modes2, last=False):
    """FNO_layer / FNO_layer_trans forward (BatchNorm is unused in torch forward)."""
    x1 = spectral_conv2d(x, params["spec_w"], modes1, modes2,
                         out_channels=params["conv_w"].shape[0])
    return pointwise_add_gelu(x, x1, params["conv_w"], params["conv_b"],
                              apply_gelu=not last)


def trans_net_forward(params_list, x_latent, ctr_latent, modes1, modes2):
    x = jnp.concatenate([x_latent, ctr_latent], axis=1)
    L = len(params_list)
    for i, p in enumerate(params_list):
        x = fno_layer(x, p, modes1, modes2, last=(i == L - 1))
    return x


# ----------------------------------------------------------------------------
# Deterministic parameter init (mirrors the torch __init__ shapes); spectral
# weights are packed ONCE into the kernel's block-structured real matrix.
# ----------------------------------------------------------------------------
def init_params(key, modes1, modes2, width, L, f_channels):
    params = []
    M = 2 * modes1 * modes2  # both frequency corners stacked

    def spectral_block_weight(k, cin, cout):
        scale = 1.0 / (cin * cout)
        ks = jax.random.split(k, 4)
        shape = (cin, cout, modes1, modes2)
        w1r = scale * jax.random.uniform(ks[0], shape, dtype=jnp.float32)
        w1i = scale * jax.random.uniform(ks[1], shape, dtype=jnp.float32)
        w2r = scale * jax.random.uniform(ks[2], shape, dtype=jnp.float32)
        w2i = scale * jax.random.uniform(ks[3], shape, dtype=jnp.float32)
        # stack corners along the modes1 axis (matches x_ft slice order)
        wr = jnp.concatenate([w1r, w2r], axis=2).reshape(cin, cout, M)
        wi = jnp.concatenate([w1i, w2i], axis=2).reshape(cin, cout, M)
        # Block-structured real matrix: rows (ri, i, m), cols (ro, o, m),
        # per-mode block [[wr, wi], [-wi, wr]], zero off the mode diagonal.
        eye = jnp.eye(M, dtype=jnp.float32)
        diag = lambda w: jnp.einsum('iom,mn->imon', w, eye)
        Wb = jnp.zeros((2, cin, M, 2, cout, M), dtype=jnp.float32)
        Wb = Wb.at[0, :, :, 0].set(diag(wr))    # real-in  -> real-out :  wr
        Wb = Wb.at[1, :, :, 0].set(diag(-wi))   # imag-in  -> real-out : -wi
        Wb = Wb.at[0, :, :, 1].set(diag(wi))    # real-in  -> imag-out :  wi
        Wb = Wb.at[1, :, :, 1].set(diag(wr))    # imag-in  -> imag-out :  wr
        return Wb.reshape(2 * cin * M, 2 * cout * M)

    def conv1x1(k, cin, cout):
        kw, kb = jax.random.split(k)
        bound = cin ** -0.5
        # torch Conv2d weight layout (Cout, Cin); bias as (Cout, 1) column
        w = jax.random.uniform(kw, (cout, cin), minval=-bound, maxval=bound,
                               dtype=jnp.float32)
        b = jax.random.uniform(kb, (cout, 1), minval=-bound, maxval=bound,
                               dtype=jnp.float32)
        return w, b

    for i in range(L):
        cin = width + f_channels if i == 0 else width
        cout = width
        key, k1, k2 = jax.random.split(key, 3)
        spec_w = spectral_block_weight(k1, cin, cout)
        cw, cb = conv1x1(k2, cin, cout)
        params.append(dict(spec_w=spec_w, conv_w=cw, conv_b=cb))
    return params


if __name__ == "__main__":
    modes1, modes2 = 4, 4
    width, L, f_channels = 8, 3, 4
    B, H, W = 2, 16, 16

    key = jax.random.PRNGKey(0)
    kx, kc, kp = jax.random.split(key, 3)
    x_latent = jax.random.normal(kx, (B, width, H, W), dtype=jnp.float32)
    ctr_latent = jax.random.normal(kc, (B, f_channels, H, W), dtype=jnp.float32)
    params = init_params(kp, modes1, modes2, width, L, f_channels)

    fwd = jax.jit(functools.partial(trans_net_forward,
                                    modes1=modes1, modes2=modes2))
    out = fwd(params, x_latent, ctr_latent)
    out = jax.block_until_ready(out)
    assert out.shape == (B, width, H, W), out.shape
    assert out.dtype == jnp.float32
    print("KERNEL_OK")
</pallas_src>

<mosaic_0001>
module attributes {stable_mosaic.version = 11 : i64} {
  func.func @_spec_mm_kernel(%arg0: i32, %arg1: memref<2x768xf32, #tpu.memory_space<vmem>>, %arg2: memref<768x256xf32, #tpu.memory_space<vmem>>, %arg3: memref<2x256xf32, #tpu.memory_space<vmem>>) attributes {dimension_semantics = [#tpu.dimension_semantics<parallel>], iteration_bounds = array<i64: 2>, scalar_prefetch = 0 : i64, scratch_operands = 0 : i64, tpu.core_type = #tpu.core_type<tc>, window_params = [{pipeline_mode = #tpu.pipeline_mode<synchronous>, transform_indices = @transform_0, window_bounds = array<i64: 2, 768>}, {transform_indices = @transform_1, window_bounds = array<i64: 768, 256>}, {transform_indices = @transform_2, window_bounds = array<i64: 2, 256>}]} {
    %c0 = arith.constant 0 : index
    %c0_0 = arith.constant 0 : index
    %0 = vector.load %arg1[%c0, %c0_0] : memref<2x768xf32, #tpu.memory_space<vmem>>, vector<2x768xf32>
    %c0_1 = arith.constant 0 : index
    %c0_2 = arith.constant 0 : index
    %1 = vector.load %arg2[%c0_1, %c0_2] : memref<768x256xf32, #tpu.memory_space<vmem>>, vector<768x256xf32>
    %cst = arith.constant dense<0.000000e+00> : vector<2x256xf32>
    %2 = tpu.matmul %0, %1, %cst {dimension_numbers = #tpu.dot_dimension_numbers<[1], [0], [0], [1], [0, 0, 1, 1], [], []>} : vector<2x768xf32>, vector<768x256xf32>, vector<2x256xf32> -> vector<2x256xf32>
    %c0_3 = arith.constant 0 : index
    %c0_4 = arith.constant 0 : index
    %3 = vector.load %arg3[%c0_3, %c0_4] : memref<2x256xf32, #tpu.memory_space<vmem>>, vector<2x256xf32>
    tpu.vector_store %arg3[%c0_3, %c0_4], %2 {strides = array<i32>} : memref<2x256xf32, #tpu.memory_space<vmem>>, vector<2x256xf32>,
    return
  }
  func.func @transform_0(%arg0: i32) -> (i32, i32) {
    %c0_i32 = arith.constant 0 : i32
    %c0_i32_0 = arith.constant 0 : i32
    %c0_i32_1 = arith.constant 0 : i32
    return %c0_i32, %c0_i32_0 : i32, i32
  }
  func.func @transform_1(%arg0: i32) -> (i32, i32) {
    %c0_i32 = arith.constant 0 : i32
    %c0_i32_0 = arith.constant 0 : i32
    return %c0_i32, %arg0 : i32, i32
  }
  func.func @transform_2(%arg0: i32) -> (i32, i32) {
    %c0_i32 = arith.constant 0 : i32
    %c0_i32_0 = arith.constant 0 : i32
    return %c0_i32, %arg0 : i32, i32
  }
}

module attributes {stable_mosaic.version = 11 : i64} {
  func.func @_pw_kernel(%arg0: i32, %arg1: i32, %arg2: memref<1x12x128xf32, #tpu.memory_space<vmem>>, %arg3: memref<8x12xf32, #tpu.memory_space<vmem>>, %arg4: memref<8x1xf32, #tpu.memory_space<vmem>>, %arg5: memref<1x8x128xf32, #tpu.memory_space<vmem>>, %arg6: memref<1x8x128xf32, #tpu.memory_space<vmem>>) attributes {dimension_semantics = [#tpu.dimension_semantics<parallel>, #tpu.dimension_semantics<parallel>], iteration_bounds = array<i64: 2, 2>, scalar_prefetch = 0 : i64, scratch_operands = 0 : i64, tpu.core_type = #tpu.core_type<tc>, window_params = [{transform_indices = @transform_0, window_bounds = array<i64: 1, 12, 128>}, {pipeline_mode = #tpu.pipeline_mode<synchronous>, transform_indices = @transform_1, window_bounds = array<i64: 8, 12>}, {pipeline_mode = #tpu.pipeline_mode<synchronous>, transform_indices = @transform_2, window_bounds = array<i64: 8, 1>}, {transform_indices = @transform_3, window_bounds = array<i64: 1, 8, 128>}, {transform_indices = @transform_4, window_bounds = array<i64: 1, 8, 128>}]} {
    %c0 = arith.constant 0 : index
    %c0_0 = arith.constant 0 : index
    %c0_1 = arith.constant 0 : index
    %0 = vector.load %arg2[%c0, %c0_0, %c0_1] : memref<1x12x128xf32, #tpu.memory_space<vmem>>, vector<1x12x128xf32>
    %1 = vector.shape_cast %0 : vector<1x12x128xf32> to vector<12x128xf32>
    %c0_2 = arith.constant 0 : index
    %c0_3 = arith.constant 0 : index
    %2 = vector.load %arg3[%c0_2, %c0_3] : memref<8x12xf32, #tpu.memory_space<vmem>>, vector<8x12xf32>
    %cst = arith.constant dense<0.000000e+00> : vector<8x128xf32>
    %3 = tpu.matmul %2, %1, %cst {dimension_numbers = #tpu.dot_dimension_numbers<[1], [0], [0], [1], [0, 0, 1, 1], [], []>} : vector<8x12xf32>, vector<12x128xf32>, vector<8x128xf32> -> vector<8x128xf32>
    %c0_4 = arith.constant 0 : index
    %c0_5 = arith.constant 0 : index
    %4 = vector.load %arg4[%c0_4, %c0_5] : memref<8x1xf32, #tpu.memory_space<vmem>>, vector<8x1xf32>
    %5 = vector.broadcast %4 : vector<8x1xf32> to vector<8x128xf32>
    %6 = arith.addf %3, %5 : vector<8x128xf32>
    %c0_6 = arith.constant 0 : index
    %c0_7 = arith.constant 0 : index
    %c0_8 = arith.constant 0 : index
    %7 = vector.load %arg5[%c0_6, %c0_7, %c0_8] : memref<1x8x128xf32, #tpu.memory_space<vmem>>, vector<1x8x128xf32>
    %8 = vector.shape_cast %7 : vector<1x8x128xf32> to vector<8x128xf32>
    %9 = arith.addf %6, %8 : vector<8x128xf32>
    %10 = math.absf %9 : vector<8x128xf32>
    %cst_9 = arith.constant 0.707106769 : f32
    %11 = vector.broadcast %cst_9 : f32 to vector<8x128xf32>
    %12 = arith.mulf %10, %11 : vector<8x128xf32>
    %cst_10 = arith.constant 0.327591091 : f32
    %13 = vector.broadcast %cst_10 : f32 to vector<8x128xf32>
    %14 = arith.mulf %13, %12 : vector<8x128xf32>
    %cst_11 = arith.constant 1.000000e+00 : f32
    %15 = vector.broadcast %cst_11 : f32 to vector<8x128xf32>
    %16 = arith.addf %15, %14 : vector<8x128xf32>
    %17 = tpu.reciprocal %16 : vector<8x128xf32> -> vector<8x128xf32>
    %cst_12 = arith.constant 1.06140542 : f32
    %18 = vector.broadcast %cst_12 : f32 to vector<8x128xf32>
    %19 = arith.mulf %18, %17 : vector<8x128xf32>
    %cst_13 = arith.constant 1.45315206 : f32
    %20 = vector.broadcast %cst_13 : f32 to vector<8x128xf32>
    %21 = arith.subf %19, %20 : vector<8x128xf32>
    %22 = arith.mulf %21, %17 : vector<8x128xf32>
    %cst_14 = arith.constant 1.42141378 : f32
    %23 = vector.broadcast %cst_14 : f32 to vector<8x128xf32>
    %24 = arith.addf %22, %23 : vector<8x128xf32>
    %25 = arith.mulf %24, %17 : vector<8x128xf32>
    %cst_15 = arith.constant 0.284496725 : f32
    %26 = vector.broadcast %cst_15 : f32 to vector<8x128xf32>
    %27 = arith.subf %25, %26 : vector<8x128xf32>
    %28 = arith.mulf %27, %17 : vector<8x128xf32>
    %cst_16 = arith.constant 0.254829586 : f32
    %29 = vector.broadcast %cst_16 : f32 to vector<8x128xf32>
    %30 = arith.addf %28, %29 : vector<8x128xf32>
    %31 = arith.mulf %30, %17 : vector<8x128xf32>
    %32 = arith.mulf %9, %9 : vector<8x128xf32>
    %cst_17 = arith.constant -5.000000e-01 : f32
    %33 = vector.broadcast %cst_17 : f32 to vector<8x128xf32>
    %34 = arith.mulf %33, %32 : vector<8x128xf32>
    %35 = math.exp %34 : vector<8x128xf32>
    %cst_18 = arith.constant 5.000000e-01 : f32
    %36 = vector.broadcast %cst_18 : f32 to vector<8x128xf32>
    %37 = arith.mulf %36, %10 : vector<8x128xf32>
    %cst_19 = arith.constant 5.000000e-01 : f32
    %38 = vector.broadcast %cst_19 : f32 to vector<8x128xf32>
    %39 = arith.mulf %38, %9 : vector<8x128xf32>
    %40 = arith.addf %39, %37 : vector<8x128xf32>
    %41 = arith.mulf %37, %31 : vector<8x128xf32>
    %42 = arith.mulf %41, %35 : vector<8x128xf32>
    %43 = arith.subf %40, %42 : vector<8x128xf32>
    %c0_20 = arith.constant 0 : index
    %c0_21 = arith.constant 0 : index
    %c0_22 = arith.constant 0 : index
    %44 = vector.load %arg6[%c0_20, %c0_21, %c0_22] : memref<1x8x128xf32, #tpu.memory_space<vmem>>, vector<1x8x128xf32>
    %45 = vector.shape_cast %44 : vector<1x8x128xf32> to vector<8x128xf32>
    %46 = vector.shape_cast %43 : vector<8x128xf32> to vector<1x8x128xf32>
    tpu.vector_store %arg6[%c0_20, %c0_21, %c0_22], %46 {strides = array<i32>} : memref<1x8x128xf32, #tpu.memory_space<vmem>>, vector<1x8x128xf32>,
    return
  }
  func.func @transform_0(%arg0: i32, %arg1: i32) -> (i32, i32, i32) {
    %c0_i32 = arith.constant 0 : i32
    %c0_i32_0 = arith.constant 0 : i32
    return %arg0, %c0_i32, %arg1 : i32, i32, i32
  }
  func.func @transform_1(%arg0: i32, %arg1: i32) -> (i32, i32) {
    %c0_i32 = arith.constant 0 : i32
    %c0_i32_0 = arith.constant 0 : i32
    %c0_i32_1 = arith.constant 0 : i32
    return %c0_i32, %c0_i32_0 : i32, i32
  }
  func.func @transform_2(%arg0: i32, %arg1: i32) -> (i32, i32) {
    %c0_i32 = arith.constant 0 : i32
    %c0_i32_0 = arith.constant 0 : i32
    %c0_i32_1 = arith.constant 0 : i32
    return %c0_i32, %c0_i32_0 : i32, i32
  }
  func.func @transform_3(%arg0: i32, %arg1: i32) -> (i32, i32, i32) {
    %c0_i32 = arith.constant 0 : i32
    %c0_i32_0 = arith.constant 0 : i32
    return %arg0, %c0_i32, %arg1 : i32, i32, i32
  }
  func.func @transform_4(%arg0: i32, %arg1: i32) -> (i32, i32, i32) {
    %c0_i32 = arith.constant 0 : i32
    %c0_i32_0 = arith.constant 0 : i32
    return %arg0, %c0_i32, %arg1 : i32, i32, i32
  }
}

module attributes {stable_mosaic.version = 11 : i64} {
  func.func @_spec_mm_kernel(%arg0: i32, %arg1: memref<2x512xf32, #tpu.memory_space<vmem>>, %arg2: memref<512x256xf32, #tpu.memory_space<vmem>>, %arg3: memref<2x256xf32, #tpu.memory_space<vmem>>) attributes {dimension_semantics = [#tpu.dimension_semantics<parallel>], iteration_bounds = array<i64: 2>, scalar_prefetch = 0 : i64, scratch_operands = 0 : i64, tpu.core_type = #tpu.core_type<tc>, window_params = [{pipeline_mode = #tpu.pipeline_mode<synchronous>, transform_indices = @transform_0, window_bounds = array<i64: 2, 512>}, {transform_indices = @transform_1, window_bounds = array<i64: 512, 256>}, {transform_indices = @transform_2, window_bounds = array<i64: 2, 256>}]} {
    %c0 = arith.constant 0 : index
    %c0_0 = arith.constant 0 : index
    %0 = vector.load %arg1[%c0, %c0_0] : memref<2x512xf32, #tpu.memory_space<vmem>>, vector<2x512xf32>
    %c0_1 = arith.constant 0 : index
    %c0_2 = arith.constant 0 : index
    %1 = vector.load %arg2[%c0_1, %c0_2] : memref<512x256xf32, #tpu.memory_space<vmem>>, vector<512x256xf32>
    %cst = arith.constant dense<0.000000e+00> : vector<2x256xf32>
    %2 = tpu.matmul %0, %1, %cst {dimension_numbers = #tpu.dot_dimension_numbers<[1], [0], [0], [1], [0, 0, 1, 1], [], []>} : vector<2x512xf32>, vector<512x256xf32>, vector<2x256xf32> -> vector<2x256xf32>
    %c0_3 = arith.constant 0 : index
    %c0_4 = arith.constant 0 : index
    %3 = vector.load %arg3[%c0_3, %c0_4] : memref<2x256xf32, #tpu.memory_space<vmem>>, vector<2x256xf32>
    tpu.vector_store %arg3[%c0_3, %c0_4], %2 {strides = array<i32>} : memref<2x256xf32, #tpu.memory_space<vmem>>, vector<2x256xf32>,
    return
  }
  func.func @transform_0(%arg0: i32) -> (i32, i32) {
    %c0_i32 = arith.constant 0 : i32
    %c0_i32_0 = arith.constant 0 : i32
    %c0_i32_1 = arith.constant 0 : i32
    return %c0_i32, %c0_i32_0 : i32, i32
  }
  func.func @transform_1(%arg0: i32) -> (i32, i32) {
    %c0_i32 = arith.constant 0 : i32
    %c0_i32_0 = arith.constant 0 : i32
    return %c0_i32, %arg0 : i32, i32
  }
  func.func @transform_2(%arg0: i32) -> (i32, i32) {
    %c0_i32 = arith.constant 0 : i32
    %c0_i32_0 = arith.constant 0 : i32
    return %c0_i32, %arg0 : i32, i32
  }
}

module attributes {stable_mosaic.version = 11 : i64} {
  func.func @_pw_kernel(%arg0: i32, %arg1: i32, %arg2: memref<1x8x128xf32, #tpu.memory_space<vmem>>, %arg3: memref<8x8xf32, #tpu.memory_space<vmem>>, %arg4: memref<8x1xf32, #tpu.memory_space<vmem>>, %arg5: memref<1x8x128xf32, #tpu.memory_space<vmem>>, %arg6: memref<1x8x128xf32, #tpu.memory_space<vmem>>) attributes {dimension_semantics = [#tpu.dimension_semantics<parallel>, #tpu.dimension_semantics<parallel>], iteration_bounds = array<i64: 2, 2>, scalar_prefetch = 0 : i64, scratch_operands = 0 : i64, tpu.core_type = #tpu.core_type<tc>, window_params = [{transform_indices = @transform_0, window_bounds = array<i64: 1, 8, 128>}, {pipeline_mode = #tpu.pipeline_mode<synchronous>, transform_indices = @transform_1, window_bounds = array<i64: 8, 8>}, {pipeline_mode = #tpu.pipeline_mode<synchronous>, transform_indices = @transform_2, window_bounds = array<i64: 8, 1>}, {transform_indices = @transform_3, window_bounds = array<i64: 1, 8, 128>}, {transform_indices = @transform_4, window_bounds = array<i64: 1, 8, 128>}]} {
    %c0 = arith.constant 0 : index
    %c0_0 = arith.constant 0 : index
    %c0_1 = arith.constant 0 : index
    %0 = vector.load %arg2[%c0, %c0_0, %c0_1] : memref<1x8x128xf32, #tpu.memory_space<vmem>>, vector<1x8x128xf32>
    %1 = vector.shape_cast %0 : vector<1x8x128xf32> to vector<8x128xf32>
    %c0_2 = arith.constant 0 : index
    %c0_3 = arith.constant 0 : index
    %2 = vector.load %arg3[%c0_2, %c0_3] : memref<8x8xf32, #tpu.memory_space<vmem>>, vector<8x8xf32>
    %cst = arith.constant dense<0.000000e+00> : vector<8x128xf32>
    %3 = tpu.matmul %2, %1, %cst {dimension_numbers = #tpu.dot_dimension_numbers<[1], [0], [0], [1], [0, 0, 1, 1], [], []>} : vector<8x8xf32>, vector<8x128xf32>, vector<8x128xf32> -> vector<8x128xf32>
    %c0_4 = arith.constant 0 : index
    %c0_5 = arith.constant 0 : index
    %4 = vector.load %arg4[%c0_4, %c0_5] : memref<8x1xf32, #tpu.memory_space<vmem>>, vector<8x1xf32>
    %5 = vector.broadcast %4 : vector<8x1xf32> to vector<8x128xf32>
    %6 = arith.addf %3, %5 : vector<8x128xf32>
    %c0_6 = arith.constant 0 : index
    %c0_7 = arith.constant 0 : index
    %c0_8 = arith.constant 0 : index
    %7 = vector.load %arg5[%c0_6, %c0_7, %c0_8] : memref<1x8x128xf32, #tpu.memory_space<vmem>>, vector<1x8x128xf32>
    %8 = vector.shape_cast %7 : vector<1x8x128xf32> to vector<8x128xf32>
    %9 = arith.addf %6, %8 : vector<8x128xf32>
    %10 = math.absf %9 : vector<8x128xf32>
    %cst_9 = arith.constant 0.707106769 : f32
    %11 = vector.broadcast %cst_9 : f32 to vector<8x128xf32>
    %12 = arith.mulf %10, %11 : vector<8x128xf32>
    %cst_10 = arith.constant 0.327591091 : f32
    %13 = vector.broadcast %cst_10 : f32 to vector<8x128xf32>
    %14 = arith.mulf %13, %12 : vector<8x128xf32>
    %cst_11 = arith.constant 1.000000e+00 : f32
    %15 = vector.broadcast %cst_11 : f32 to vector<8x128xf32>
    %16 = arith.addf %15, %14 : vector<8x128xf32>
    %17 = tpu.reciprocal %16 : vector<8x128xf32> -> vector<8x128xf32>
    %cst_12 = arith.constant 1.06140542 : f32
    %18 = vector.broadcast %cst_12 : f32 to vector<8x128xf32>
    %19 = arith.mulf %18, %17 : vector<8x128xf32>
    %cst_13 = arith.constant 1.45315206 : f32
    %20 = vector.broadcast %cst_13 : f32 to vector<8x128xf32>
    %21 = arith.subf %19, %20 : vector<8x128xf32>
    %22 = arith.mulf %21, %17 : vector<8x128xf32>
    %cst_14 = arith.constant 1.42141378 : f32
    %23 = vector.broadcast %cst_14 : f32 to vector<8x128xf32>
    %24 = arith.addf %22, %23 : vector<8x128xf32>
    %25 = arith.mulf %24, %17 : vector<8x128xf32>
    %cst_15 = arith.constant 0.284496725 : f32
    %26 = vector.broadcast %cst_15 : f32 to vector<8x128xf32>
    %27 = arith.subf %25, %26 : vector<8x128xf32>
    %28 = arith.mulf %27, %17 : vector<8x128xf32>
    %cst_16 = arith.constant 0.254829586 : f32
    %29 = vector.broadcast %cst_16 : f32 to vector<8x128xf32>
    %30 = arith.addf %28, %29 : vector<8x128xf32>
    %31 = arith.mulf %30, %17 : vector<8x128xf32>
    %32 = arith.mulf %9, %9 : vector<8x128xf32>
    %cst_17 = arith.constant -5.000000e-01 : f32
    %33 = vector.broadcast %cst_17 : f32 to vector<8x128xf32>
    %34 = arith.mulf %33, %32 : vector<8x128xf32>
    %35 = math.exp %34 : vector<8x128xf32>
    %cst_18 = arith.constant 5.000000e-01 : f32
    %36 = vector.broadcast %cst_18 : f32 to vector<8x128xf32>
    %37 = arith.mulf %36, %10 : vector<8x128xf32>
    %cst_19 = arith.constant 5.000000e-01 : f32
    %38 = vector.broadcast %cst_19 : f32 to vector<8x128xf32>
    %39 = arith.mulf %38, %9 : vector<8x128xf32>
    %40 = arith.addf %39, %37 : vector<8x128xf32>
    %41 = arith.mulf %37, %31 : vector<8x128xf32>
    %42 = arith.mulf %41, %35 : vector<8x128xf32>
    %43 = arith.subf %40, %42 : vector<8x128xf32>
    %c0_20 = arith.constant 0 : index
    %c0_21 = arith.constant 0 : index
    %c0_22 = arith.constant 0 : index
    %44 = vector.load %arg6[%c0_20, %c0_21, %c0_22] : memref<1x8x128xf32, #tpu.memory_space<vmem>>, vector<1x8x128xf32>
    %45 = vector.shape_cast %44 : vector<1x8x128xf32> to vector<8x128xf32>
    %46 = vector.shape_cast %43 : vector<8x128xf32> to vector<1x8x128xf32>
    tpu.vector_store %arg6[%c0_20, %c0_21, %c0_22], %46 {strides = array<i32>} : memref<1x8x128xf32, #tpu.memory_space<vmem>>, vector<1x8x128xf32>,
    return
  }
  func.func @transform_0(%arg0: i32, %arg1: i32) -> (i32, i32, i32) {
    %c0_i32 = arith.constant 0 : i32
    %c0_i32_0 = arith.constant 0 : i32
    return %arg0, %c0_i32, %arg1 : i32, i32, i32
  }
  func.func @transform_1(%arg0: i32, %arg1: i32) -> (i32, i32) {
    %c0_i32 = arith.constant 0 : i32
    %c0_i32_0 = arith.constant 0 : i32
    %c0_i32_1 = arith.constant 0 : i32
    return %c0_i32, %c0_i32_0 : i32, i32
  }
  func.func @transform_2(%arg0: i32, %arg1: i32) -> (i32, i32) {
    %c0_i32 = arith.constant 0 : i32
    %c0_i32_0 = arith.constant 0 : i32
    %c0_i32_1 = arith.constant 0 : i32
    return %c0_i32, %c0_i32_0 : i32, i32
  }
  func.func @transform_3(%arg0: i32, %arg1: i32) -> (i32, i32, i32) {
    %c0_i32 = arith.constant 0 : i32
    %c0_i32_0 = arith.constant 0 : i32
    return %arg0, %c0_i32, %arg1 : i32, i32, i32
  }
  func.func @transform_4(%arg0: i32, %arg1: i32) -> (i32, i32, i32) {
    %c0_i32 = arith.constant 0 : i32
    %c0_i32_0 = arith.constant 0 : i32
    return %arg0, %c0_i32, %arg1 : i32, i32, i32
  }
}

module attributes {stable_mosaic.version = 11 : i64} {
  func.func @_pw_kernel(%arg0: i32, %arg1: i32, %arg2: memref<1x8x128xf32, #tpu.memory_space<vmem>>, %arg3: memref<8x8xf32, #tpu.memory_space<vmem>>, %arg4: memref<8x1xf32, #tpu.memory_space<vmem>>, %arg5: memref<1x8x128xf32, #tpu.memory_space<vmem>>, %arg6: memref<1x8x128xf32, #tpu.memory_space<vmem>>) attributes {dimension_semantics = [#tpu.dimension_semantics<parallel>, #tpu.dimension_semantics<parallel>], iteration_bounds = array<i64: 2, 2>, scalar_prefetch = 0 : i64, scratch_operands = 0 : i64, tpu.core_type = #tpu.core_type<tc>, window_params = [{transform_indices = @transform_0, window_bounds = array<i64: 1, 8, 128>}, {pipeline_mode = #tpu.pipeline_mode<synchronous>, transform_indices = @transform_1, window_bounds = array<i64: 8, 8>}, {pipeline_mode = #tpu.pipeline_mode<synchronous>, transform_indices = @transform_2, window_bounds = array<i64: 8, 1>}, {transform_indices = @transform_3, window_bounds = array<i64: 1, 8, 128>}, {transform_indices = @transform_4, window_bounds = array<i64: 1, 8, 128>}]} {
    %c0 = arith.constant 0 : index
    %c0_0 = arith.constant 0 : index
    %c0_1 = arith.constant 0 : index
    %0 = vector.load %arg2[%c0, %c0_0, %c0_1] : memref<1x8x128xf32, #tpu.memory_space<vmem>>, vector<1x8x128xf32>
    %1 = vector.shape_cast %0 : vector<1x8x128xf32> to vector<8x128xf32>
    %c0_2 = arith.constant 0 : index
    %c0_3 = arith.constant 0 : index
    %2 = vector.load %arg3[%c0_2, %c0_3] : memref<8x8xf32, #tpu.memory_space<vmem>>, vector<8x8xf32>
    %cst = arith.constant dense<0.000000e+00> : vector<8x128xf32>
    %3 = tpu.matmul %2, %1, %cst {dimension_numbers = #tpu.dot_dimension_numbers<[1], [0], [0], [1], [0, 0, 1, 1], [], []>} : vector<8x8xf32>, vector<8x128xf32>, vector<8x128xf32> -> vector<8x128xf32>
    %c0_4 = arith.constant 0 : index
    %c0_5 = arith.constant 0 : index
    %4 = vector.load %arg4[%c0_4, %c0_5] : memref<8x1xf32, #tpu.memory_space<vmem>>, vector<8x1xf32>
    %5 = vector.broadcast %4 : vector<8x1xf32> to vector<8x128xf32>
    %6 = arith.addf %3, %5 : vector<8x128xf32>
    %c0_6 = arith.constant 0 : index
    %c0_7 = arith.constant 0 : index
    %c0_8 = arith.constant 0 : index
    %7 = vector.load %arg5[%c0_6, %c0_7, %c0_8] : memref<1x8x128xf32, #tpu.memory_space<vmem>>, vector<1x8x128xf32>
    %8 = vector.shape_cast %7 : vector<1x8x128xf32> to vector<8x128xf32>
    %9 = arith.addf %6, %8 : vector<8x128xf32>
    %c0_9 = arith.constant 0 : index
    %c0_10 = arith.constant 0 : index
    %c0_11 = arith.constant 0 : index
    %10 = vector.load %arg6[%c0_9, %c0_10, %c0_11] : memref<1x8x128xf32, #tpu.memory_space<vmem>>, vector<1x8x128xf32>
    %11 = vector.shape_cast %10 : vector<1x8x128xf32> to vector<8x128xf32>
    %12 = vector.shape_cast %9 : vector<8x128xf32> to vector<1x8x128xf32>
    tpu.vector_store %arg6[%c0_9, %c0_10, %c0_11], %12 {strides = array<i32>} : memref<1x8x128xf32, #tpu.memory_space<vmem>>, vector<1x8x128xf32>,
    return
  }
  func.func @transform_0(%arg0: i32, %arg1: i32) -> (i32, i32, i32) {
    %c0_i32 = arith.constant 0 : i32
    %c0_i32_0 = arith.constant 0 : i32
    return %arg0, %c0_i32, %arg1 : i32, i32, i32
  }
  func.func @transform_1(%arg0: i32, %arg1: i32) -> (i32, i32) {
    %c0_i32 = arith.constant 0 : i32
    %c0_i32_0 = arith.constant 0 : i32
    %c0_i32_1 = arith.constant 0 : i32
    return %c0_i32, %c0_i32_0 : i32, i32
  }
  func.func @transform_2(%arg0: i32, %arg1: i32) -> (i32, i32) {
    %c0_i32 = arith.constant 0 : i32
    %c0_i32_0 = arith.constant 0 : i32
    %c0_i32_1 = arith.constant 0 : i32
    return %c0_i32, %c0_i32_0 : i32, i32
  }
  func.func @transform_3(%arg0: i32, %arg1: i32) -> (i32, i32, i32) {
    %c0_i32 = arith.constant 0 : i32
    %c0_i32_0 = arith.constant 0 : i32
    return %arg0, %c0_i32, %arg1 : i32, i32, i32
  }
  func.func @transform_4(%arg0: i32, %arg1: i32) -> (i32, i32, i32) {
    %c0_i32 = arith.constant 0 : i32
    %c0_i32_0 = arith.constant 0 : i32
    return %arg0, %c0_i32, %arg1 : i32, i32, i32
  }
}

</mosaic_0001>

<bundles_post_ra>
// kernel: trans_net_forward.6
= control target key start
LH: loop header
LB: loop body
LE: loop exit
PB: predicated region body
PF: predicated region fallthrough
CT: control target
= control target key end

     0   :  { %s1340_s9 = smov 0   ;;  %s1342_s10 = smov 0   ;;  %s1995_s0 = inlined_call_operand.vmem [shape: f32[2,768], index: 0, kind: input, shape index: {}]   ;;  %s1996_s1 = inlined_call_operand.vmem [shape: f32[768,512], index: 1, kind: input, shape index: {}]   ;;  %s1997_s2 = inlined_call_operand.vmem [shape: f32[2,512], index: 2, kind: output, shape index: {}]  }
   0x1   :  { %s1344_s11 = smov 0  }
   0x2 LB: > { %s1062_s12 = sadd.s32 4294967295, %s1322_s11   ;;  %s1357_s13 = sadd.s32 1, %s1322_s11   ;;  %s1322_s11 = sphi %s1344_s11, %s2000_s11   ;;  %s1318_s10 = sphi %s1342_s10, %s1999_s10   ;;  %s1314_s9 = sphi %s1340_s9, %s1998_s9  }
   0x3   : > { %s37_s14 = ssub.s32 %s1322_s11, %s1357_s13  ;;  %s40_s15 = sadd.s32 1, %s1318_s10 }
   0x4   : > { %p38_p0 = scmp.eq.s32.totalorder %s37_s14, 0  ;;  %p47_p1 = scmp.ne.s32.totalorder %s1318_s10, %s1314_s9 }
   0x5   : > { %p48_p2 = scmp.eq.s32.totalorder %s1322_s11, 0  ;;  %p1065_p4 = scmp.ge.s32.totalorder %s1322_s11, 2 }
   0x6   : > { %s1366_s16 = scalar_select %p38_p0, %s1318_s10, %s40_s15  }
   0x7   : > { %p49_p3 = por %p48_p2, %p47_p1  ;;  %102 = sbr.rel (%p1065_p4) target bundleno = 114 (0x72), region = 20 }
   0xe   : > { %105 = sbr.rel (!%p49_p3) target bundleno = 114 (0x72), region = 24  ;;  %s107_s17 = sand.u32 (%p49_p3), 1, %s1318_s10  }
   0xf   : > { %s1075_s18 = sshll.u32 (%p49_p3), %s1322_s11, 4  ;;  %s1272_s19 = smul.u32 (%p49_p3), 1536, %s107_s17 }
  0x10   : > { %s1374_s22 = scalar_lea.vmem (%p49_p3), %s1996_s1, %s1075_s18 }
  0x11   : > { %v125_v0 = vld [vmem:[%s1374_s22] sm:$0xff] (%p49_p3)  ;;  %v127_v1 = vld [vmem:[%s1374_s22 + $0x8] sm:$0xff] (%p49_p3)  ;;  %s1382_s23 = scalar_lea.vmem (%p49_p3), [#allocation2], %s1272_s19 }
  0x12   : > { %v129_v2 = vld [vmem:[%s1374_s22 + $0x20] sm:$0xff] (%p49_p3)  ;;  %v131_v3 = vld [vmem:[%s1374_s22 + $0x28] sm:$0xff] (%p49_p3)  ;;  %126 = vst [vmem:[%s1382_s23] sm:$0xff] (%p49_p3), %v125_v0  ;;  %128 = vst [vmem:[%s1382_s23 + $0x8] sm:$0xff] (%p49_p3), %v127_v1 }
  0x13   : > { %v133_v4 = vld [vmem:[%s1374_s22 + $0x40] sm:$0xff] (%p49_p3)  ;;  %v135_v5 = vld [vmem:[%s1374_s22 + $0x48] sm:$0xff] (%p49_p3)  ;;  %130 = vst [vmem:[%s1382_s23 + $0x10] sm:$0xff] (%p49_p3), %v129_v2  ;;  %132 = vst [vmem:[%s1382_s23 + $0x18] sm:$0xff] (%p49_p3), %v131_v3 }
  0x14   : > { %134 = vst [vmem:[%s1382_s23 + $0x20] sm:$0xff] (%p49_p3), %v133_v4  ;;  %136 = vst [vmem:[%s1382_s23 + $0x28] sm:$0xff] (%p49_p3), %v135_v5  ;;  %v137_v6 = vld [vmem:[%s1374_s22 + $0x60] sm:$0xff] (%p49_p3)  ;;  %v139_v7 = vld [vmem:[%s1374_s22 + $0x68] sm:$0xff] (%p49_p3) }
  0x15   : > { %v141_v8 = vld [vmem:[%s1374_s22 + $0x80] sm:$0xff]  ;;  %138 = vst [vmem:[%s1382_s23 + $0x30] sm:$0xff] %v137_v6  ;;  %140 = vst [vmem:[%s1382_s23 + $0x38] sm:$0xff] %v139_v7  ;;  %v143_v9 = vld [vmem:[%s1374_s22 + $0x88] sm:$0xff] }
  0x16   : > { %142 = vst [vmem:[%s1382_s23 + $0x40] sm:$0xff] %v141_v8  ;;  %v145_v10 = vld [vmem:[%s1374_s22 + $0xa0] sm:$0xff]  ;;  %v147_v11 = vld [vmem:[%s1374_s22 + $0xa8] sm:$0xff]  ;;  %144 = vst [vmem:[%s1382_s23 + $0x48] sm:$0xff] %v143_v9 }
  0x17   : > { %146 = vst [vmem:[%s1382_s23 + $0x50] sm:$0xff] %v145_v10  ;;  %148 = vst [vmem:[%s1382_s23 + $0x58] sm:$0xff] %v147_v11  ;;  %v149_v12 = vld [vmem:[%s1374_s22 + $0xc0] sm:$0xff]  ;;  %v151_v13 = vld [vmem:[%s1374_s22 + $0xc8] sm:$0xff] }
  0x18   : > { %v153_v14 = vld [vmem:[%s1374_s22 + $0xe0] sm:$0xff]  ;;  %150 = vst [vmem:[%s1382_s23 + $0x60] sm:$0xff] %v149_v12  ;;  %152 = vst [vmem:[%s1382_s23 + $0x68] sm:$0xff] %v151_v13  ;;  %v155_v15 = vld [vmem:[%s1374_s22 + $0xe8] sm:$0xff] }
  0x19   : > { %154 = vst [vmem:[%s1382_s23 + $0x70] sm:$0xff] %v153_v14  ;;  %v157_v16 = vld [vmem:[%s1374_s22 + $0x100] sm:$0xff]  ;;  %v159_v17 = vld [vmem:[%s1374_s22 + $0x108] sm:$0xff]  ;;  %156 = vst [vmem:[%s1382_s23 + $0x78] sm:$0xff] %v155_v15 }
  0x1a   : > { %158 = vst [vmem:[%s1382_s23 + $0x80] sm:$0xff] %v157_v16  ;;  %160 = vst [vmem:[%s1382_s23 + $0x88] sm:$0xff] %v159_v17  ;;  %v161_v18 = vld [vmem:[%s1374_s22 + $0x120] sm:$0xff]  ;;  %v163_v19 = vld [vmem:[%s1374_s22 + $0x128] sm:$0xff] }
  0x1b   : > { %v165_v20 = vld [vmem:[%s1374_s22 + $0x140] sm:$0xff]  ;;  %162 = vst [vmem:[%s1382_s23 + $0x90] sm:$0xff] %v161_v18  ;;  %164 = vst [vmem:[%s1382_s23 + $0x98] sm:$0xff] %v163_v19  ;;  %v167_v21 = vld [vmem:[%s1374_s22 + $0x148] sm:$0xff] }
  0x1c   : > { %166 = vst [vmem:[%s1382_s23 + $0xa0] sm:$0xff] %v165_v20  ;;  %v169_v22 = vld [vmem:[%s1374_s22 + $0x160] sm:$0xff]  ;;  %v171_v23 = vld [vmem:[%s1374_s22 + $0x168] sm:$0xff]  ;;  %168 = vst [vmem:[%s1382_s23 + $0xa8] sm:$0xff] %v167_v21 }
  0x1d   : > { %170 = vst [vmem:[%s1382_s23 + $0xb0] sm:$0xff] %v169_v22  ;;  %172 = vst [vmem:[%s1382_s23 + $0xb8] sm:$0xff] %v171_v23  ;;  %v173_v24 = vld [vmem:[%s1374_s22 + $0x180] sm:$0xff]  ;;  %v175_v25 = vld [vmem:[%s1374_s22 + $0x188] sm:$0xff] }
  0x1e   : > { %v177_v26 = vld [vmem:[%s1374_s22 + $0x1a0] sm:$0xff]  ;;  %174 = vst [vmem:[%s1382_s23 + $0xc0] sm:$0xff] %v173_v24  ;;  %176 = vst [vmem:[%s1382_s23 + $0xc8] sm:$0xff] %v175_v25  ;;  %v179_v27 = vld [vmem:[%s1374_s22 + $0x1a8] sm:$0xff] }
  0x1f   : > { %178 = vst [vmem:[%s1382_s23 + $0xd0] sm:$0xff] %v177_v26  ;;  %v181_v28 = vld [vmem:[%s1374_s22 + $0x1c0] sm:$0xff]  ;;  %v183_v29 = vld [vmem:[%s1374_s22 + $0x1c8] sm:$0xff]  ;;  %180 = vst [vmem:[%s1382_s23 + $0xd8] sm:$0xff] %v179_v27 }
  0x20   : > { %182 = vst [vmem:[%s1382_s23 + $0xe0] sm:$0xff] %v181_v28  ;;  %184 = vst [vmem:[%s1382_s23 + $0xe8] sm:$0xff] %v183_v29  ;;  %v185_v30 = vld [vmem:[%s1374_s22 + $0x1e0] sm:$0xff]  ;;  %v187_v31 = vld [vmem:[%s1374_s22 + $0x1e8] sm:$0xff] }
  0x21   : > { %v189_v32 = vld [vmem:[%s1374_s22 + $0x200] sm:$0xff]  ;;  %186 = vst [vmem:[%s1382_s23 + $0xf0] sm:$0xff] %v185_v30  ;;  %188 = vst [vmem:[%s1382_s23 + $0xf8] sm:$0xff] %v187_v31  ;;  %v191_v33 = vld [vmem:[%s1374_s22 + $0x208] sm:$0xff] }
  0x22   : > { %190 = vst [vmem:[%s1382_s23 + $0x100] sm:$0xff] %v189_v32  ;;  %v193_v34 = vld [vmem:[%s1374_s22 + $0x220] sm:$0xff]  ;;  %v195_v35 = vld [vmem:[%s1374_s22 + $0x228] sm:$0xff]  ;;  %192 = vst [vmem:[%s1382_s23 + $0x108] sm:$0xff] %v191_v33 }
  0x23   : > { %194 = vst [vmem:[%s1382_s23 + $0x110] sm:$0xff] %v193_v34  ;;  %196 = vst [vmem:[%s1382_s23 + $0x118] sm:$0xff] %v195_v35  ;;  %v197_v36 = vld [vmem:[%s1374_s22 + $0x240] sm:$0xff]  ;;  %v199_v37 = vld [vmem:[%s1374_s22 + $0x248] sm:$0xff] }
  0x24   : > { %v201_v38 = vld [vmem:[%s1374_s22 + $0x260] sm:$0xff]  ;;  %198 = vst [vmem:[%s1382_s23 + $0x120] sm:$0xff] %v197_v36  ;;  %200 = vst [vmem:[%s1382_s23 + $0x128] sm:$0xff] %v199_v37  ;;  %v203_v39 = vld [vmem:[%s1374_s22 + $0x268] sm:$0xff] }
  0x25   : > { %202 = vst [vmem:[%s1382_s23 + $0x130] sm:$0xff] %v201_v38  ;;  %v205_v40 = vld [vmem:[%s1374_s22 + $0x280] sm:$0xff]  ;;  %v207_v41 = vld [vmem:[%s1374_s22 + $0x288] sm:$0xff]  ;;  %204 = vst [vmem:[%s1382_s23 + $0x138] sm:$0xff] %v203_v39 }
  0x26   : > { %206 = vst [vmem:[%s1382_s23 + $0x140] sm:$0xff] %v205_v40  ;;  %208 = vst [vmem:[%s1382_s23 + $0x148] sm:$0xff] %v207_v41  ;;  %v209_v42 = vld [vmem:[%s1374_s22 + $0x2a0] sm:$0xff]  ;;  %v211_v43 = vld [vmem:[%s1374_s22 + $0x2a8] sm:$0xff] }
  0x27   : > { %v213_v44 = vld [vmem:[%s1374_s22 + $0x2c0] sm:$0xff]  ;;  %210 = vst [vmem:[%s1382_s23 + $0x150] sm:$0xff] %v209_v42  ;;  %212 = vst [vmem:[%s1382_s23 + $0x158] sm:$0xff] %v211_v43  ;;  %v215_v45 = vld [vmem:[%s1374_s22 + $0x2c8] sm:$0xff] }
  0x28   : > { %214 = vst [vmem:[%s1382_s23 + $0x160] sm:$0xff] %v213_v44  ;;  %v217_v46 = vld [vmem:[%s1374_s22 + $0x2e0] sm:$0xff]  ;;  %v219_v47 = vld [vmem:[%s1374_s22 + $0x2e8] sm:$0xff]  ;;  %216 = vst [vmem:[%s1382_s23 + $0x168] sm:$0xff] %v215_v45 }
  0x29   : > { %218 = vst [vmem:[%s1382_s23 + $0x170] sm:$0xff] %v217_v46  ;;  %220 = vst [vmem:[%s1382_s23 + $0x178] sm:$0xff] %v219_v47  ;;  %v221_v48 = vld [vmem:[%s1374_s22 + $0x300] sm:$0xff]  ;;  %v223_v49 = vld [vmem:[%s1374_s22 + $0x308] sm:$0xff] }
  0x2a   : > { %v225_v50 = vld [vmem:[%s1374_s22 + $0x320] sm:$0xff]  ;;  %222 = vst [vmem:[%s1382_s23 + $0x180] sm:$0xff] %v221_v48  ;;  %224 = vst [vmem:[%s1382_s23 + $0x188] sm:$0xff] %v223_v49  ;;  %v227_v51 = vld [vmem:[%s1374_s22 + $0x328] sm:$0xff] }
  0x2b   : > { %226 = vst [vmem:[%s1382_s23 + $0x190] sm:$0xff] %v225_v50  ;;  %v229_v52 = vld [vmem:[%s1374_s22 + $0x340] sm:$0xff]  ;;  %v231_v53 = vld [vmem:[%s1374_s22 + $0x348] sm:$0xff]  ;;  %228 = vst [vmem:[%s1382_s23 + $0x198] sm:$0xff] %v227_v51 }
  0x2c   : > { %230 = vst [vmem:[%s1382_s23 + $0x1a0] sm:$0xff] %v229_v52  ;;  %232 = vst [vmem:[%s1382_s23 + $0x1a8] sm:$0xff] %v231_v53  ;;  %v233_v54 = vld [vmem:[%s1374_s22 + $0x360] sm:$0xff]  ;;  %v235_v55 = vld [vmem:[%s1374_s22 + $0x368] sm:$0xff] }
  0x2d   : > { %v237_v56 = vld [vmem:[%s1374_s22 + $0x380] sm:$0xff]  ;;  %234 = vst [vmem:[%s1382_s23 + $0x1b0] sm:$0xff] %v233_v54  ;;  %236 = vst [vmem:[%s1382_s23 + $0x1b8] sm:$0xff] %v235_v55  ;;  %v239_v57 = vld [vmem:[%s1374_s22 + $0x388] sm:$0xff] }
  0x2e   : > { %238 = vst [vmem:[%s1382_s23 + $0x1c0] sm:$0xff] %v237_v56  ;;  %v241_v58 = vld [vmem:[%s1374_s22 + $0x3a0] sm:$0xff]  ;;  %v243_v59 = vld [vmem:[%s1374_s22 + $0x3a8] sm:$0xff]  ;;  %240 = vst [vmem:[%s1382_s23 + $0x1c8] sm:$0xff] %v239_v57 }
  0x2f   : > { %242 = vst [vmem:[%s1382_s23 + $0x1d0] sm:$0xff] %v241_v58  ;;  %244 = vst [vmem:[%s1382_s23 + $0x1d8] sm:$0xff] %v243_v59  ;;  %v245_v60 = vld [vmem:[%s1374_s22 + $0x3c0] sm:$0xff]  ;;  %v247_v61 = vld [vmem:[%s1374_s22 + $0x3c8] sm:$0xff] }
  0x30   : > { %v249_v62 = vld [vmem:[%s1374_s22 + $0x3e0] sm:$0xff]  ;;  %246 = vst [vmem:[%s1382_s23 + $0x1e0] sm:$0xff] %v245_v60  ;;  %248 = vst [vmem:[%s1382_s23 + $0x1e8] sm:$0xff] %v247_v61  ;;  %v251_v63 = vld [vmem:[%s1374_s22 + $0x3e8] sm:$0xff] }
  0x31   : > { %250 = vst [vmem:[%s1382_s23 + $0x1f0] sm:$0xff] %v249_v62  ;;  %v253_v0 = vld [vmem:[%s1374_s22 + $0x400] sm:$0xff]  ;;  %v255_v1 = vld [vmem:[%s1374_s22 + $0x408] sm:$0xff]  ;;  %252 = vst [vmem:[%s1382_s23 + $0x1f8] sm:$0xff] %v251_v63 }
  0x32   : > { %254 = vst [vmem:[%s1382_s23 + $0x200] sm:$0xff] %v253_v0  ;;  %256 = vst [vmem:[%s1382_s23 + $0x208] sm:$0xff] %v255_v1  ;;  %v257_v2 = vld [vmem:[%s1374_s22 + $0x420] sm:$0xff]  ;;  %v259_v3 = vld [vmem:[%s1374_s22 + $0x428] sm:$0xff] }
  0x33   : > { %v261_v4 = vld [vmem:[%s1374_s22 + $0x440] sm:$0xff]  ;;  %258 = vst [vmem:[%s1382_s23 + $0x210] sm:$0xff] %v257_v2  ;;  %260 = vst [vmem:[%s1382_s23 + $0x218] sm:$0xff] %v259_v3  ;;  %v263_v5 = vld [vmem:[%s1374_s22 + $0x448] sm:$0xff] }
  0x34   : > { %262 = vst [vmem:[%s1382_s23 + $0x220] sm:$0xff] %v261_v4  ;;  %v265_v6 = vld [vmem:[%s1374_s22 + $0x460] sm:$0xff]  ;;  %v267_v7 = vld [vmem:[%s1374_s22 + $0x468] sm:$0xff]  ;;  %264 = vst [vmem:[%s1382_s23 + $0x228] sm:$0xff] %v263_v5 }
  0x35   : > { %266 = vst [vmem:[%s1382_s23 + $0x230] sm:$0xff] %v265_v6  ;;  %268 = vst [vmem:[%s1382_s23 + $0x238] sm:$0xff] %v267_v7  ;;  %v269_v8 = vld [vmem:[%s1374_s22 + $0x480] sm:$0xff]  ;;  %v271_v9 = vld [vmem:[%s1374_s22 + $0x488] sm:$0xff] }
  0x36   : > { %v273_v10 = vld [vmem:[%s1374_s22 + $0x4a0] sm:$0xff]  ;;  %270 = vst [vmem:[%s1382_s23 + $0x240] sm:$0xff] %v269_v8  ;;  %272 = vst [vmem:[%s1382_s23 + $0x248] sm:$0xff] %v271_v9  ;;  %v275_v11 = vld [vmem:[%s1374_s22 + $0x4a8] sm:$0xff] }
  0x37   : > { %274 = vst [vmem:[%s1382_s23 + $0x250] sm:$0xff] %v273_v10  ;;  %v277_v12 = vld [vmem:[%s1374_s22 + $0x4c0] sm:$0xff]  ;;  %v279_v13 = vld [vmem:[%s1374_s22 + $0x4c8] sm:$0xff]  ;;  %276 = vst [vmem:[%s1382_s23 + $0x258] sm:$0xff] %v275_v11 }
  0x38   : > { %278 = vst [vmem:[%s1382_s23 + $0x260] sm:$0xff] %v277_v12  ;;  %280 = vst [vmem:[%s1382_s23 + $0x268] sm:$0xff] %v279_v13  ;;  %v281_v14 = vld [vmem:[%s1374_s22 + $0x4e0] sm:$0xff]  ;;  %v283_v15 = vld [vmem:[%s1374_s22 + $0x4e8] sm:$0xff] }
  0x39   : > { %v285_v16 = vld [vmem:[%s1374_s22 + $0x500] sm:$0xff]  ;;  %282 = vst [vmem:[%s1382_s23 + $0x270] sm:$0xff] %v281_v14  ;;  %284 = vst [vmem:[%s1382_s23 + $0x278] sm:$0xff] %v283_v15  ;;  %v287_v17 = vld [vmem:[%s1374_s22 + $0x508] sm:$0xff] }
  0x3a   : > { %286 = vst [vmem:[%s1382_s23 + $0x280] sm:$0xff] %v285_v16  ;;  %v289_v18 = vld [vmem:[%s1374_s22 + $0x520] sm:$0xff]  ;;  %v291_v19 = vld [vmem:[%s1374_s22 + $0x528] sm:$0xff]  ;;  %288 = vst [vmem:[%s1382_s23 + $0x288] sm:$0xff] %v287_v17 }
  0x3b   : > { %290 = vst [vmem:[%s1382_s23 + $0x290] sm:$0xff] %v289_v18  ;;  %292 = vst [vmem:[%s1382_s23 + $0x298] sm:$0xff] %v291_v19  ;;  %v293_v20 = vld [vmem:[%s1374_s22 + $0x540] sm:$0xff]  ;;  %v295_v21 = vld [vmem:[%s1374_s22 + $0x548] sm:$0xff] }
  0x3c   : > { %v297_v22 = vld [vmem:[%s1374_s22 + $0x560] sm:$0xff]  ;;  %294 = vst [vmem:[%s1382_s23 + $0x2a0] sm:$0xff] %v293_v20  ;;  %296 = vst [vmem:[%s1382_s23 + $0x2a8] sm:$0xff] %v295_v21  ;;  %v299_v23 = vld [vmem:[%s1374_s22 + $0x568] sm:$0xff] }
  0x3d   : > { %298 = vst [vmem:[%s1382_s23 + $0x2b0] sm:$0xff] %v297_v22  ;;  %v301_v24 = vld [vmem:[%s1374_s22 + $0x580] sm:$0xff]  ;;  %v303_v25 = vld [vmem:[%s1374_s22 + $0x588] sm:$0xff]  ;;  %300 = vst [vmem:[%s1382_s23 + $0x2b8] sm:$0xff] %v299_v23 }
  0x3e   : > { %302 = vst [vmem:[%s1382_s23 + $0x2c0] sm:$0xff] %v301_v24  ;;  %304 = vst [vmem:[%s1382_s23 + $0x2c8] sm:$0xff] %v303_v25  ;;  %v305_v26 = vld [vmem:[%s1374_s22 + $0x5a0] sm:$0xff]  ;;  %v307_v27 = vld [vmem:[%s1374_s22 + $0x5a8] sm:$0xff] }
  0x3f   : > { %v309_v28 = vld [vmem:[%s1374_s22 + $0x5c0] sm:$0xff]  ;;  %306 = vst [vmem:[%s1382_s23 + $0x2d0] sm:$0xff] %v305_v26  ;;  %308 = vst [vmem:[%s1382_s23 + $0x2d8] sm:$0xff] %v307_v27  ;;  %v311_v29 = vld [vmem:[%s1374_s22 + $0x5c8] sm:$0xff] }
  0x40   : > { %310 = vst [vmem:[%s1382_s23 + $0x2e0] sm:$0xff] %v309_v28  ;;  %v313_v30 = vld [vmem:[%s1374_s22 + $0x5e0] sm:$0xff]  ;;  %v315_v31 = vld [vmem:[%s1374_s22 + $0x5e8] sm:$0xff]  ;;  %312 = vst [vmem:[%s1382_s23 + $0x2e8] sm:$0xff] %v311_v29 }
  0x41   : > { %314 = vst [vmem:[%s1382_s23 + $0x2f0] sm:$0xff] %v313_v30  ;;  %316 = vst [vmem:[%s1382_s23 + $0x2f8] sm:$0xff] %v315_v31  ;;  %v317_v32 = vld [vmem:[%s1374_s22 + $0x600] sm:$0xff]  ;;  %v319_v33 = vld [vmem:[%s1374_s22 + $0x608] sm:$0xff] }
  0x42   : > { %v321_v34 = vld [vmem:[%s1374_s22 + $0x620] sm:$0xff]  ;;  %318 = vst [vmem:[%s1382_s23 + $0x300] sm:$0xff] %v317_v32  ;;  %320 = vst [vmem:[%s1382_s23 + $0x308] sm:$0xff] %v319_v33  ;;  %v323_v35 = vld [vmem:[%s1374_s22 + $0x628] sm:$0xff] }
  0x43   : > { %322 = vst [vmem:[%s1382_s23 + $0x310] sm:$0xff] %v321_v34  ;;  %v325_v36 = vld [vmem:[%s1374_s22 + $0x640] sm:$0xff]  ;;  %v327_v37 = vld [vmem:[%s1374_s22 + $0x648] sm:$0xff]  ;;  %324 = vst [vmem:[%s1382_s23 + $0x318] sm:$0xff] %v323_v35 }
  0x44   : > { %326 = vst [vmem:[%s1382_s23 + $0x320] sm:$0xff] %v325_v36  ;;  %328 = vst [vmem:[%s1382_s23 + $0x328] sm:$0xff] %v327_v37  ;;  %v329_v38 = vld [vmem:[%s1374_s22 + $0x660] sm:$0xff]  ;;  %v331_v39 = vld [vmem:[%s1374_s22 + $0x668] sm:$0xff] }
  0x45   : > { %v333_v40 = vld [vmem:[%s1374_s22 + $0x680] sm:$0xff]  ;;  %330 = vst [vmem:[%s1382_s23 + $0x330] sm:$0xff] %v329_v38  ;;  %332 = vst [vmem:[%s1382_s23 + $0x338] sm:$0xff] %v331_v39  ;;  %v335_v41 = vld [vmem:[%s1374_s22 + $0x688] sm:$0xff] }
  0x46   : > { %334 = vst [vmem:[%s1382_s23 + $0x340] sm:$0xff] %v333_v40  ;;  %v337_v42 = vld [vmem:[%s1374_s22 + $0x6a0] sm:$0xff]  ;;  %v339_v43 = vld [vmem:[%s1374_s22 + $0x6a8] sm:$0xff]  ;;  %336 = vst [vmem:[%s1382_s23 + $0x348] sm:$0xff] %v335_v41 }
  0x47   : > { %338 = vst [vmem:[%s1382_s23 + $0x350] sm:$0xff] %v337_v42  ;;  %340 = vst [vmem:[%s1382_s23 + $0x358] sm:$0xff] %v339_v43  ;;  %v341_v44 = vld [vmem:[%s1374_s22 + $0x6c0] sm:$0xff]  ;;  %v343_v45 = vld [vmem:[%s1374_s22 + $0x6c8] sm:$0xff] }
  0x48   : > { %v345_v46 = vld [vmem:[%s1374_s22 + $0x6e0] sm:$0xff]  ;;  %342 = vst [vmem:[%s1382_s23 + $0x360] sm:$0xff] %v341_v44  ;;  %344 = vst [vmem:[%s1382_s23 + $0x368] sm:$0xff] %v343_v45  ;;  %v347_v47 = vld [vmem:[%s1374_s22 + $0x6e8] sm:$0xff] }
  0x49   : > { %346 = vst [vmem:[%s1382_s23 + $0x370] sm:$0xff] %v345_v46  ;;  %v349_v48 = vld [vmem:[%s1374_s22 + $0x700] sm:$0xff]  ;;  %v351_v49 = vld [vmem:[%s1374_s22 + $0x708] sm:$0xff]  ;;  %348 = vst [vmem:[%s1382_s23 + $0x378] sm:$0xff] %v347_v47 }
  0x4a   : > { %350 = vst [vmem:[%s1382_s23 + $0x380] sm:$0xff] %v349_v48  ;;  %352 = vst [vmem:[%s1382_s23 + $0x388] sm:$0xff] %v351_v49  ;;  %v353_v50 = vld [vmem:[%s1374_s22 + $0x720] sm:$0xff]  ;;  %v355_v51 = vld [vmem:[%s1374_s22 + $0x728] sm:$0xff] }
  0x4b   : > { %v357_v52 = vld [vmem:[%s1374_s22 + $0x740] sm:$0xff]  ;;  %354 = vst [vmem:[%s1382_s23 + $0x390] sm:$0xff] %v353_v50  ;;  %356 = vst [vmem:[%s1382_s23 + $0x398] sm:$0xff] %v355_v51  ;;  %v359_v53 = vld [vmem:[%s1374_s22 + $0x748] sm:$0xff] }
  0x4c   : > { %358 = vst [vmem:[%s1382_s23 + $0x3a0] sm:$0xff] %v357_v52  ;;  %v361_v54 = vld [vmem:[%s1374_s22 + $0x760] sm:$0xff]  ;;  %v363_v55 = vld [vmem:[%s1374_s22 + $0x768] sm:$0xff]  ;;  %360 = vst [vmem:[%s1382_s23 + $0x3a8] sm:$0xff] %v359_v53 }
  0x4d   : > { %362 = vst [vmem:[%s1382_s23 + $0x3b0] sm:$0xff] %v361_v54  ;;  %364 = vst [vmem:[%s1382_s23 + $0x3b8] sm:$0xff] %v363_v55  ;;  %v365_v56 = vld [vmem:[%s1374_s22 + $0x780] sm:$0xff]  ;;  %v367_v57 = vld [vmem:[%s1374_s22 + $0x788] sm:$0xff] }
  0x4e   : > { %v369_v58 = vld [vmem:[%s1374_s22 + $0x7a0] sm:$0xff]  ;;  %366 = vst [vmem:[%s1382_s23 + $0x3c0] sm:$0xff] %v365_v56  ;;  %368 = vst [vmem:[%s1382_s23 + $0x3c8] sm:$0xff] %v367_v57  ;;  %v371_v59 = vld [vmem:[%s1374_s22 + $0x7a8] sm:$0xff] }
  0x4f   : > { %370 = vst [vmem:[%s1382_s23 + $0x3d0] sm:$0xff] %v369_v58  ;;  %v373_v60 = vld [vmem:[%s1374_s22 + $0x7c0] sm:$0xff]  ;;  %v375_v61 = vld [vmem:[%s1374_s22 + $0x7c8] sm:$0xff]  ;;  %372 = vst [vmem:[%s1382_s23 + $0x3d8] sm:$0xff] %v371_v59 }
  0x50   : > { %374 = vst [vmem:[%s1382_s23 + $0x3e0] sm:$0xff] %v373_v60  ;;  %376 = vst [vmem:[%s1382_s23 + $0x3e8] sm:$0xff] %v375_v61  ;;  %v377_v62 = vld [vmem:[%s1374_s22 + $0x7e0] sm:$0xff]  ;;  %v379_v63 = vld [vmem:[%s1374_s22 + $0x7e8] sm:$0xff] }
  0x51   : > { %v381_v0 = vld [vmem:[%s1374_s22 + $0x800] sm:$0xff]  ;;  %378 = vst [vmem:[%s1382_s23 + $0x3f0] sm:$0xff] %v377_v62  ;;  %380 = vst [vmem:[%s1382_s23 + $0x3f8] sm:$0xff] %v379_v63  ;;  %v383_v1 = vld [vmem:[%s1374_s22 + $0x808] sm:$0xff] }
  0x52   : > { %382 = vst [vmem:[%s1382_s23 + $0x400] sm:$0xff] %v381_v0  ;;  %v385_v2 = vld [vmem:[%s1374_s22 + $0x820] sm:$0xff]  ;;  %v387_v3 = vld [vmem:[%s1374_s22 + $0x828] sm:$0xff]  ;;  %384 = vst [vmem:[%s1382_s23 + $0x408] sm:$0xff] %v383_v1 }
  0x53   : > { %386 = vst [vmem:[%s1382_s23 + $0x410] sm:$0xff] %v385_v2  ;;  %388 = vst [vmem:[%s1382_s23 + $0x418] sm:$0xff] %v387_v3  ;;  %v389_v4 = vld [vmem:[%s1374_s22 + $0x840] sm:$0xff]  ;;  %v391_v5 = vld [vmem:[%s1374_s22 + $0x848] sm:$0xff] }
  0x54   : > { %v393_v6 = vld [vmem:[%s1374_s22 + $0x860] sm:$0xff]  ;;  %390 = vst [vmem:[%s1382_s23 + $0x420] sm:$0xff] %v389_v4  ;;  %392 = vst [vmem:[%s1382_s23 + $0x428] sm:$0xff] %v391_v5  ;;  %v395_v7 = vld [vmem:[%s1374_s22 + $0x868] sm:$0xff] }
  0x55   : > { %394 = vst [vmem:[%s1382_s23 + $0x430] sm:$0xff] %v393_v6  ;;  %v397_v8 = vld [vmem:[%s1374_s22 + $0x880] sm:$0xff]  ;;  %v399_v9 = vld [vmem:[%s1374_s22 + $0x888] sm:$0xff]  ;;  %396 = vst [vmem:[%s1382_s23 + $0x438] sm:$0xff] %v395_v7 }
  0x56   : > { %398 = vst [vmem:[%s1382_s23 + $0x440] sm:$0xff] %v397_v8  ;;  %400 = vst [vmem:[%s1382_s23 + $0x448] sm:$0xff] %v399_v9  ;;  %v401_v10 = vld [vmem:[%s1374_s22 + $0x8a0] sm:$0xff]  ;;  %v403_v11 = vld [vmem:[%s1374_s22 + $0x8a8] sm:$0xff] }
  0x57   : > { %v405_v12 = vld [vmem:[%s1374_s22 + $0x8c0] sm:$0xff]  ;;  %402 = vst [vmem:[%s1382_s23 + $0x450] sm:$0xff] %v401_v10  ;;  %404 = vst [vmem:[%s1382_s23 + $0x458] sm:$0xff] %v403_v11  ;;  %v407_v13 = vld [vmem:[%s1374_s22 + $0x8c8] sm:$0xff] }
  0x58   : > { %406 = vst [vmem:[%s1382_s23 + $0x460] sm:$0xff] %v405_v12  ;;  %v409_v14 = vld [vmem:[%s1374_s22 + $0x8e0] sm:$0xff]  ;;  %v411_v15 = vld [vmem:[%s1374_s22 + $0x8e8] sm:$0xff]  ;;  %408 = vst [vmem:[%s1382_s23 + $0x468] sm:$0xff] %v407_v13 }
  0x59   : > { %410 = vst [vmem:[%s1382_s23 + $0x470] sm:$0xff] %v409_v14  ;;  %412 = vst [vmem:[%s1382_s23 + $0x478] sm:$0xff] %v411_v15  ;;  %v413_v16 = vld [vmem:[%s1374_s22 + $0x900] sm:$0xff]  ;;  %v415_v17 = vld [vmem:[%s1374_s22 + $0x908] sm:$0xff] }
  0x5a   : > { %v417_v18 = vld [vmem:[%s1374_s22 + $0x920] sm:$0xff]  ;;  %414 = vst [vmem:[%s1382_s23 + $0x480] sm:$0xff] %v413_v16  ;;  %416 = vst [vmem:[%s1382_s23 + $0x488] sm:$0xff] %v415_v17  ;;  %v419_v19 = vld [vmem:[%s1374_s22 + $0x928] sm:$0xff] }
  0x5b   : > { %418 = vst [vmem:[%s1382_s23 + $0x490] sm:$0xff] %v417_v18  ;;  %v421_v20 = vld [vmem:[%s1374_s22 + $0x940] sm:$0xff]  ;;  %v423_v21 = vld [vmem:[%s1374_s22 + $0x948] sm:$0xff]  ;;  %420 = vst [vmem:[%s1382_s23 + $0x498] sm:$0xff] %v419_v19 }
  0x5c   : > { %422 = vst [vmem:[%s1382_s23 + $0x4a0] sm:$0xff] %v421_v20  ;;  %424 = vst [vmem:[%s1382_s23 + $0x4a8] sm:$0xff] %v423_v21  ;;  %v425_v22 = vld [vmem:[%s1374_s22 + $0x960] sm:$0xff]  ;;  %v427_v23 = vld [vmem:[%s1374_s22 + $0x968] sm:$0xff] }
  0x5d   : > { %v429_v24 = vld [vmem:[%s1374_s22 + $0x980] sm:$0xff]  ;;  %426 = vst [vmem:[%s1382_s23 + $0x4b0] sm:$0xff] %v425_v22  ;;  %428 = vst [vmem:[%s1382_s23 + $0x4b8] sm:$0xff] %v427_v23  ;;  %v431_v25 = vld [vmem:[%s1374_s22 + $0x988] sm:$0xff] }
  0x5e   : > { %430 = vst [vmem:[%s1382_s23 + $0x4c0] sm:$0xff] %v429_v24  ;;  %v433_v26 = vld [vmem:[%s1374_s22 + $0x9a0] sm:$0xff]  ;;  %v435_v27 = vld [vmem:[%s1374_s22 + $0x9a8] sm:$0xff]  ;;  %432 = vst [vmem:[%s1382_s23 + $0x4c8] sm:$0xff] %v431_v25 }
  0x5f   : > { %434 = vst [vmem:[%s1382_s23 + $0x4d0] sm:$0xff] %v433_v26  ;;  %436 = vst [vmem:[%s1382_s23 + $0x4d8] sm:$0xff] %v435_v27  ;;  %v437_v28 = vld [vmem:[%s1374_s22 + $0x9c0] sm:$0xff]  ;;  %v439_v29 = vld [vmem:[%s1374_s22 + $0x9c8] sm:$0xff] }
  0x60   : > { %v441_v30 = vld [vmem:[%s1374_s22 + $0x9e0] sm:$0xff]  ;;  %438 = vst [vmem:[%s1382_s23 + $0x4e0] sm:$0xff] %v437_v28  ;;  %440 = vst [vmem:[%s1382_s23 + $0x4e8] sm:$0xff] %v439_v29  ;;  %v443_v31 = vld [vmem:[%s1374_s22 + $0x9e8] sm:$0xff] }
  0x61   : > { %442 = vst [vmem:[%s1382_s23 + $0x4f0] sm:$0xff] %v441_v30  ;;  %v445_v32 = vld [vmem:[%s1374_s22 + $0xa00] sm:$0xff]  ;;  %v447_v33 = vld [vmem:[%s1374_s22 + $0xa08] sm:$0xff]  ;;  %444 = vst [vmem:[%s1382_s23 + $0x4f8] sm:$0xff] %v443_v31 }
  0x62   : > { %446 = vst [vmem:[%s1382_s23 + $0x500] sm:$0xff] %v445_v32  ;;  %448 = vst [vmem:[%s1382_s23 + $0x508] sm:$0xff] %v447_v33  ;;  %v449_v34 = vld [vmem:[%s1374_s22 + $0xa20] sm:$0xff]  ;;  %v451_v35 = vld [vmem:[%s1374_s22 + $0xa28] sm:$0xff] }
  0x63   : > { %v453_v36 = vld [vmem:[%s1374_s22 + $0xa40] sm:$0xff]  ;;  %450 = vst [vmem:[%s1382_s23 + $0x510] sm:$0xff] %v449_v34  ;;  %452 = vst [vmem:[%s1382_s23 + $0x518] sm:$0xff] %v451_v35  ;;  %v455_v37 = vld [vmem:[%s1374_s22 + $0xa48] sm:$0xff] }
  0x64   : > { %454 = vst [vmem:[%s1382_s23 + $0x520] sm:$0xff] %v453_v36  ;;  %v457_v38 = vld [vmem:[%s1374_s22 + $0xa60] sm:$0xff]  ;;  %v459_v39 = vld [vmem:[%s1374_s22 + $0xa68] sm:$0xff]  ;;  %456 = vst [vmem:[%s1382_s23 + $0x528] sm:$0xff] %v455_v37 }
  0x65   : > { %458 = vst [vmem:[%s1382_s23 + $0x530] sm:$0xff] %v457_v38  ;;  %460 = vst [vmem:[%s1382_s23 + $0x538] sm:$0xff] %v459_v39  ;;  %v461_v40 = vld [vmem:[%s1374_s22 + $0xa80] sm:$0xff]  ;;  %v463_v41 = vld [vmem:[%s1374_s22 + $0xa88] sm:$0xff] }
  0x66   : > { %v465_v42 = vld [vmem:[%s1374_s22 + $0xaa0] sm:$0xff]  ;;  %462 = vst [vmem:[%s1382_s23 + $0x540] sm:$0xff] %v461_v40  ;;  %464 = vst [vmem:[%s1382_s23 + $0x548] sm:$0xff] %v463_v41  ;;  %v467_v43 = vld [vmem:[%s1374_s22 + $0xaa8] sm:$0xff] }
  0x67   : > { %466 = vst [vmem:[%s1382_s23 + $0x550] sm:$0xff] %v465_v42  ;;  %v469_v44 = vld [vmem:[%s1374_s22 + $0xac0] sm:$0xff]  ;;  %v471_v45 = vld [vmem:[%s1374_s22 + $0xac8] sm:$0xff]  ;;  %468 = vst [vmem:[%s1382_s23 + $0x558] sm:$0xff] %v467_v43 }
  0x68   : > { %470 = vst [vmem:[%s1382_s23 + $0x560] sm:$0xff] %v469_v44  ;;  %472 = vst [vmem:[%s1382_s23 + $0x568] sm:$0xff] %v471_v45  ;;  %v473_v46 = vld [vmem:[%s1374_s22 + $0xae0] sm:$0xff]  ;;  %v475_v47 = vld [vmem:[%s1374_s22 + $0xae8] sm:$0xff] }
  0x69   : > { %v477_v48 = vld [vmem:[%s1374_s22 + $0xb00] sm:$0xff]  ;;  %474 = vst [vmem:[%s1382_s23 + $0x570] sm:$0xff] %v473_v46  ;;  %476 = vst [vmem:[%s1382_s23 + $0x578] sm:$0xff] %v475_v47  ;;  %v479_v49 = vld [vmem:[%s1374_s22 + $0xb08] sm:$0xff] }
  0x6a   : > { %478 = vst [vmem:[%s1382_s23 + $0x580] sm:$0xff] %v477_v48  ;;  %v481_v50 = vld [vmem:[%s1374_s22 + $0xb20] sm:$0xff]  ;;  %v483_v51 = vld [vmem:[%s1374_s22 + $0xb28] sm:$0xff]  ;;  %480 = vst [vmem:[%s1382_s23 + $0x588] sm:$0xff] %v479_v49 }
  0x6b   : > { %482 = vst [vmem:[%s1382_s23 + $0x590] sm:$0xff] %v481_v50  ;;  %484 = vst [vmem:[%s1382_s23 + $0x598] sm:$0xff] %v483_v51  ;;  %v485_v52 = vld [vmem:[%s1374_s22 + $0xb40] sm:$0xff]  ;;  %v487_v53 = vld [vmem:[%s1374_s22 + $0xb48] sm:$0xff] }
  0x6c   : > { %v489_v54 = vld [vmem:[%s1374_s22 + $0xb60] sm:$0xff]  ;;  %486 = vst [vmem:[%s1382_s23 + $0x5a0] sm:$0xff] %v485_v52  ;;  %488 = vst [vmem:[%s1382_s23 + $0x5a8] sm:$0xff] %v487_v53  ;;  %v491_v55 = vld [vmem:[%s1374_s22 + $0xb68] sm:$0xff] }
  0x6d   : > { %490 = vst [vmem:[%s1382_s23 + $0x5b0] sm:$0xff] %v489_v54  ;;  %v493_v56 = vld [vmem:[%s1374_s22 + $0xb80] sm:$0xff]  ;;  %v495_v57 = vld [vmem:[%s1374_s22 + $0xb88] sm:$0xff]  ;;  %492 = vst [vmem:[%s1382_s23 + $0x5b8] sm:$0xff] %v491_v55 }
  0x6e   : > { %494 = vst [vmem:[%s1382_s23 + $0x5c0] sm:$0xff] %v493_v56  ;;  %496 = vst [vmem:[%s1382_s23 + $0x5c8] sm:$0xff] %v495_v57  ;;  %v497_v58 = vld [vmem:[%s1374_s22 + $0xba0] sm:$0xff]  ;;  %v499_v59 = vld [vmem:[%s1374_s22 + $0xba8] sm:$0xff] }
  0x6f   : > { %v501_v60 = vld [vmem:[%s1374_s22 + $0xbc0] sm:$0xff]  ;;  %498 = vst [vmem:[%s1382_s23 + $0x5d0] sm:$0xff] %v497_v58  ;;  %500 = vst [vmem:[%s1382_s23 + $0x5d8] sm:$0xff] %v499_v59  ;;  %v503_v61 = vld [vmem:[%s1374_s22 + $0xbc8] sm:$0xff] }
  0x70   : > { %502 = vst [vmem:[%s1382_s23 + $0x5e0] sm:$0xff] %v501_v60  ;;  %v505_v62 = vld [vmem:[%s1374_s22 + $0xbe0] sm:$0xff]  ;;  %v507_v63 = vld [vmem:[%s1374_s22 + $0xbe8] sm:$0xff]  ;;  %504 = vst [vmem:[%s1382_s23 + $0x5e8] sm:$0xff] %v503_v61 }
  0x71   : > { %506 = vst [vmem:[%s1382_s23 + $0x5f0] sm:$0xff] %v505_v62  ;;  %508 = vst [vmem:[%s1382_s23 + $0x5f8] sm:$0xff] %v507_v63 }
  0x72 PF: > { %p1068_p5 = scmp.ge.s32.totalorder %s1322_s11, 1  ;;  %p513_p6 = scmp.lt.s32.totalorder %s1322_s11, 3 }
  0x74   : > { %p514_p7 = pnand %p1068_p5, %p513_p6 }
  0x75   : > { %s520_s24 = sand.u32 (!%p514_p7), 1, %s1314_s9   ;;  %v548_v0 = vld [vmem:[%s1995_s0] sm:$0xff] (!%p514_p7)  ;;  %v748_v1 = vlaneseq (!%p514_p7)  ;;  %v1324_v2 = vmov (!%p514_p7), 1983009808   ;;  %s1069_s3 = sshll.u32 (!%p514_p7), %s1062_s12, 1 }
  0x76   : > { %517 = sbr.rel (%p514_p7) target bundleno = 471 (0x1d7), region = 47  ;;  %v746_v3 = vunpack.c.l.s4 (!%p514_p7), %v1324_v2  ;;  %v744_v5 = vcombine.high (!%p514_p7), %v548_v0, %v548_v0  ;;  %p543_p8 = scmp.lt.s32.totalorder (!%p514_p7), %s1069_s3, 3 }
  0x77   : > { %s1273_s27 = smul.u32 (!%p514_p7), 1536, %s520_s24  ;;  %v749_v4 = vshrl.u32 (!%p514_p7), %v748_v1, 7 }
  0x78   : > { %v747_v6 = vunpack.c.0.s8 (!%p514_p7), %v746_v3 }
  0x79   : > { %s1768_s28 = scalar_lea.vmem (!%p514_p7), [#allocation2], %s1273_s27 }
  0x7a   : > { %v615_v7 = vld [vmem:[%s1768_s28 + $0x208] sm:$0xff] (!%p514_p7)  ;;  %v617_v8 = vld [vmem:[%s1768_s28 + $0x218] sm:$0xff] (!%p514_p7)  ;;  %v614_v9 = vld [vmem:[%s1768_s28 + $0x200] sm:$0xff] (!%p514_p7)  ;;  %v750_v14 = vsub.s32 (!%p514_p7), %v747_v6, %v749_v4 }
  0x7b   : > { %v1140_v10 = vpack.c.bf16 (!%p514_p7), %v617_v8, %v615_v7  ;;  %v616_v11 = vld [vmem:[%s1768_s28 + $0x210] sm:$0xff] (!%p514_p7)  ;;  %v619_v12 = vld [vmem:[%s1768_s28 + $0x228] sm:$0xff] (!%p514_p7)  ;;  %v621_v13 = vld [vmem:[%s1768_s28 + $0x238] sm:$0xff] (!%p514_p7) }
  0x7c   : > { %v1142_v15 = vpack.c.bf16 (!%p514_p7), %v616_v11, %v614_v9  ;;  %v1144_v16 = vpack.c.bf16 (!%p514_p7), %v621_v13, %v619_v12  ;;  %v618_v17 = vld [vmem:[%s1768_s28 + $0x220] sm:$0xff] (!%p514_p7)  ;;  %v620_v18 = vld [vmem:[%s1768_s28 + $0x230] sm:$0xff] (!%p514_p7)  ;;  %v623_v19 = vld [vmem:[%s1768_s28 + $0x248] sm:$0xff] (!%p514_p7)  ;;  %v1780_v21 = vrot.slane (!%p514_p7), %v744_v5, %v750_v14  ;;  %v1782_v22 = vrot.slane (!%p514_p7), %v548_v0, %v750_v14 }
  0x7d   : > { %1141 = vmatprep.subr.bf16.mxu0 %v1140_v10  ;;  %v625_v20 = vld [vmem:[%s1768_s28 + $0x258] sm:$0xff]  ;;  %v1146_v23 = vpack.c.bf16 %v620_v18, %v618_v17  ;;  %v622_v25 = vld [vmem:[%s1768_s28 + $0x240] sm:$0xff]  ;;  %v624_v26 = vld [vmem:[%s1768_s28 + $0x250] sm:$0xff]  ;;  %s2002_s3 = smov (!%p543_p8, %s1069_s3), 3 }
  0x7e   : > { %1143 = vmatpush1.bf16.msra.mxu0 %v1142_v15  ;;  %v1148_v24 = vpack.c.bf16 %v625_v20, %v623_v19  ;;  %v760_v27 = vcombine.high %v1780_v21, %v1780_v21  ;;  %v759_v28 = vcombine.high %v1782_v22, %v1782_v22  ;;  %v627_v29 = vld [vmem:[%s1768_s28 + $0x268] sm:$0xff]  ;;  %v629_v30 = vld [vmem:[%s1768_s28 + $0x278] sm:$0xff]  ;;  %v1150_v31 = vpack.c.bf16 %v624_v26, %v622_v25  ;;  %v626_v33 = vld [vmem:[%s1768_s28 + $0x260] sm:$0xff]  ;;  %s1070_s4 = sshll.u32 %s2002_s3, 1 }
  0x7f   : > { %1145 = vmatprep.subr.bf16.mxu0 %v1144_v16  ;;  %v1152_v32 = vpack.c.bf16 %v629_v30, %v627_v29  ;;  %v628_v34 = vld [vmem:[%s1768_s28 + $0x270] sm:$0xff]  ;;  %v631_v35 = vld [vmem:[%s1768_s28 + $0x288] sm:$0xff]  ;;  %v633_v36 = vld [vmem:[%s1768_s28 + $0x298] sm:$0xff]  ;;  %s546_s7 = scalar_lea.vmem %s1997_s2, %s1070_s4 }
  0x80   : > { %910 = vmatprep.mubr.f32.mxu0 %v760_v27  ;;  %839 = vmatprep.mubr.f32.mxu1 %v759_v28  ;;  %v1154_v37 = vpack.c.bf16 %v628_v34, %v626_v33  ;;  %v1156_v38 = vpack.c.bf16 %v633_v36, %v631_v35  ;;  %v630_v39 = vld [vmem:[%s1768_s28 + $0x280] sm:$0xff]  ;;  %v632_v40 = vld [vmem:[%s1768_s28 + $0x290] sm:$0xff]  ;;  %v635_v41 = vld [vmem:[%s1768_s28 + $0x2a8] sm:$0xff] }
  0x81   : > { %v637_v42 = vld [vmem:[%s1768_s28 + $0x2b8] sm:$0xff]  ;;  %v1158_v43 = vpack.c.bf16 %v632_v40, %v630_v39  ;;  %v634_v45 = vld [vmem:[%s1768_s28 + $0x2a0] sm:$0xff]  ;;  %v636_v46 = vld [vmem:[%s1768_s28 + $0x2b0] sm:$0xff] }
  0x82   : > { %1147 = vmatpush1.bf16.msra.mxu0 %v1146_v23  ;;  %v1160_v44 = vpack.c.bf16 %v637_v42, %v635_v41  ;;  %v639_v47 = vld [vmem:[%s1768_s28 + $0x2c8] sm:$0xff]  ;;  %v641_v48 = vld [vmem:[%s1768_s28 + $0x2d8] sm:$0xff]  ;;  %v1162_v49 = vpack.c.bf16 %v636_v46, %v634_v45  ;;  %v638_v50 = vld [vmem:[%s1768_s28 + $0x2c0] sm:$0xff] }
  0x83   : > { %1149 = vmatprep.subr.bf16.mxu0 %v1148_v24  ;;  %v640_v51 = vld [vmem:[%s1768_s28 + $0x2d0] sm:$0xff]  ;;  %v1164_v52 = vpack.c.bf16 %v641_v48, %v639_v47  ;;  %v643_v53 = vld [vmem:[%s1768_s28 + $0x2e8] sm:$0xff]  ;;  %v553_v55 = vld [vmem:[%s1768_s28 + $0x18] sm:$0xff] }
  0x84   : > { %v551_v54 = vld [vmem:[%s1768_s28 + $0x8] sm:$0xff]  ;;  %v645_v56 = vld [vmem:[%s1768_s28 + $0x2f8] sm:$0xff]  ;;  %v550_v58 = vld [vmem:[%s1768_s28] sm:$0xff]  ;;  %v1166_v61 = vpack.c.bf16 %v640_v51, %v638_v50 }
  0x85   : > { %v1076_v57 = vpack.c.bf16 %v553_v55, %v551_v54  ;;  %v552_v59 = vld [vmem:[%s1768_s28 + $0x10] sm:$0xff]  ;;  %v555_v62 = vld [vmem:[%s1768_s28 + $0x28] sm:$0xff]  ;;  %v557_v63 = vld [vmem:[%s1768_s28 + $0x38] sm:$0xff]  ;;  %v1168_v1 = vpack.c.bf16 %v645_v56, %v643_v53 }
  0x86   : > { %1151 = vmatpush1.bf16.msra.mxu0 %v1150_v31  ;;  %v1078_v60 = vpack.c.bf16 %v552_v59, %v550_v58  ;;  %v554_v0 = vld [vmem:[%s1768_s28 + $0x20] sm:$0xff]  ;;  %v644_v3 = vld [vmem:[%s1768_s28 + $0x2f0] sm:$0xff]  ;;  %v1080_v4 = vpack.c.bf16 %v557_v63, %v555_v62  ;;  %v647_v6 = vld [vmem:[%s1768_s28 + $0x308] sm:$0xff] }
  0x87   : > { %1153 = vmatprep.subr.bf16.mxu0 %v1152_v32  ;;  %1077 = vmatprep.subr.bf16.mxu1 %v1076_v57  ;;  %v642_v2 = vld [vmem:[%s1768_s28 + $0x2e0] sm:$0xff]  ;;  %v556_v5 = vld [vmem:[%s1768_s28 + $0x30] sm:$0xff]  ;;  %v649_v7 = vld [vmem:[%s1768_s28 + $0x318] sm:$0xff] }
  0x88   : > { %1079 = vmatpush1.bf16.msra.mxu1 %v1078_v60  ;;  %v1082_v8 = vpack.c.bf16 %v556_v5, %v554_v0  ;;  %v559_v9 = vld [vmem:[%s1768_s28 + $0x48] sm:$0xff]  ;;  %v561_v10 = vld [vmem:[%s1768_s28 + $0x58] sm:$0xff]  ;;  %v558_v11 = vld [vmem:[%s1768_s28 + $0x40] sm:$0xff]  ;;  %v1170_v13 = vpack.c.bf16 %v644_v3, %v642_v2  ;;  %v1172_v17 = vpack.c.bf16 %v649_v7, %v647_v6 }
  0x89   : > { %1081 = vmatprep.subr.bf16.mxu1 %v1080_v4  ;;  %v560_v12 = vld [vmem:[%s1768_s28 + $0x50] sm:$0xff]  ;;  %v646_v14 = vld [vmem:[%s1768_s28 + $0x300] sm:$0xff]  ;;  %v1084_v16 = vpack.c.bf16 %v561_v10, %v559_v9  ;;  %v651_v18 = vld [vmem:[%s1768_s28 + $0x328] sm:$0xff] }
  0x8a   : > { %1155 = vmatpush1.bf16.msra.mxu0 %v1154_v37  ;;  %v648_v15 = vld [vmem:[%s1768_s28 + $0x310] sm:$0xff]  ;;  %v1086_v19 = vpack.c.bf16 %v560_v12, %v558_v11  ;;  %v563_v20 = vld [vmem:[%s1768_s28 + $0x68] sm:$0xff]  ;;  %v565_v23 = vld [vmem:[%s1768_s28 + $0x78] sm:$0xff] }
  0x8b   : > { %1157 = vmatprep.subr.bf16.mxu0 %v1156_v38  ;;  %v653_v24 = vld [vmem:[%s1768_s28 + $0x338] sm:$0xff]  ;;  %v1088_v25 = vpack.c.bf16 %v565_v23, %v563_v20  ;;  %v562_v26 = vld [vmem:[%s1768_s28 + $0x60] sm:$0xff]  ;;  %v564_v27 = vld [vmem:[%s1768_s28 + $0x70] sm:$0xff]  ;;  %v1174_v28 = vpack.c.bf16 %v648_v15, %v646_v14 }
  0x8c   : > { %1083 = vmatpush1.bf16.msra.mxu1 %v1082_v8  ;;  %v567_v29 = vld [vmem:[%s1768_s28 + $0x88] sm:$0xff]  ;;  %v569_v30 = vld [vmem:[%s1768_s28 + $0x98] sm:$0xff]  ;;  %v1176_v31 = vpack.c.bf16 %v653_v24, %v651_v18  ;;  %v650_v32 = vld [vmem:[%s1768_s28 + $0x320] sm:$0xff]  ;;  %v1090_v35 = vpack.c.bf16 %v564_v27, %v562_v26 }
  0x8d   : > { %1085 = vmatprep.subr.bf16.mxu1 %v1084_v16  ;;  %v652_v33 = vld [vmem:[%s1768_s28 + $0x330] sm:$0xff]  ;;  %v655_v34 = vld [vmem:[%s1768_s28 + $0x348] sm:$0xff]  ;;  %v657_v36 = vld [vmem:[%s1768_s28 + $0x358] sm:$0xff]  ;;  %v1092_v37 = vpack.c.bf16 %v569_v30, %v567_v29 }
  0x8e   : > { %1159 = vmatpush1.bf16.msra.mxu0 %v1158_v43  ;;  %v566_v38 = vld [vmem:[%s1768_s28 + $0x80] sm:$0xff]  ;;  %v568_v39 = vld [vmem:[%s1768_s28 + $0x90] sm:$0xff]  ;;  %v571_v40 = vld [vmem:[%s1768_s28 + $0xa8] sm:$0xff]  ;;  %v1178_v42 = vpack.c.bf16 %v652_v33, %v650_v32  ;;  %v1180_v43 = vpack.c.bf16 %v657_v36, %v655_v34 }
  0x8f   : > { %1161 = vmatprep.subr.bf16.mxu0 %v1160_v44  ;;  %v573_v41 = vld [vmem:[%s1768_s28 + $0xb8] sm:$0xff]  ;;  %v654_v44 = vld [vmem:[%s1768_s28 + $0x340] sm:$0xff]  ;;  %v656_v45 = vld [vmem:[%s1768_s28 + $0x350] sm:$0xff]  ;;  %v1094_v47 = vpack.c.bf16 %v568_v39, %v566_v38 }
  0x90   : > { %1087 = vmatpush1.bf16.msra.mxu1 %v1086_v19  ;;  %v659_v46 = vld [vmem:[%s1768_s28 + $0x368] sm:$0xff]  ;;  %v661_v48 = vld [vmem:[%s1768_s28 + $0x378] sm:$0xff]  ;;  %v570_v50 = vld [vmem:[%s1768_s28 + $0xa0] sm:$0xff]  ;;  %v1182_v54 = vpack.c.bf16 %v656_v45, %v654_v44 }
  0x91   : > { %1089 = vmatprep.subr.bf16.mxu1 %v1088_v25  ;;  %v572_v51 = vld [vmem:[%s1768_s28 + $0xb0] sm:$0xff]  ;;  %v577_v53 = vld [vmem:[%s1768_s28 + $0xd8] sm:$0xff]  ;;  %v1184_v55 = vpack.c.bf16 %v661_v48, %v659_v46  ;;  %v658_v56 = vld [vmem:[%s1768_s28 + $0x360] sm:$0xff] }
  0x92   : > { %1163 = vmatpush1.bf16.msra.mxu0 %v1162_v49  ;;  %v1096_v49 = vpack.c.bf16 %v573_v41, %v571_v40  ;;  %v660_v57 = vld [vmem:[%s1768_s28 + $0x370] sm:$0xff]  ;;  %v663_v58 = vld [vmem:[%s1768_s28 + $0x388] sm:$0xff]  ;;  %v1098_v59 = vpack.c.bf16 %v572_v51, %v570_v50  ;;  %v665_v60 = vld [vmem:[%s1768_s28 + $0x398] sm:$0xff] }
  0x93   : > { %1165 = vmatprep.subr.bf16.mxu0 %v1164_v52  ;;  %v575_v52 = vld [vmem:[%s1768_s28 + $0xc8] sm:$0xff]  ;;  %v574_v62 = vld [vmem:[%s1768_s28 + $0xc0] sm:$0xff]  ;;  %v576_v63 = vld [vmem:[%s1768_s28 + $0xd0] sm:$0xff]  ;;  %v1186_v2 = vpack.c.bf16 %v660_v57, %v658_v56  ;;  %v1188_v3 = vpack.c.bf16 %v665_v60, %v663_v58 }
  0x94   : > { %1091 = vmatpush1.bf16.msra.mxu1 %v1090_v35  ;;  %v579_v0 = vld [vmem:[%s1768_s28 + $0xe8] sm:$0xff]  ;;  %v662_v4 = vld [vmem:[%s1768_s28 + $0x380] sm:$0xff]  ;;  %v664_v5 = vld [vmem:[%s1768_s28 + $0x390] sm:$0xff]  ;;  %v1102_v7 = vpack.c.bf16 %v576_v63, %v574_v62 }
  0x95   : > { %1093 = vmatprep.subr.bf16.mxu1 %v1092_v37  ;;  %v667_v6 = vld [vmem:[%s1768_s28 + $0x3a8] sm:$0xff]  ;;  %v669_v8 = vld [vmem:[%s1768_s28 + $0x3b8] sm:$0xff]  ;;  %v578_v10 = vld [vmem:[%s1768_s28 + $0xe0] sm:$0xff]  ;;  %v1190_v14 = vpack.c.bf16 %v664_v5, %v662_v4 }
  0x96   : > { %1167 = vmatpush1.bf16.msra.mxu0 %v1166_v61  ;;  %v1100_v61 = vpack.c.bf16 %v577_v53, %v575_v52  ;;  %v580_v11 = vld [vmem:[%s1768_s28 + $0xf0] sm:$0xff]  ;;  %v583_v12 = vld [vmem:[%s1768_s28 + $0x108] sm:$0xff]  ;;  %v1192_v15 = vpack.c.bf16 %v669_v8, %v667_v6  ;;  %v666_v16 = vld [vmem:[%s1768_s28 + $0x3a0] sm:$0xff] }
  0x97   : > { %1169 = vmatprep.subr.bf16.mxu0 %v1168_v1  ;;  %v581_v1 = vld [vmem:[%s1768_s28 + $0xf8] sm:$0xff]  ;;  %v671_v18 = vld [vmem:[%s1768_s28 + $0x3c8] sm:$0xff]  ;;  %v1106_v19 = vpack.c.bf16 %v580_v11, %v578_v10  ;;  %v582_v24 = vld [vmem:[%s1768_s28 + $0x100] sm:$0xff] }
  0x98   : > { %1095 = vmatpush1.bf16.msra.mxu1 %v1094_v47  ;;  %v1104_v9 = vpack.c.bf16 %v581_v1, %v579_v0  ;;  %v673_v20 = vld [vmem:[%s1768_s28 + $0x3d8] sm:$0xff]  ;;  %v584_v25 = vld [vmem:[%s1768_s28 + $0x110] sm:$0xff]  ;;  %v587_v26 = vld [vmem:[%s1768_s28 + $0x128] sm:$0xff] }
  0x99   : > { %1097 = vmatprep.subr.bf16.mxu1 %v1096_v49  ;;  %v589_v27 = vld [vmem:[%s1768_s28 + $0x138] sm:$0xff]  ;;  %v1196_v29 = vpack.c.bf16 %v673_v20, %v671_v18  ;;  %v670_v30 = vld [vmem:[%s1768_s28 + $0x3c0] sm:$0xff]  ;;  %v675_v32 = vld [vmem:[%s1768_s28 + $0x3e8] sm:$0xff]  ;;  %v1110_v33 = vpack.c.bf16 %v584_v25, %v582_v24 }
  0x9a   : > { %1171 = vmatpush1.bf16.msra.mxu0 %v1170_v13  ;;  %v585_v13 = vld [vmem:[%s1768_s28 + $0x118] sm:$0xff]  ;;  %v1112_v35 = vpack.c.bf16 %v589_v27, %v587_v26  ;;  %v586_v36 = vld [vmem:[%s1768_s28 + $0x120] sm:$0xff]  ;;  %v588_v37 = vld [vmem:[%s1768_s28 + $0x130] sm:$0xff] }
  0x9b   : > { %1173 = vmatprep.subr.bf16.mxu0 %v1172_v17  ;;  %v668_v17 = vld [vmem:[%s1768_s28 + $0x3b0] sm:$0xff]  ;;  %v1108_v23 = vpack.c.bf16 %v585_v13, %v583_v12  ;;  %v677_v34 = vld [vmem:[%s1768_s28 + $0x3f8] sm:$0xff]  ;;  %v591_v38 = vld [vmem:[%s1768_s28 + $0x148] sm:$0xff]  ;;  %v1114_v45 = vpack.c.bf16 %v588_v37, %v586_v36 }
  0x9c   : > { %1099 = vmatpush1.bf16.msra.mxu1 %v1098_v59  ;;  %v593_v39 = vld [vmem:[%s1768_s28 + $0x158] sm:$0xff]  ;;  %v1200_v41 = vpack.c.bf16 %v677_v34, %v675_v32  ;;  %v679_v44 = vld [vmem:[%s1768_s28 + $0x408] sm:$0xff]  ;;  %v590_v48 = vld [vmem:[%s1768_s28 + $0x140] sm:$0xff] }
  0x9d   : > { %1101 = vmatprep.subr.bf16.mxu1 %v1100_v61  ;;  %v681_v46 = vld [vmem:[%s1768_s28 + $0x418] sm:$0xff]  ;;  %v1116_v47 = vpack.c.bf16 %v593_v39, %v591_v38  ;;  %v592_v49 = vld [vmem:[%s1768_s28 + $0x150] sm:$0xff]  ;;  %v595_v50 = vld [vmem:[%s1768_s28 + $0x168] sm:$0xff] }
  0x9e   : > { %1175 = vmatpush1.bf16.msra.mxu0 %v1174_v28  ;;  %v1194_v28 = vpack.c.bf16 %v668_v17, %v666_v16  ;;  %v597_v51 = vld [vmem:[%s1768_s28 + $0x178] sm:$0xff]  ;;  %v1893_v53 = vld.sshfl [vmem:[%s1995_s0 + $0x8] sm:$0x33 pattern:$0x76325410]  ;;  %v680_v56 = vld [vmem:[%s1768_s28 + $0x410] sm:$0xff]  ;;  %v1118_v58 = vpack.c.bf16 %v592_v49, %v590_v48 }
  0x9f   : > { %1177 = vmatprep.subr.bf16.mxu0 %v1176_v31  ;;  %v672_v31 = vld [vmem:[%s1768_s28 + $0x3d0] sm:$0xff]  ;;  %v683_v57 = vld [vmem:[%s1768_s28 + $0x428] sm:$0xff]  ;;  %v685_v59 = vld [vmem:[%s1768_s28 + $0x438] sm:$0xff]  ;;  %v1120_v60 = vpack.c.bf16 %v597_v51, %v595_v50 }
  0xa0   : > { %1103 = vmatpush1.bf16.msra.mxu1 %v1102_v7  ;;  %v1198_v40 = vpack.c.bf16 %v672_v31, %v670_v30  ;;  %v594_v61 = vld [vmem:[%s1768_s28 + $0x160] sm:$0xff]  ;;  %v596_v62 = vld [vmem:[%s1768_s28 + $0x170] sm:$0xff]  ;;  %v599_v63 = vld [vmem:[%s1768_s28 + $0x188] sm:$0xff] }
  0xa1   : > { %1105 = vmatprep.subr.bf16.mxu1 %v1104_v9  ;;  %v601_v0 = vld [vmem:[%s1768_s28 + $0x198] sm:$0xff]  ;;  %v682_v4 = vld [vmem:[%s1768_s28 + $0x420] sm:$0xff]  ;;  %v684_v5 = vld [vmem:[%s1768_s28 + $0x430] sm:$0xff]  ;;  %v1122_v7 = vpack.c.bf16 %v596_v62, %v594_v61 }
  0xa2   : > { %1179 = vmatpush1.bf16.msra.mxu0 %v1178_v42  ;;  %v674_v42 = vld [vmem:[%s1768_s28 + $0x3e0] sm:$0xff]  ;;  %v687_v6 = vld [vmem:[%s1768_s28 + $0x448] sm:$0xff]  ;;  %v689_v8 = vld [vmem:[%s1768_s28 + $0x458] sm:$0xff]  ;;  %v1124_v9 = vpack.c.bf16 %v601_v0, %v599_v63 }
  0xa3   : > { %1181 = vmatprep.subr.bf16.mxu0 %v1180_v43  ;;  %v676_v43 = vld [vmem:[%s1768_s28 + $0x3f0] sm:$0xff]  ;;  %v598_v10 = vld [vmem:[%s1768_s28 + $0x180] sm:$0xff]  ;;  %v603_v12 = vld [vmem:[%s1768_s28 + $0x1a8] sm:$0xff] }
  0xa4   : > { %1107 = vmatpush1.bf16.msra.mxu1 %v1106_v19  ;;  %v1202_v52 = vpack.c.bf16 %v676_v43, %v674_v42  ;;  %v600_v11 = vld [vmem:[%s1768_s28 + $0x190] sm:$0xff]  ;;  %v605_v13 = vld [vmem:[%s1768_s28 + $0x1b8] sm:$0xff]  ;;  %v686_v16 = vld [vmem:[%s1768_s28 + $0x440] sm:$0xff] }
  0xa5   : > { %1109 = vmatprep.subr.bf16.mxu1 %v1108_v23  ;;  %v688_v17 = vld [vmem:[%s1768_s28 + $0x450] sm:$0xff]  ;;  %v691_v18 = vld [vmem:[%s1768_s28 + $0x468] sm:$0xff]  ;;  %v1126_v19 = vpack.c.bf16 %v600_v11, %v598_v10  ;;  %v1128_v20 = vpack.c.bf16 %v605_v13, %v603_v12  ;;  %v602_v23 = vld [vmem:[%s1768_s28 + $0x1a0] sm:$0xff] }
  0xa6   : > { %1183 = vmatpush1.bf16.msra.mxu0 %v1182_v54  ;;  %v1204_v54 = vpack.c.bf16 %v681_v46, %v679_v44  ;;  %v604_v24 = vld [vmem:[%s1768_s28 + $0x1b0] sm:$0xff]  ;;  %v607_v25 = vld [vmem:[%s1768_s28 + $0x1c8] sm:$0xff]  ;;  %v609_v26 = vld [vmem:[%s1768_s28 + $0x1d8] sm:$0xff]  ;;  %v1214_v27 = vpack.c.bf16 %v688_v17, %v686_v16 }
  0xa7   : > { %1185 = vmatprep.subr.bf16.mxu0 %v1184_v55  ;;  %v678_v55 = vld [vmem:[%s1768_s28 + $0x400] sm:$0xff]  ;;  %v692_v30 = vld [vmem:[%s1768_s28 + $0x470] sm:$0xff]  ;;  %v695_v31 = vld [vmem:[%s1768_s28 + $0x488] sm:$0xff]  ;;  %v1130_v32 = vpack.c.bf16 %v604_v24, %v602_v23  ;;  %v1132_v34 = vpack.c.bf16 %v609_v26, %v607_v25 }
  0xa8   : > { %1111 = vmatpush1.bf16.msra.mxu1 %v1110_v33  ;;  %v1206_v1 = vpack.c.bf16 %v680_v56, %v678_v55  ;;  %v697_v33 = vld [vmem:[%s1768_s28 + $0x498] sm:$0xff]  ;;  %v608_v36 = vld [vmem:[%s1768_s28 + $0x1d0] sm:$0xff]  ;;  %v611_v37 = vld [vmem:[%s1768_s28 + $0x1e8] sm:$0xff] }
  0xa9   : > { %1113 = vmatprep.subr.bf16.mxu1 %v1112_v35  ;;  %v606_v35 = vld [vmem:[%s1768_s28 + $0x1c0] sm:$0xff]  ;;  %v613_v38 = vld [vmem:[%s1768_s28 + $0x1f8] sm:$0xff]  ;;  %v696_v42 = vld [vmem:[%s1768_s28 + $0x490] sm:$0xff] }
  0xaa   : > { %1187 = vmatpush1.bf16.msra.mxu0 %v1186_v2  ;;  %v768_v2 = vcombine.high %v1893_v53, %v1893_v53  ;;  %v699_v43 = vld [vmem:[%s1768_s28 + $0x4a8] sm:$0xff]  ;;  %v1134_v44 = vpack.c.bf16 %v608_v36, %v606_v35  ;;  %v1136_v46 = vpack.c.bf16 %v613_v38, %v611_v37  ;;  %v612_v48 = vld [vmem:[%s1768_s28 + $0x1f0] sm:$0xff]  ;;  %v698_v51 = vld [vmem:[%s1768_s28 + $0x4a0] sm:$0xff] }
  0xab   : > { %1189 = vmatprep.subr.bf16.mxu0 %v1188_v3  ;;  %v1208_v3 = vpack.c.bf16 %v685_v59, %v683_v57  ;;  %v703_v55 = vld [vmem:[%s1768_s28 + $0x4c8] sm:$0xff]  ;;  %v705_v56 = vld [vmem:[%s1768_s28 + $0x4d8] sm:$0xff]  ;;  %v702_v59 = vld [vmem:[%s1768_s28 + $0x4c0] sm:$0xff] }
  0xac   : > { %1115 = vmatpush1.bf16.msra.mxu1 %v1114_v45  ;;  %v701_v45 = vld [vmem:[%s1768_s28 + $0x4b8] sm:$0xff]  ;;  %v707_v61 = vld [vmem:[%s1768_s28 + $0x4e8] sm:$0xff]  ;;  %v714_v12 = vld [vmem:[%s1768_s28 + $0x520] sm:$0xff] }
  0xad   : > { %1117 = vmatprep.subr.bf16.mxu1 %v1116_v47  ;;  %v610_v47 = vld [vmem:[%s1768_s28 + $0x1e0] sm:$0xff]  ;;  %v1224_v50 = vpack.c.bf16 %v701_v45, %v699_v43  ;;  %v709_v62 = vld [vmem:[%s1768_s28 + $0x4f8] sm:$0xff]  ;;  %v716_v13 = vld [vmem:[%s1768_s28 + $0x530] sm:$0xff] }
  0xae   : > { %1191 = vmatpush1.bf16.msra.mxu0 %v1190_v14  ;;  %v1210_v14 = vpack.c.bf16 %v684_v5, %v682_v4  ;;  %v1232_v0 = vpack.c.bf16 %v709_v62, %v707_v61  ;;  %v713_v4 = vld [vmem:[%s1768_s28 + $0x518] sm:$0xff]  ;;  %v1242_v16 = vpack.c.bf16 %v716_v13, %v714_v12  ;;  %v722_v25 = vld [vmem:[%s1768_s28 + $0x560] sm:$0xff]  ;;  %v724_v26 = vld [vmem:[%s1768_s28 + $0x570] sm:$0xff] }
  0xaf   : > { %1193 = vmatprep.subr.bf16.mxu0 %v1192_v15  ;;  %v1212_v15 = vpack.c.bf16 %v689_v8, %v687_v6  ;;  %v712_v8 = vld [vmem:[%s1768_s28 + $0x510] sm:$0xff]  ;;  %v730_v37 = vld [vmem:[%s1768_s28 + $0x5a0] sm:$0xff]  ;;  %v739_v45 = vld [vmem:[%s1768_s28 + $0x5e8] sm:$0xff] }
  0xb0   : > { %1119 = vmatpush1.bf16.msra.mxu1 %v1118_v58  ;;  %v1228_v58 = vpack.c.bf16 %v705_v56, %v703_v55  ;;  %v732_v38 = vld [vmem:[%s1768_s28 + $0x5b0] sm:$0xff]  ;;  %v734_v43 = vld [vmem:[%s1768_s28 + $0x5c0] sm:$0xff] }
  0xb1   : > { %1121 = vmatprep.subr.bf16.mxu1 %v1120_v60  ;;  %v704_v60 = vld [vmem:[%s1768_s28 + $0x4d0] sm:$0xff] }
  0xb2   : > { %1195 = vmatpush1.bf16.msra.mxu0 %v1194_v28  ;;  %v1230_v63 = vpack.c.bf16 %v704_v60, %v702_v59 }
  0xb3   : > { %1197 = vmatprep.subr.bf16.mxu0 %v1196_v29  ;;  %v690_v29 = vld [vmem:[%s1768_s28 + $0x460] sm:$0xff] }
  0xb4   : > { %1123 = vmatpush1.bf16.msra.mxu1 %v1122_v7  ;;  %v1218_v39 = vpack.c.bf16 %v692_v30, %v690_v29  ;;  %v710_v7 = vld [vmem:[%s1768_s28 + $0x500] sm:$0xff]  ;;  %v1250_v29 = vpack.c.bf16 %v724_v26, %v722_v25 }
  0xb5   : > { %1125 = vmatprep.subr.bf16.mxu1 %v1124_v9  ;;  %v715_v9 = vld [vmem:[%s1768_s28 + $0x528] sm:$0xff]  ;;  %v1238_v10 = vpack.c.bf16 %v712_v8, %v710_v7 }
  0xb6   : > { %1199 = vmatpush1.bf16.msra.mxu0 %v1198_v40  ;;  %v1220_v40 = vpack.c.bf16 %v697_v33, %v695_v31  ;;  %v726_v31 = vld [vmem:[%s1768_s28 + $0x580] sm:$0xff]  ;;  %v731_v33 = vld [vmem:[%s1768_s28 + $0x5a8] sm:$0xff] }
  0xb7   : > { %1201 = vmatprep.subr.bf16.mxu0 %v1200_v41  ;;  %v694_v41 = vld [vmem:[%s1768_s28 + $0x480] sm:$0xff] }
  0xb8   : > { %1127 = vmatpush1.bf16.msra.mxu1 %v1126_v19  ;;  %v1222_v49 = vpack.c.bf16 %v696_v42, %v694_v41  ;;  %v720_v19 = vld [vmem:[%s1768_s28 + $0x550] sm:$0xff]  ;;  %v1258_v41 = vpack.c.bf16 %v732_v38, %v730_v37 }
  0xb9   : > { %1129 = vmatprep.subr.bf16.mxu1 %v1128_v20  ;;  %v725_v20 = vld [vmem:[%s1768_s28 + $0x578] sm:$0xff] }
  0xba   : > { %1203 = vmatpush1.bf16.msra.mxu0 %v1202_v52  ;;  %v700_v52 = vld [vmem:[%s1768_s28 + $0x4b0] sm:$0xff] }
  0xbb   : > { %1205 = vmatprep.subr.bf16.mxu0 %v1204_v54  ;;  %v1138_v54 = vpack.c.bf16 %v612_v48, %v610_v47  ;;  %v1226_v57 = vpack.c.bf16 %v700_v52, %v698_v51 }
  0xbc   : > { %1131 = vmatpush1.bf16.msra.mxu1 %v1130_v32  ;;  %v728_v32 = vld [vmem:[%s1768_s28 + $0x590] sm:$0xff] }
  0xbd   : > { %911 = vmatmul.mubr.f32.vlgmr.msra.gmra.mrb[0].mxu0 %v1780_v21  ;;  %v693_v21 = vld [vmem:[%s1768_s28 + $0x478] sm:$0xff]  ;;  %1133 = vmatprep.subr.bf16.mxu1 %v1132_v34  ;;  %v1254_v35 = vpack.c.bf16 %v728_v32, %v726_v31 }
  0xbe   : > { %1207 = vmatpush1.bf16.msra.mxu0 %v1206_v1  ;;  %981 = vmatprep.mubr.f32.mxu0 %v768_v2  ;;  %v1216_v28 = vpack.c.bf16 %v693_v21, %v691_v18  ;;  %v706_v1 = vld [vmem:[%s1768_s28 + $0x4e0] sm:$0xff]  ;;  %v708_v2 = vld [vmem:[%s1768_s28 + $0x4f0] sm:$0xff]  ;;  %v723_v21 = vld [vmem:[%s1768_s28 + $0x568] sm:$0xff] }
  0xbf   : > { %1209 = vmatprep.subr.bf16.mxu0 %v1208_v3  ;;  %v711_v3 = vld [vmem:[%s1768_s28 + $0x508] sm:$0xff]  ;;  %v1234_v5 = vpack.c.bf16 %v708_v2, %v706_v1  ;;  %v718_v18 = vld [vmem:[%s1768_s28 + $0x540] sm:$0xff]  ;;  %v1248_v24 = vpack.c.bf16 %v725_v20, %v723_v21  ;;  %v733_v34 = vld [vmem:[%s1768_s28 + $0x5b8] sm:$0xff] }
  0xc0   : > { %1135 = vmatpush1.bf16.msra.mxu1 %v1134_v44  ;;  %v1236_v6 = vpack.c.bf16 %v713_v4, %v711_v3  ;;  %v1246_v23 = vpack.c.bf16 %v720_v19, %v718_v18  ;;  %v1256_v36 = vpack.c.bf16 %v733_v34, %v731_v33  ;;  %v736_v44 = vld [vmem:[%s1768_s28 + $0x5d0] sm:$0xff] }
  0xc1   : > { %1137 = vmatprep.subr.bf16.mxu1 %v1136_v46  ;;  %v741_v46 = vld [vmem:[%s1768_s28 + $0x5f8] sm:$0xff]  ;;  %v1262_v47 = vpack.c.bf16 %v736_v44, %v734_v43 }
  0xc2   : > { %1211 = vmatpush1.bf16.msra.mxu0 %v1210_v14  ;;  %v719_v14 = vld [vmem:[%s1768_s28 + $0x548] sm:$0xff]  ;;  %v1264_v48 = vpack.c.bf16 %v741_v46, %v739_v45 }
  0xc3   : > { %1213 = vmatprep.subr.bf16.mxu0 %v1212_v15  ;;  %v721_v15 = vld [vmem:[%s1768_s28 + $0x558] sm:$0xff] }
  0xc4   : > { %1139 = vmatpush1.bf16.msra.mxu1 %v1138_v54  ;;  %v1244_v17 = vpack.c.bf16 %v721_v15, %v719_v14 }
  0xc6   : > { %1215 = vmatpush1.bf16.msra.mxu0 %v1214_v27  ;;  %v727_v27 = vld [vmem:[%s1768_s28 + $0x588] sm:$0xff] }
  0xc7   : > { %1217 = vmatprep.subr.bf16.mxu0 %v1216_v28  ;;  %840 = vmatmul.mubr.f32.vlgmr.msra.gmra.mrb[0].mxu1 %v1782_v22  ;;  %v717_v22 = vld [vmem:[%s1768_s28 + $0x538] sm:$0xff] }
  0xc8   : > { %v1240_v11 = vpack.c.bf16 %v717_v22, %v715_v9  ;;  %v729_v28 = vld [vmem:[%s1768_s28 + $0x598] sm:$0xff] }
  0xc9   : > { %v1252_v30 = vpack.c.bf16 %v729_v28, %v727_v27 }
  0xca   : > { %1219 = vmatpush1.bf16.msra.mxu0 %v1218_v39  ;;  %v735_v39 = vld [vmem:[%s1768_s28 + $0x5c8] sm:$0xff] }
  0xcb   : > { %1221 = vmatprep.subr.bf16.mxu0 %v1220_v40  ;;  %v737_v40 = vld [vmem:[%s1768_s28 + $0x5d8] sm:$0xff] }
  0xcc   : > { %v1260_v42 = vpack.c.bf16 %v737_v40, %v735_v39 }
  0xce   : > { %1223 = vmatpush1.bf16.msra.mxu0 %v1222_v49  ;;  %v738_v49 = vld [vmem:[%s1768_s28 + $0x5e0] sm:$0xff] }
  0xcf   : > { %1225 = vmatprep.subr.bf16.mxu0 %v1224_v50  ;;  %v740_v50 = vld [vmem:[%s1768_s28 + $0x5f0] sm:$0xff] }
  0xd0   : > { %v1266_v51 = vpack.c.bf16 %v740_v50, %v738_v49 }
  0xd2   : > { %1227 = vmatpush1.bf16.msra.mxu0 %v1226_v57 }
  0xd3   : > { %1229 = vmatprep.subr.bf16.mxu0 %v1228_v58 }
  0xd6   : > { %1231 = vmatpush1.bf16.msra.mxu0 %v1230_v63 }
  0xd7   : > { %1233 = vmatprep.subr.bf16.mxu0 %v1232_v0 }
  0xda   : > { %1235 = vmatpush1.bf16.msra.mxu0 %v1234_v5 }
  0xdb   : > { %1237 = vmatprep.subr.bf16.mxu0 %v1236_v6 }
  0xde   : > { %1239 = vmatpush1.bf16.msra.mxu0 %v1238_v10 }
  0xdf   : > { %1241 = vmatprep.subr.bf16.mxu0 %v1240_v11 }
  0xe2   : > { %1243 = vmatpush1.bf16.msra.mxu0 %v1242_v16 }
  0xe3   : > { %1245 = vmatprep.subr.bf16.mxu0 %v1244_v17 }
  0xe6   : > { %1247 = vmatpush1.bf16.msra.mxu0 %v1246_v23 }
  0xe7   : > { %1249 = vmatprep.subr.bf16.mxu0 %v1248_v24 }
  0xea   : > { %1251 = vmatpush1.bf16.msra.mxu0 %v1250_v29 }
  0xeb   : > { %1253 = vmatprep.subr.bf16.mxu0 %v1252_v30 }
  0xee   : > { %1255 = vmatpush1.bf16.msra.mxu0 %v1254_v35 }
  0xef   : > { %1257 = vmatprep.subr.bf16.mxu0 %v1256_v36 }
  0xf2   : > { %1259 = vmatpush1.bf16.msra.mxu0 %v1258_v41 }
  0xf3   : > { %1261 = vmatprep.subr.bf16.mxu0 %v1260_v42 }
  0xf6   : > { %1263 = vmatpush1.bf16.msra.mxu0 %v1262_v47 }
  0xf7   : > { %1265 = vmatprep.subr.bf16.mxu0 %v1264_v48 }
  0xfa   : > { %1267 = vmatpush1.bf16.msra.mxu0 %v1266_v51 }
  0xfd   : > { %982 = vmatmul.mubr.f32.vlgmr.msra.gmra.mrb[0].mxu0 %v1893_v53 }
 0x19a   : > { %v841_v52 = vpop.f32.mrb[0].mxu1 }
 0x19b   : > { %v843_v54 = vpop.f32.mrb[1].mxu1 }
 0x1d0   : > { %v983_v55 = vpop.f32.mrb[0].mxu0 }
 0x1d1   : > { %v1268_v56 = vadd.f32 %v983_v55, %v841_v52  ;;  %v985_v57 = vpop.f32.mrb[1].mxu0 }
 0x1d2   : > { %v1269_v58 = vadd.f32 %v985_v57, %v843_v54 }
 0x1d4   : > { %v990_v59 = vcombine.low %v1268_v56, %v1269_v58 }
 0x1d6   : > { %1072 = vst.sshfl [vmem:[%s546_s7] sm:$0x33 pattern:$0x76325410] %v990_v59 }
 0x1d7 PF: > { %p9_p9 = scmp.ge.s32.totalorder %s1357_s13, 4   ;;  %s1998_s9 = smov %s1318_s10 }
 0x1d8   : > { %s1999_s10 = smov %s1366_s16  ;;  %s2000_s11 = smov %s1357_s13 }
 0x1d9   :  { %11 = sbr.rel (!%p9_p9) target bundleno = 2 (0x2), region = 86 }

// kernel: reverse.7
= control target key start
LH: loop header
LB: loop body
LE: loop exit
PB: predicated region body
PF: predicated region fallthrough
CT: control target
= control target key end

     0   :  { %v103_v3 = vlaneseq  ;;  %v96_v18 = vld [vmem:[#allocation0 + $0x7] ss:$-1 sm:$0xff]  ;;  %v110_v19 = vld [vmem:[#allocation0 + $0x17] ss:$-1 sm:$0xff]  ;;  %s604_s0 = inlined_call_operand.vmem [shape: f32[2,8,16,7], index: 0, kind: input, shape index: {}]   ;;  %s605_s1 = inlined_call_operand.vmem [shape: f32[2,8,16,7], index: 1, kind: output, shape index: {}]  }
   0x1   :  { %v60_v0 = vld [vmem:[%s604_s0] sm:$0xff]  ;;  %v62_v1 = vld [vmem:[%s604_s0 + $0x8] sm:$0xff]  ;;  %v64_v2 = vld [vmem:[%s604_s0 + $0x10] sm:$0xff]  ;;  %v97_v20 = vrot.slane %v96_v18, 1  ;;  %v111_v21 = vrot.slane %v110_v19, 1 }
   0x2   :  { %61 = vst [vmem:[#allocation0 + $0x8] sm:$0xff] %v60_v0  ;;  %63 = vst [vmem:[#allocation0 + $0x18] sm:$0xff] %v62_v1  ;;  %v66_v4 = vld [vmem:[%s604_s0 + $0x18] sm:$0xff]  ;;  %v68_v5 = vld [vmem:[%s604_s0 + $0x20] sm:$0xff]  ;;  %v500_v10 = vshrl.u32 %v103_v3, 7 }
   0x3   :  { %65 = vst [vmem:[#allocation0 + $0x28] sm:$0xff] %v64_v2  ;;  %v70_v6 = vld [vmem:[%s604_s0 + $0x28] sm:$0xff]  ;;  %67 = vst [vmem:[#allocation0 + $0x38] sm:$0xff] %v66_v4  ;;  %v72_v7 = vld [vmem:[%s604_s0 + $0x30] sm:$0xff] }
   0x4   :  { %69 = vst [vmem:[#allocation0 + $0x48] sm:$0xff] %v68_v5  ;;  %71 = vst [vmem:[#allocation0 + $0x58] sm:$0xff] %v70_v6  ;;  %v74_v8 = vld [vmem:[%s604_s0 + $0x38] sm:$0xff]  ;;  %v76_v9 = vld [vmem:[%s604_s0 + $0x40] sm:$0xff]  ;;  %vm105_vm0 = vcmp.lt.s32.totalorder %v500_v10, 7 }
   0x5   :  { %73 = vst [vmem:[#allocation0 + $0x68] sm:$0xff] %v72_v7  ;;  %75 = vst [vmem:[#allocation0 + $0x78] sm:$0xff] %v74_v8  ;;  %v78_v11 = vld [vmem:[%s604_s0 + $0x48] sm:$0xff]  ;;  %v80_v12 = vld [vmem:[%s604_s0 + $0x50] sm:$0xff] }
   0x6   :  { %77 = vst [vmem:[#allocation0 + $0x88] sm:$0xff] %v76_v9  ;;  %v82_v13 = vld [vmem:[%s604_s0 + $0x58] sm:$0xff]  ;;  %79 = vst [vmem:[#allocation0 + $0x98] sm:$0xff] %v78_v11  ;;  %v84_v14 = vld [vmem:[%s604_s0 + $0x60] sm:$0xff] }
   0x7   :  { %81 = vst [vmem:[#allocation0 + $0xa8] sm:$0xff] %v80_v12  ;;  %83 = vst [vmem:[#allocation0 + $0xb8] sm:$0xff] %v82_v13  ;;  %v86_v15 = vld [vmem:[%s604_s0 + $0x68] sm:$0xff]  ;;  %v88_v16 = vld [vmem:[%s604_s0 + $0x70] sm:$0xff] }
   0x8   :  { %85 = vst [vmem:[#allocation0 + $0xc8] sm:$0xff] %v84_v14  ;;  %87 = vst [vmem:[#allocation0 + $0xd8] sm:$0xff] %v86_v15  ;;  %v90_v17 = vld [vmem:[%s604_s0 + $0x78] sm:$0xff]  ;;  %v124_v22 = vld [vmem:[#allocation0 + $0x27] ss:$-1 sm:$0xff] }
   0x9   :  { %89 = vst [vmem:[#allocation0 + $0xe8] sm:$0xff] %v88_v16  ;;  %91 = vst [vmem:[#allocation0 + $0xf8] sm:$0xff] %v90_v17  ;;  %v138_v23 = vld [vmem:[#allocation0 + $0x37] ss:$-1 sm:$0xff]  ;;  %v125_v24 = vrot.slane %v124_v22, 1 }
   0xa   :  { %v139_v25 = vrot.slane %v138_v23, 1  ;;  %v152_v26 = vld [vmem:[#allocation0 + $0x47] ss:$-1 sm:$0xff]  ;;  %v166_v27 = vld [vmem:[#allocation0 + $0x57] ss:$-1 sm:$0xff]  ;;  %98 = vst [vmem:[#allocation1] sm:$0xff] %v97_v20 }
   0xb   :  { %v101_v28 = vld [vmem:[#allocation0 + $0xf] ss:$-1 sm:$0xff]  ;;  %112 = vst [vmem:[#allocation1 + $0x8] sm:$0xff] %v111_v21  ;;  %v115_v29 = vld [vmem:[#allocation0 + $0x1f] ss:$-1 sm:$0xff]  ;;  %126 = vst [vmem:[#allocation1 + $0x10] sm:$0xff] %v125_v24 }
   0xc   :  { %v129_v30 = vld [vmem:[#allocation0 + $0x2f] ss:$-1 sm:$0xff]  ;;  %v102_v31 = vrot.slane %v101_v28, 1  ;;  %v116_v32 = vrot.slane %v115_v29, 1  ;;  %140 = vst [vmem:[#allocation1 + $0x18] sm:$0xff] %v139_v25  ;;  %v153_v35 = vrot.slane %v152_v26, 1 }
   0xd   :  { %v130_v33 = vrot.slane %v129_v30, 1  ;;  %v143_v34 = vld [vmem:[#allocation0 + $0x3f] ss:$-1 sm:$0xff]  ;;  %v157_v37 = vld [vmem:[#allocation0 + $0x4f] ss:$-1 sm:$0xff]  ;;  %v167_v38 = vrot.slane %v166_v27, 1 }
   0xe   :  { %v144_v36 = vrot.slane %v143_v34, 1  ;;  %v171_v39 = vld [vmem:[#allocation0 + $0x5f] ss:$-1 sm:$0xff]  ;;  %106 = vst.msk [vmem:[#allocation1] sm:$0xff] %vm105_vm0, %v102_v31  ;;  %120 = vst.msk [vmem:[#allocation1 + $0x8] sm:$0xff] %vm105_vm0, %v116_v32  ;;  %v158_v40 = vrot.slane %v157_v37, 1 }
   0xf   :  { %134 = vst.msk [vmem:[#allocation1 + $0x10] sm:$0xff] %vm105_vm0, %v130_v33  ;;  %154 = vst [vmem:[#allocation1 + $0x20] sm:$0xff] %v153_v35  ;;  %v172_v41 = vrot.slane %v171_v39, 1  ;;  %v180_v42 = vld [vmem:[#allocation0 + $0x67] ss:$-1 sm:$0xff] }
  0x10   :  { %v185_v43 = vld [vmem:[#allocation0 + $0x6f] ss:$-1 sm:$0xff]  ;;  %148 = vst.msk [vmem:[#allocation1 + $0x18] sm:$0xff] %vm105_vm0, %v144_v36  ;;  %168 = vst [vmem:[#allocation1 + $0x28] sm:$0xff] %v167_v38  ;;  %v181_v44 = vrot.slane %v180_v42, 1 }
  0x11   :  { %v186_v45 = vrot.slane %v185_v43, 1  ;;  %v194_v46 = vld [vmem:[#allocation0 + $0x77] ss:$-1 sm:$0xff]  ;;  %v199_v47 = vld [vmem:[#allocation0 + $0x7f] ss:$-1 sm:$0xff]  ;;  %162 = vst.msk [vmem:[#allocation1 + $0x20] sm:$0xff] %vm105_vm0, %v158_v40 }
  0x12   :  { %176 = vst.msk [vmem:[#allocation1 + $0x28] sm:$0xff] %vm105_vm0, %v172_v41  ;;  %v195_v48 = vrot.slane %v194_v46, 1  ;;  %v200_v49 = vrot.slane %v199_v47, 1  ;;  %v208_v50 = vld [vmem:[#allocation0 + $0x87] ss:$-1 sm:$0xff]  ;;  %182 = vst [vmem:[#allocation1 + $0x30] sm:$0xff] %v181_v44 }
  0x13   :  { %v213_v51 = vld [vmem:[#allocation0 + $0x8f] ss:$-1 sm:$0xff]  ;;  %v209_v52 = vrot.slane %v208_v50, 1  ;;  %v222_v54 = vld [vmem:[#allocation0 + $0x97] ss:$-1 sm:$0xff]  ;;  %190 = vst.msk [vmem:[#allocation1 + $0x30] sm:$0xff] %vm105_vm0, %v186_v45 }
  0x14   :  { %v214_v53 = vrot.slane %v213_v51, 1  ;;  %v227_v55 = vld [vmem:[#allocation0 + $0x9f] ss:$-1 sm:$0xff]  ;;  %196 = vst [vmem:[#allocation1 + $0x38] sm:$0xff] %v195_v48  ;;  %v223_v56 = vrot.slane %v222_v54, 1 }
  0x15   :  { %v228_v57 = vrot.slane %v227_v55, 1  ;;  %v236_v58 = vld [vmem:[#allocation0 + $0xa7] ss:$-1 sm:$0xff]  ;;  %v241_v59 = vld [vmem:[#allocation0 + $0xaf] ss:$-1 sm:$0xff]  ;;  %204 = vst.msk [vmem:[#allocation1 + $0x38] sm:$0xff] %vm105_vm0, %v200_v49 }
  0x16   :  { %210 = vst [vmem:[#allocation1 + $0x40] sm:$0xff] %v209_v52  ;;  %v237_v60 = vrot.slane %v236_v58, 1  ;;  %v242_v61 = vrot.slane %v241_v59, 1  ;;  %v250_v62 = vld [vmem:[#allocation0 + $0xb7] ss:$-1 sm:$0xff]  ;;  %224 = vst [vmem:[#allocation1 + $0x48] sm:$0xff] %v223_v56 }
  0x17   :  { %v255_v63 = vld [vmem:[#allocation0 + $0xbf] ss:$-1 sm:$0xff]  ;;  %218 = vst.msk [vmem:[#allocation1 + $0x40] sm:$0xff] %vm105_vm0, %v214_v53  ;;  %v251_v0 = vrot.slane %v250_v62, 1  ;;  %v264_v2 = vld [vmem:[#allocation0 + $0xc7] ss:$-1 sm:$0xff] }
  0x18   :  { %v256_v1 = vrot.slane %v255_v63, 1  ;;  %v269_v3 = vld [vmem:[#allocation0 + $0xcf] ss:$-1 sm:$0xff]  ;;  %232 = vst.msk [vmem:[#allocation1 + $0x48] sm:$0xff] %vm105_vm0, %v228_v57  ;;  %238 = vst [vmem:[#allocation1 + $0x50] sm:$0xff] %v237_v60  ;;  %v265_v4 = vrot.slane %v264_v2, 1 }
  0x19   :  { %v270_v5 = vrot.slane %v269_v3, 1  ;;  %v278_v6 = vld [vmem:[#allocation0 + $0xd7] ss:$-1 sm:$0xff]  ;;  %v283_v7 = vld [vmem:[#allocation0 + $0xdf] ss:$-1 sm:$0xff]  ;;  %246 = vst.msk [vmem:[#allocation1 + $0x50] sm:$0xff] %vm105_vm0, %v242_v61 }
  0x1a   :  { %252 = vst [vmem:[#allocation1 + $0x58] sm:$0xff] %v251_v0  ;;  %v279_v8 = vrot.slane %v278_v6, 1  ;;  %v284_v9 = vrot.slane %v283_v7, 1  ;;  %v292_v11 = vld [vmem:[#allocation0 + $0xe7] ss:$-1 sm:$0xff]  ;;  %266 = vst [vmem:[#allocation1 + $0x60] sm:$0xff] %v265_v4 }
  0x1b   :  { %v297_v12 = vld [vmem:[#allocation0 + $0xef] ss:$-1 sm:$0xff]  ;;  %260 = vst.msk [vmem:[#allocation1 + $0x58] sm:$0xff] %vm105_vm0, %v256_v1  ;;  %v293_v13 = vrot.slane %v292_v11, 1  ;;  %v306_v15 = vld [vmem:[#allocation0 + $0xf7] ss:$-1 sm:$0xff] }
  0x1c   :  { %v298_v14 = vrot.slane %v297_v12, 1  ;;  %v311_v16 = vld [vmem:[#allocation0 + $0xff] ss:$-1 sm:$0xff]  ;;  %274 = vst.msk [vmem:[#allocation1 + $0x60] sm:$0xff] %vm105_vm0, %v270_v5  ;;  %280 = vst [vmem:[#allocation1 + $0x68] sm:$0xff] %v279_v8  ;;  %v307_v17 = vrot.slane %v306_v15, 1 }
  0x1d   :  { %v312_v18 = vrot.slane %v311_v16, 1  ;;  %v374_v19 = vld [vmem:[#allocation1] sm:$0xff]  ;;  %v376_v20 = vld [vmem:[#allocation1 + $0x8] sm:$0xff]  ;;  %v378_v21 = vld [vmem:[#allocation1 + $0x10] sm:$0xff]  ;;  %288 = vst.msk [vmem:[#allocation1 + $0x68] sm:$0xff] %vm105_vm0, %v284_v9 }
  0x1e   :  { %294 = vst [vmem:[#allocation1 + $0x70] sm:$0xff] %v293_v13  ;;  %375 = vst [vmem:[%s605_s1] sm:$0xff] %v374_v19  ;;  %v380_v22 = vld [vmem:[#allocation1 + $0x18] sm:$0xff]  ;;  %v382_v23 = vld [vmem:[#allocation1 + $0x20] sm:$0xff] }
  0x1f   :  { %377 = vst [vmem:[%s605_s1 + $0x8] sm:$0xff] %v376_v20  ;;  %379 = vst [vmem:[%s605_s1 + $0x10] sm:$0xff] %v378_v21  ;;  %v384_v24 = vld [vmem:[#allocation1 + $0x28] sm:$0xff]  ;;  %v386_v25 = vld [vmem:[#allocation1 + $0x30] sm:$0xff] }
  0x20   :  { %302 = vst.msk [vmem:[#allocation1 + $0x70] sm:$0xff] %vm105_vm0, %v298_v14  ;;  %308 = vst [vmem:[#allocation1 + $0x78] sm:$0xff] %v307_v17  ;;  %v388_v26 = vld [vmem:[#allocation1 + $0x38] sm:$0xff]  ;;  %v390_v10 = vld [vmem:[#allocation1 + $0x40] sm:$0xff] }
  0x21   :  { %381 = vst [vmem:[%s605_s1 + $0x18] sm:$0xff] %v380_v22  ;;  %383 = vst [vmem:[%s605_s1 + $0x20] sm:$0xff] %v382_v23  ;;  %v392_v27 = vld [vmem:[#allocation1 + $0x48] sm:$0xff]  ;;  %v394_v28 = vld [vmem:[#allocation1 + $0x50] sm:$0xff] }
  0x22   :  { %385 = vst [vmem:[%s605_s1 + $0x28] sm:$0xff] %v384_v24  ;;  %316 = vst.msk [vmem:[#allocation1 + $0x78] sm:$0xff] %vm105_vm0, %v312_v18  ;;  %v396_v29 = vld [vmem:[#allocation1 + $0x58] sm:$0xff] }
  0x23   :  { %387 = vst [vmem:[%s605_s1 + $0x30] sm:$0xff] %v386_v25  ;;  %389 = vst [vmem:[%s605_s1 + $0x38] sm:$0xff] %v388_v26  ;;  %v398_v30 = vld [vmem:[#allocation1 + $0x60] sm:$0xff] }
  0x24   :  { %391 = vst [vmem:[%s605_s1 + $0x40] sm:$0xff] %v390_v10  ;;  %393 = vst [vmem:[%s605_s1 + $0x48] sm:$0xff] %v392_v27  ;;  %v400_v31 = vld [vmem:[#allocation1 + $0x68] sm:$0xff] }
  0x25   :  { %395 = vst [vmem:[%s605_s1 + $0x50] sm:$0xff] %v394_v28  ;;  %397 = vst [vmem:[%s605_s1 + $0x58] sm:$0xff] %v396_v29 }
  0x26   :  { %399 = vst [vmem:[%s605_s1 + $0x60] sm:$0xff] %v398_v30  ;;  %401 = vst [vmem:[%s605_s1 + $0x68] sm:$0xff] %v400_v31 }
  0x27   :  { %v402_v32 = vld [vmem:[#allocation1 + $0x70] sm:$0xff] }
  0x28   :  { %403 = vst [vmem:[%s605_s1 + $0x70] sm:$0xff] %v402_v32 }
  0x29   :  { %v404_v33 = vld [vmem:[#allocation1 + $0x78] sm:$0xff] }
  0x2a   :  { %405 = vst [vmem:[%s605_s1 + $0x78] sm:$0xff] %v404_v33 }

// kernel: trans_net_forward.7
= control target key start
LH: loop header
LB: loop body
LE: loop exit
PB: predicated region body
PF: predicated region fallthrough
CT: control target
= control target key end

     0   :  { %s696_s15 = smov 0   ;;  %s698_s16 = smov 0   ;;  %s803_s0 = inlined_call_operand.vmem [shape: f32[2,12,256], index: 0, kind: input, shape index: {}]   ;;  %s804_s1 = inlined_call_operand.vmem [shape: f32[8,12], index: 1, kind: input, shape index: {}]   ;;  %s805_s2 = inlined_call_operand.vmem [shape: f32[8,1], index: 2, kind: input, shape index: {}]   ;;  %s806_s3 = inlined_call_operand.vmem [shape: f32[2,8,256], index: 3, kind: input, shape index: {}]   ;;  %s807_s4 = inlined_call_operand.vmem [shape: f32[2,8,256], index: 4, kind: output, shape index: {}]  }
   0x1   :  { %s700_s17 = smov 0   ;;  %s702_s18 = smov 0  }
   0x2   :  { %s704_s19 = smov 0   ;;  %s706_s20 = smov 0  }
   0x3   :  { %s708_s21 = smov 0  }
   0x4 LB: > { %s23_s22 = sadd.s32 1, %s656_s19  ;;  %s26_s23 = sadd.s32 1, %s660_s20  ;;  %s664_s21 = sphi %s708_s21, %s14_s21   ;;  %s660_s20 = sphi %s706_s20, %s813_s20   ;;  %s656_s19 = sphi %s704_s19, %s812_s19   ;;  %s652_s18 = sphi %s702_s18, %s811_s18   ;;  %s648_s17 = sphi %s700_s17, %s810_s17   ;;  %s644_s16 = sphi %s698_s16, %s809_s16   ;;  %s640_s15 = sphi %s696_s15, %s808_s15  }
   0x5   : > { %p24_p0 = scmp.ge.s32.totalorder %s23_s22, 2  ;;  %p42_p1 = scmp.ne.s32.totalorder %s644_s16, %s640_s15 }
   0x6   : > { %p43_p2 = scmp.eq.s32.totalorder %s664_s21, 0  ;;  %s35_s27 = sadd.s32 1, %s644_s16 }
   0x7   : > { %s815_s22 = smov (%p24_p0, %s23_s22), 0  ;;  %s817_s23 = smov (!%p24_p0, %s26_s23), %s660_s20 }
   0x8   : > { %p44_p3 = por %p43_p2, %p42_p1  ;;  %p28_p4 = scmp.ge.s32.totalorder %s817_s23, 2 }
   0x9   : > { %s31_s24 = ssub.s32 %s656_s19, %s815_s22  ;;  %p514_p6 = scmp.ge.s32.totalorder %s664_s21, 4 }
   0xa   : > { %s819_s23 = smov (%p28_p4, %s817_s23), 0 }
   0xb   : > { %s30_s25 = ssub.s32 %s660_s20, %s819_s23  ;;  %172 = sbr.rel (%p514_p6) target bundleno = 25 (0x19), region = 24 }
   0xc   : > { %s32_s26 = sor.u32 %s31_s24, %s30_s25 }
   0xd   : > { %p33_p5 = scmp.eq.s32.totalorder %s32_s26, 0 }
   0xf   : > { %s747_s28 = scalar_select %p33_p5, %s644_s16, %s35_s27  }
  0x12   : > { %175 = sbr.rel (!%p44_p3) target bundleno = 25 (0x19), region = 28  ;;  %s177_s29 = sand.u32 (%p44_p3), 1, %s644_s16  }
  0x13   : > { %s516_s30 = sshll.u32 (%p44_p3), %s660_s20, 2  ;;  %s515_s5 = sshll.u32 (%p44_p3), %s177_s29, 4 }
  0x14   : > { %s181_s6 = sadd.s32 (%p44_p3), %s656_s19, %s516_s30  ;;  %s179_s11 = scalar_lea.vmem (%p44_p3), [#allocation2], %s515_s5 }
  0x15   : > { %s517_s7 = sshll.u32 (%p44_p3), %s181_s6, 3 }
  0x16   : > { %s183_s10 = scalar_lea.vmem (%p44_p3), %s803_s0, %s517_s7 }
  0x17   : > { %v213_v0 = vld [vmem:[%s183_s10] sm:$0xff] (%p44_p3)  ;;  %v215_v1 = vld [vmem:[%s183_s10 + $0x10] sm:$0xff] (%p44_p3) }
  0x18   : > { %214 = vst [vmem:[%s179_s11] sm:$0xff] (%p44_p3), %v213_v0  ;;  %216 = vst [vmem:[%s179_s11 + $0x8] sm:$0xff] (%p44_p3), %v215_v1 }
  0x19 PF: > { %p518_p7 = scmp.ge.s32.totalorder %s664_s21, 1  ;;  %p232_p8 = scmp.lt.s32.totalorder %s664_s21, 5 }
  0x1b   : > { %p233_p9 = pnand %p518_p7, %p232_p8 }
  0x1c   : > { %s239_s12 = sand.u32 (!%p233_p9), 1, %s640_s15   ;;  %vm304_vm0 = vcmask (!%p233_p9), 1043456   ;;  %v666_v2 = vmov (!%p233_p9), 0.0|0.0   ;;  %v294_v3 = vld [vmem:[%s805_s2] sm:$0xff] (!%p233_p9)  ;;  %vm667_vm1 = vmmov (!%p233_p9), 0   ;;  %v668_v4 = vmov (!%p233_p9), 0.0  }
  0x1d   : > { %236 = sbr.rel (%p233_p9) target bundleno = 297 (0x129), region = 70  ;;  %540 = vmatprep.subr.bf16.mxu0 (!%p233_p9), %v666_v2  ;;  %s519_s13 = sshll.u32 (!%p233_p9), %s239_s12, 4  ;;  %537 = vmatprep.mubr.msk.f32.mxu0 (!%p233_p9), %vm667_vm1, %v668_v4  ;;  %v669_v5 = vmov (!%p233_p9), 0   ;;  %vm670_vm2 = vmmov (!%p233_p9), 1   ;;  %v293_v9 = vld [vmem:[%s804_s1] sm:$0xff] (!%p233_p9)  ;;  %vm300_vm4 = vcmask (!%p233_p9), 97280  }
  0x1e   : > { %605 = vset.pattern.permute.xlu0 (!%p233_p9), %v669_v5  ;;  %s241_s25 = scalar_lea.vmem (!%p233_p9), [#allocation2], %s519_s13  ;;  %vm542_vm3 = vmpackc.low (!%p233_p9), %vm304_vm0, %vm670_vm2  ;;  %p275_p10 = scmp.lt.s32.totalorder (!%p233_p9), %s652_s18, 1 }
  0x1f   : > { %v291_v6 = vld [vmem:[%s241_s25] sm:$0xff] (!%p233_p9)  ;;  %v292_v7 = vld [vmem:[%s241_s25 + $0x8] sm:$0xf] (!%p233_p9)  ;;  %297 = vperm.xlu0 (!%p233_p9), %605, %v294_v3   ;;  %p277_p11 = scmp.lt.s32.totalorder (!%p233_p9), %s648_s17, 1 }
  0x20   : > { %v541_v8 = vpack.c.bf16 (!%p233_p9), %v292_v7, %v291_v6 }
  0x22   : > { %543 = vmatpush3.bf16.msk.msra.mxu0 (!%p233_p9), %vm542_vm3, %v541_v8 }
  0x24   : > { %s821_s18 = smov (!%p275_p10, %s652_s18), 1  ;;  %s823_s17 = smov (!%p277_p11, %s648_s17), 1 }
  0x25   : > { %538 = vmatmul.mubr.msk.f32.vlgmr.msra.gmra.mrb[0].mxu0 %vm300_vm4, %v293_v9  ;;  %s520_s27 = sshll.u32 %s821_s18, 1 }
  0x26   : > { %s769_s29 = sadd.s32 %s520_s27, %s823_s17 }
  0x27   : > { %s521_s30 = sshll.u32 %s769_s29, 3 }
  0x28   : > { %s282_s7 = scalar_lea.vmem %s806_s3, %s521_s30  ;;  %s290_s8 = scalar_lea.vmem %s807_s4, %s521_s30 }
  0x29   : > { %v378_v12 = vld [vmem:[%s282_s7] sm:$0xff] }
  0x9e   : > { %v298_v10 = vpop.permute.xlu0 %297 }
  0xf8   : > { %v374_v11 = vpop.f32.mrb[0].mxu0 }
  0xf9   : > { %v375_v13 = vadd.f32 %v374_v11, %v298_v10  ;;  %v539_v14 = vpop.f32.mrb[1].mxu0 }
  0xfb   : > { %v379_v15 = vadd.f32 %v378_v12, %v375_v13 }
  0xfd   : > { %v380_v16 = vand.u32 2147483647, %v379_v15  ;;  %v394_v20 = vmul.f32 %v379_v15, %v379_v15  ;;  %v399_v34 = vmul.f32 0.5, %v379_v15 }
  0xff   : > { %v381_v17 = vmul.f32 0.70710677, %v380_v16  ;;  %v395_v23 = vmul.f32 -0.5, %v394_v20  ;;  %v398_v33 = vmul.f32 0.5, %v380_v16 }
 0x101   : > { %v382_v18 = vmul.f32 0.3275911, %v381_v17  ;;  %v396_v26 = vmul.f32 1.442695, %v395_v23  ;;  %v400_v37 = vadd.f32 %v399_v34, %v398_v33 }
 0x103   : > { %v383_v19 = vadd.f32 1.0, %v382_v18 }
 0x105   : > { %606 = vrcp.f32 %v383_v19 }
 0x106   : > { %608 = vpow2.f32 %v396_v26 }
 0x10f   : > { %v607_v21 = vpop.eup %606 }
 0x110   : > { %v385_v22 = vmul.f32 1.0614054, %v607_v21  ;;  %v609_v36 = vpop.eup %608 }
 0x112   : > { %v526_v24 = vadd.f32 -1.4531521, %v385_v22 }
 0x114   : > { %v387_v25 = vmul.f32 %v607_v21, %v526_v24 }
 0x116   : > { %v388_v27 = vadd.f32 1.4214138, %v387_v25 }
 0x118   : > { %v389_v28 = vmul.f32 %v607_v21, %v388_v27 }
 0x11a   : > { %v527_v29 = vadd.f32 -0.28449672, %v389_v28 }
 0x11c   : > { %v391_v30 = vmul.f32 %v607_v21, %v527_v29 }
 0x11e   : > { %v392_v31 = vadd.f32 0.2548296, %v391_v30 }
 0x120   : > { %v393_v32 = vmul.f32 %v607_v21, %v392_v31 }
 0x122   : > { %v401_v35 = vmul.f32 %v398_v33, %v393_v32 }
 0x124   : > { %v402_v38 = vmul.f32 %v609_v36, %v401_v35 }
 0x126   : > { %v403_v39 = vsub.f32 %v400_v37, %v402_v38 }
 0x128   : > { %404 = vst [vmem:[%s290_s8] sm:$0xff] %v403_v39 }
 0x129 PF: > { %s14_s21 = sadd.s32 1, %s664_s21   ;;  %s808_s15 = smov %s644_s16 }
 0x12a   : > { %p11_p12 = scmp.ge.s32.totalorder %s14_s21, 6   ;;  %s809_s16 = smov %s747_s28 }
 0x12b   : > { %s810_s17 = smov %s656_s19  ;;  %s811_s18 = smov %s660_s20 }
 0x12c   : > { %s812_s19 = smov %s815_s22  ;;  %s813_s20 = smov %s819_s23 }
 0x12d   :  { %13 = sbr.rel (!%p11_p12) target bundleno = 4 (0x4), region = 112 }

// kernel: trans_net_forward.8
= control target key start
LH: loop header
LB: loop body
LE: loop exit
PB: predicated region body
PF: predicated region fallthrough
CT: control target
= control target key end

     0   :  { %s998_s9 = smov 0   ;;  %s1000_s10 = smov 0   ;;  %s1453_s0 = inlined_call_operand.vmem [shape: f32[2,512], index: 0, kind: input, shape index: {}]   ;;  %s1454_s1 = inlined_call_operand.vmem [shape: f32[512,512], index: 1, kind: input, shape index: {}]   ;;  %s1455_s2 = inlined_call_operand.vmem [shape: f32[2,512], index: 2, kind: output, shape index: {}]  }
   0x1   :  { %s1002_s11 = smov 0  }
   0x2 LB: > { %s787_s12 = sadd.s32 4294967295, %s980_s11   ;;  %s1015_s13 = sadd.s32 1, %s980_s11   ;;  %s980_s11 = sphi %s1002_s11, %s1458_s11   ;;  %s976_s10 = sphi %s1000_s10, %s1457_s10   ;;  %s972_s9 = sphi %s998_s9, %s1456_s9  }
   0x3   : > { %s37_s14 = ssub.s32 %s980_s11, %s1015_s13  ;;  %s40_s15 = sadd.s32 1, %s976_s10 }
   0x4   : > { %p38_p0 = scmp.eq.s32.totalorder %s37_s14, 0  ;;  %p47_p1 = scmp.ne.s32.totalorder %s976_s10, %s972_s9 }
   0x5   : > { %p48_p2 = scmp.eq.s32.totalorder %s980_s11, 0  ;;  %p790_p4 = scmp.ge.s32.totalorder %s980_s11, 2 }
   0x6   : > { %s1024_s16 = scalar_select %p38_p0, %s976_s10, %s40_s15  }
   0x7   : > { %p49_p3 = por %p48_p2, %p47_p1  ;;  %102 = sbr.rel (%p790_p4) target bundleno = 82 (0x52), region = 20 }
   0xe   : > { %105 = sbr.rel (!%p49_p3) target bundleno = 82 (0x52), region = 24  ;;  %s107_s17 = sand.u32 (%p49_p3), 1, %s976_s10  }
   0xf   : > { %s801_s18 = sshll.u32 (%p49_p3), %s980_s11, 4  ;;  %s791_s19 = sshll.u32 (%p49_p3), %s107_s17, 10 }
  0x10   : > { %s1032_s22 = scalar_lea.vmem (%p49_p3), %s1454_s1, %s801_s18  ;;  %s1037_s23 = scalar_lea.vmem (%p49_p3), [#allocation2], %s791_s19 }
  0x11   : > { %v125_v0 = vld [vmem:[%s1032_s22] sm:$0xff] (%p49_p3)  ;;  %v127_v1 = vld [vmem:[%s1032_s22 + $0x8] sm:$0xff] (%p49_p3) }
  0x12   : > { %v129_v2 = vld [vmem:[%s1032_s22 + $0x20] sm:$0xff] (%p49_p3)  ;;  %126 = vst [vmem:[%s1037_s23] sm:$0xff] (%p49_p3), %v125_v0  ;;  %128 = vst [vmem:[%s1037_s23 + $0x8] sm:$0xff] (%p49_p3), %v127_v1  ;;  %v131_v3 = vld [vmem:[%s1032_s22 + $0x28] sm:$0xff] (%p49_p3) }
  0x13   : > { %130 = vst [vmem:[%s1037_s23 + $0x10] sm:$0xff] (%p49_p3), %v129_v2  ;;  %v133_v4 = vld [vmem:[%s1032_s22 + $0x40] sm:$0xff] (%p49_p3)  ;;  %v135_v5 = vld [vmem:[%s1032_s22 + $0x48] sm:$0xff] (%p49_p3)  ;;  %132 = vst [vmem:[%s1037_s23 + $0x18] sm:$0xff] (%p49_p3), %v131_v3 }
  0x14   : > { %134 = vst [vmem:[%s1037_s23 + $0x20] sm:$0xff] (%p49_p3), %v133_v4  ;;  %136 = vst [vmem:[%s1037_s23 + $0x28] sm:$0xff] (%p49_p3), %v135_v5  ;;  %v137_v6 = vld [vmem:[%s1032_s22 + $0x60] sm:$0xff] (%p49_p3)  ;;  %v139_v7 = vld [vmem:[%s1032_s22 + $0x68] sm:$0xff] (%p49_p3) }
  0x15   : > { %v141_v8 = vld [vmem:[%s1032_s22 + $0x80] sm:$0xff]  ;;  %138 = vst [vmem:[%s1037_s23 + $0x30] sm:$0xff] %v137_v6  ;;  %140 = vst [vmem:[%s1037_s23 + $0x38] sm:$0xff] %v139_v7  ;;  %v143_v9 = vld [vmem:[%s1032_s22 + $0x88] sm:$0xff] }
  0x16   : > { %142 = vst [vmem:[%s1037_s23 + $0x40] sm:$0xff] %v141_v8  ;;  %v145_v10 = vld [vmem:[%s1032_s22 + $0xa0] sm:$0xff]  ;;  %v147_v11 = vld [vmem:[%s1032_s22 + $0xa8] sm:$0xff]  ;;  %144 = vst [vmem:[%s1037_s23 + $0x48] sm:$0xff] %v143_v9 }
  0x17   : > { %146 = vst [vmem:[%s1037_s23 + $0x50] sm:$0xff] %v145_v10  ;;  %148 = vst [vmem:[%s1037_s23 + $0x58] sm:$0xff] %v147_v11  ;;  %v149_v12 = vld [vmem:[%s1032_s22 + $0xc0] sm:$0xff]  ;;  %v151_v13 = vld [vmem:[%s1032_s22 + $0xc8] sm:$0xff] }
  0x18   : > { %v153_v14 = vld [vmem:[%s1032_s22 + $0xe0] sm:$0xff]  ;;  %150 = vst [vmem:[%s1037_s23 + $0x60] sm:$0xff] %v149_v12  ;;  %152 = vst [vmem:[%s1037_s23 + $0x68] sm:$0xff] %v151_v13  ;;  %v155_v15 = vld [vmem:[%s1032_s22 + $0xe8] sm:$0xff] }
  0x19   : > { %154 = vst [vmem:[%s1037_s23 + $0x70] sm:$0xff] %v153_v14  ;;  %v157_v16 = vld [vmem:[%s1032_s22 + $0x100] sm:$0xff]  ;;  %v159_v17 = vld [vmem:[%s1032_s22 + $0x108] sm:$0xff]  ;;  %156 = vst [vmem:[%s1037_s23 + $0x78] sm:$0xff] %v155_v15 }
  0x1a   : > { %158 = vst [vmem:[%s1037_s23 + $0x80] sm:$0xff] %v157_v16  ;;  %160 = vst [vmem:[%s1037_s23 + $0x88] sm:$0xff] %v159_v17  ;;  %v161_v18 = vld [vmem:[%s1032_s22 + $0x120] sm:$0xff]  ;;  %v163_v19 = vld [vmem:[%s1032_s22 + $0x128] sm:$0xff] }
  0x1b   : > { %v165_v20 = vld [vmem:[%s1032_s22 + $0x140] sm:$0xff]  ;;  %162 = vst [vmem:[%s1037_s23 + $0x90] sm:$0xff] %v161_v18  ;;  %164 = vst [vmem:[%s1037_s23 + $0x98] sm:$0xff] %v163_v19  ;;  %v167_v21 = vld [vmem:[%s1032_s22 + $0x148] sm:$0xff] }
  0x1c   : > { %166 = vst [vmem:[%s1037_s23 + $0xa0] sm:$0xff] %v165_v20  ;;  %v169_v22 = vld [vmem:[%s1032_s22 + $0x160] sm:$0xff]  ;;  %v171_v23 = vld [vmem:[%s1032_s22 + $0x168] sm:$0xff]  ;;  %168 = vst [vmem:[%s1037_s23 + $0xa8] sm:$0xff] %v167_v21 }
  0x1d   : > { %170 = vst [vmem:[%s1037_s23 + $0xb0] sm:$0xff] %v169_v22  ;;  %172 = vst [vmem:[%s1037_s23 + $0xb8] sm:$0xff] %v171_v23  ;;  %v173_v24 = vld [vmem:[%s1032_s22 + $0x180] sm:$0xff]  ;;  %v175_v25 = vld [vmem:[%s1032_s22 + $0x188] sm:$0xff] }
  0x1e   : > { %v177_v26 = vld [vmem:[%s1032_s22 + $0x1a0] sm:$0xff]  ;;  %174 = vst [vmem:[%s1037_s23 + $0xc0] sm:$0xff] %v173_v24  ;;  %176 = vst [vmem:[%s1037_s23 + $0xc8] sm:$0xff] %v175_v25  ;;  %v179_v27 = vld [vmem:[%s1032_s22 + $0x1a8] sm:$0xff] }
  0x1f   : > { %178 = vst [vmem:[%s1037_s23 + $0xd0] sm:$0xff] %v177_v26  ;;  %v181_v28 = vld [vmem:[%s1032_s22 + $0x1c0] sm:$0xff]  ;;  %v183_v29 = vld [vmem:[%s1032_s22 + $0x1c8] sm:$0xff]  ;;  %180 = vst [vmem:[%s1037_s23 + $0xd8] sm:$0xff] %v179_v27 }
  0x20   : > { %182 = vst [vmem:[%s1037_s23 + $0xe0] sm:$0xff] %v181_v28  ;;  %184 = vst [vmem:[%s1037_s23 + $0xe8] sm:$0xff] %v183_v29  ;;  %v185_v30 = vld [vmem:[%s1032_s22 + $0x1e0] sm:$0xff]  ;;  %v187_v31 = vld [vmem:[%s1032_s22 + $0x1e8] sm:$0xff] }
  0x21   : > { %v189_v32 = vld [vmem:[%s1032_s22 + $0x200] sm:$0xff]  ;;  %186 = vst [vmem:[%s1037_s23 + $0xf0] sm:$0xff] %v185_v30  ;;  %188 = vst [vmem:[%s1037_s23 + $0xf8] sm:$0xff] %v187_v31  ;;  %v191_v33 = vld [vmem:[%s1032_s22 + $0x208] sm:$0xff] }
  0x22   : > { %190 = vst [vmem:[%s1037_s23 + $0x100] sm:$0xff] %v189_v32  ;;  %v193_v34 = vld [vmem:[%s1032_s22 + $0x220] sm:$0xff]  ;;  %v195_v35 = vld [vmem:[%s1032_s22 + $0x228] sm:$0xff]  ;;  %192 = vst [vmem:[%s1037_s23 + $0x108] sm:$0xff] %v191_v33 }
  0x23   : > { %194 = vst [vmem:[%s1037_s23 + $0x110] sm:$0xff] %v193_v34  ;;  %196 = vst [vmem:[%s1037_s23 + $0x118] sm:$0xff] %v195_v35  ;;  %v197_v36 = vld [vmem:[%s1032_s22 + $0x240] sm:$0xff]  ;;  %v199_v37 = vld [vmem:[%s1032_s22 + $0x248] sm:$0xff] }
  0x24   : > { %v201_v38 = vld [vmem:[%s1032_s22 + $0x260] sm:$0xff]  ;;  %198 = vst [vmem:[%s1037_s23 + $0x120] sm:$0xff] %v197_v36  ;;  %200 = vst [vmem:[%s1037_s23 + $0x128] sm:$0xff] %v199_v37  ;;  %v203_v39 = vld [vmem:[%s1032_s22 + $0x268] sm:$0xff] }
  0x25   : > { %202 = vst [vmem:[%s1037_s23 + $0x130] sm:$0xff] %v201_v38  ;;  %v205_v40 = vld [vmem:[%s1032_s22 + $0x280] sm:$0xff]  ;;  %v207_v41 = vld [vmem:[%s1032_s22 + $0x288] sm:$0xff]  ;;  %204 = vst [vmem:[%s1037_s23 + $0x138] sm:$0xff] %v203_v39 }
  0x26   : > { %206 = vst [vmem:[%s1037_s23 + $0x140] sm:$0xff] %v205_v40  ;;  %208 = vst [vmem:[%s1037_s23 + $0x148] sm:$0xff] %v207_v41  ;;  %v209_v42 = vld [vmem:[%s1032_s22 + $0x2a0] sm:$0xff]  ;;  %v211_v43 = vld [vmem:[%s1032_s22 + $0x2a8] sm:$0xff] }
  0x27   : > { %v213_v44 = vld [vmem:[%s1032_s22 + $0x2c0] sm:$0xff]  ;;  %210 = vst [vmem:[%s1037_s23 + $0x150] sm:$0xff] %v209_v42  ;;  %212 = vst [vmem:[%s1037_s23 + $0x158] sm:$0xff] %v211_v43  ;;  %v215_v45 = vld [vmem:[%s1032_s22 + $0x2c8] sm:$0xff] }
  0x28   : > { %214 = vst [vmem:[%s1037_s23 + $0x160] sm:$0xff] %v213_v44  ;;  %v217_v46 = vld [vmem:[%s1032_s22 + $0x2e0] sm:$0xff]  ;;  %v219_v47 = vld [vmem:[%s1032_s22 + $0x2e8] sm:$0xff]  ;;  %216 = vst [vmem:[%s1037_s23 + $0x168] sm:$0xff] %v215_v45 }
  0x29   : > { %218 = vst [vmem:[%s1037_s23 + $0x170] sm:$0xff] %v217_v46  ;;  %220 = vst [vmem:[%s1037_s23 + $0x178] sm:$0xff] %v219_v47  ;;  %v221_v48 = vld [vmem:[%s1032_s22 + $0x300] sm:$0xff]  ;;  %v223_v49 = vld [vmem:[%s1032_s22 + $0x308] sm:$0xff] }
  0x2a   : > { %v225_v50 = vld [vmem:[%s1032_s22 + $0x320] sm:$0xff]  ;;  %222 = vst [vmem:[%s1037_s23 + $0x180] sm:$0xff] %v221_v48  ;;  %224 = vst [vmem:[%s1037_s23 + $0x188] sm:$0xff] %v223_v49  ;;  %v227_v51 = vld [vmem:[%s1032_s22 + $0x328] sm:$0xff] }
  0x2b   : > { %226 = vst [vmem:[%s1037_s23 + $0x190] sm:$0xff] %v225_v50  ;;  %v229_v52 = vld [vmem:[%s1032_s22 + $0x340] sm:$0xff]  ;;  %v231_v53 = vld [vmem:[%s1032_s22 + $0x348] sm:$0xff]  ;;  %228 = vst [vmem:[%s1037_s23 + $0x198] sm:$0xff] %v227_v51 }
  0x2c   : > { %230 = vst [vmem:[%s1037_s23 + $0x1a0] sm:$0xff] %v229_v52  ;;  %232 = vst [vmem:[%s1037_s23 + $0x1a8] sm:$0xff] %v231_v53  ;;  %v233_v54 = vld [vmem:[%s1032_s22 + $0x360] sm:$0xff]  ;;  %v235_v55 = vld [vmem:[%s1032_s22 + $0x368] sm:$0xff] }
  0x2d   : > { %v237_v56 = vld [vmem:[%s1032_s22 + $0x380] sm:$0xff]  ;;  %234 = vst [vmem:[%s1037_s23 + $0x1b0] sm:$0xff] %v233_v54  ;;  %236 = vst [vmem:[%s1037_s23 + $0x1b8] sm:$0xff] %v235_v55  ;;  %v239_v57 = vld [vmem:[%s1032_s22 + $0x388] sm:$0xff] }
  0x2e   : > { %238 = vst [vmem:[%s1037_s23 + $0x1c0] sm:$0xff] %v237_v56  ;;  %v241_v58 = vld [vmem:[%s1032_s22 + $0x3a0] sm:$0xff]  ;;  %v243_v59 = vld [vmem:[%s1032_s22 + $0x3a8] sm:$0xff]  ;;  %240 = vst [vmem:[%s1037_s23 + $0x1c8] sm:$0xff] %v239_v57 }
  0x2f   : > { %242 = vst [vmem:[%s1037_s23 + $0x1d0] sm:$0xff] %v241_v58  ;;  %244 = vst [vmem:[%s1037_s23 + $0x1d8] sm:$0xff] %v243_v59  ;;  %v245_v60 = vld [vmem:[%s1032_s22 + $0x3c0] sm:$0xff]  ;;  %v247_v61 = vld [vmem:[%s1032_s22 + $0x3c8] sm:$0xff] }
  0x30   : > { %v249_v62 = vld [vmem:[%s1032_s22 + $0x3e0] sm:$0xff]  ;;  %246 = vst [vmem:[%s1037_s23 + $0x1e0] sm:$0xff] %v245_v60  ;;  %248 = vst [vmem:[%s1037_s23 + $0x1e8] sm:$0xff] %v247_v61  ;;  %v251_v63 = vld [vmem:[%s1032_s22 + $0x3e8] sm:$0xff] }
  0x31   : > { %250 = vst [vmem:[%s1037_s23 + $0x1f0] sm:$0xff] %v249_v62  ;;  %v253_v0 = vld [vmem:[%s1032_s22 + $0x400] sm:$0xff]  ;;  %v255_v1 = vld [vmem:[%s1032_s22 + $0x408] sm:$0xff]  ;;  %252 = vst [vmem:[%s1037_s23 + $0x1f8] sm:$0xff] %v251_v63 }
  0x32   : > { %254 = vst [vmem:[%s1037_s23 + $0x200] sm:$0xff] %v253_v0  ;;  %256 = vst [vmem:[%s1037_s23 + $0x208] sm:$0xff] %v255_v1  ;;  %v257_v2 = vld [vmem:[%s1032_s22 + $0x420] sm:$0xff]  ;;  %v259_v3 = vld [vmem:[%s1032_s22 + $0x428] sm:$0xff] }
  0x33   : > { %v261_v4 = vld [vmem:[%s1032_s22 + $0x440] sm:$0xff]  ;;  %258 = vst [vmem:[%s1037_s23 + $0x210] sm:$0xff] %v257_v2  ;;  %260 = vst [vmem:[%s1037_s23 + $0x218] sm:$0xff] %v259_v3  ;;  %v263_v5 = vld [vmem:[%s1032_s22 + $0x448] sm:$0xff] }
  0x34   : > { %262 = vst [vmem:[%s1037_s23 + $0x220] sm:$0xff] %v261_v4  ;;  %v265_v6 = vld [vmem:[%s1032_s22 + $0x460] sm:$0xff]  ;;  %v267_v7 = vld [vmem:[%s1032_s22 + $0x468] sm:$0xff]  ;;  %264 = vst [vmem:[%s1037_s23 + $0x228] sm:$0xff] %v263_v5 }
  0x35   : > { %266 = vst [vmem:[%s1037_s23 + $0x230] sm:$0xff] %v265_v6  ;;  %268 = vst [vmem:[%s1037_s23 + $0x238] sm:$0xff] %v267_v7  ;;  %v269_v8 = vld [vmem:[%s1032_s22 + $0x480] sm:$0xff]  ;;  %v271_v9 = vld [vmem:[%s1032_s22 + $0x488] sm:$0xff] }
  0x36   : > { %v273_v10 = vld [vmem:[%s1032_s22 + $0x4a0] sm:$0xff]  ;;  %270 = vst [vmem:[%s1037_s23 + $0x240] sm:$0xff] %v269_v8  ;;  %272 = vst [vmem:[%s1037_s23 + $0x248] sm:$0xff] %v271_v9  ;;  %v275_v11 = vld [vmem:[%s1032_s22 + $0x4a8] sm:$0xff] }
  0x37   : > { %274 = vst [vmem:[%s1037_s23 + $0x250] sm:$0xff] %v273_v10  ;;  %v277_v12 = vld [vmem:[%s1032_s22 + $0x4c0] sm:$0xff]  ;;  %v279_v13 = vld [vmem:[%s1032_s22 + $0x4c8] sm:$0xff]  ;;  %276 = vst [vmem:[%s1037_s23 + $0x258] sm:$0xff] %v275_v11 }
  0x38   : > { %278 = vst [vmem:[%s1037_s23 + $0x260] sm:$0xff] %v277_v12  ;;  %280 = vst [vmem:[%s1037_s23 + $0x268] sm:$0xff] %v279_v13  ;;  %v281_v14 = vld [vmem:[%s1032_s22 + $0x4e0] sm:$0xff]  ;;  %v283_v15 = vld [vmem:[%s1032_s22 + $0x4e8] sm:$0xff] }
  0x39   : > { %v285_v16 = vld [vmem:[%s1032_s22 + $0x500] sm:$0xff]  ;;  %282 = vst [vmem:[%s1037_s23 + $0x270] sm:$0xff] %v281_v14  ;;  %284 = vst [vmem:[%s1037_s23 + $0x278] sm:$0xff] %v283_v15  ;;  %v287_v17 = vld [vmem:[%s1032_s22 + $0x508] sm:$0xff] }
  0x3a   : > { %286 = vst [vmem:[%s1037_s23 + $0x280] sm:$0xff] %v285_v16  ;;  %v289_v18 = vld [vmem:[%s1032_s22 + $0x520] sm:$0xff]  ;;  %v291_v19 = vld [vmem:[%s1032_s22 + $0x528] sm:$0xff]  ;;  %288 = vst [vmem:[%s1037_s23 + $0x288] sm:$0xff] %v287_v17 }
  0x3b   : > { %290 = vst [vmem:[%s1037_s23 + $0x290] sm:$0xff] %v289_v18  ;;  %292 = vst [vmem:[%s1037_s23 + $0x298] sm:$0xff] %v291_v19  ;;  %v293_v20 = vld [vmem:[%s1032_s22 + $0x540] sm:$0xff]  ;;  %v295_v21 = vld [vmem:[%s1032_s22 + $0x548] sm:$0xff] }
  0x3c   : > { %v297_v22 = vld [vmem:[%s1032_s22 + $0x560] sm:$0xff]  ;;  %294 = vst [vmem:[%s1037_s23 + $0x2a0] sm:$0xff] %v293_v20  ;;  %296 = vst [vmem:[%s1037_s23 + $0x2a8] sm:$0xff] %v295_v21  ;;  %v299_v23 = vld [vmem:[%s1032_s22 + $0x568] sm:$0xff] }
  0x3d   : > { %298 = vst [vmem:[%s1037_s23 + $0x2b0] sm:$0xff] %v297_v22  ;;  %v301_v24 = vld [vmem:[%s1032_s22 + $0x580] sm:$0xff]  ;;  %v303_v25 = vld [vmem:[%s1032_s22 + $0x588] sm:$0xff]  ;;  %300 = vst [vmem:[%s1037_s23 + $0x2b8] sm:$0xff] %v299_v23 }
  0x3e   : > { %302 = vst [vmem:[%s1037_s23 + $0x2c0] sm:$0xff] %v301_v24  ;;  %304 = vst [vmem:[%s1037_s23 + $0x2c8] sm:$0xff] %v303_v25  ;;  %v305_v26 = vld [vmem:[%s1032_s22 + $0x5a0] sm:$0xff]  ;;  %v307_v27 = vld [vmem:[%s1032_s22 + $0x5a8] sm:$0xff] }
  0x3f   : > { %v309_v28 = vld [vmem:[%s1032_s22 + $0x5c0] sm:$0xff]  ;;  %306 = vst [vmem:[%s1037_s23 + $0x2d0] sm:$0xff] %v305_v26  ;;  %308 = vst [vmem:[%s1037_s23 + $0x2d8] sm:$0xff] %v307_v27  ;;  %v311_v29 = vld [vmem:[%s1032_s22 + $0x5c8] sm:$0xff] }
  0x40   : > { %310 = vst [vmem:[%s1037_s23 + $0x2e0] sm:$0xff] %v309_v28  ;;  %v313_v30 = vld [vmem:[%s1032_s22 + $0x5e0] sm:$0xff]  ;;  %v315_v31 = vld [vmem:[%s1032_s22 + $0x5e8] sm:$0xff]  ;;  %312 = vst [vmem:[%s1037_s23 + $0x2e8] sm:$0xff] %v311_v29 }
  0x41   : > { %314 = vst [vmem:[%s1037_s23 + $0x2f0] sm:$0xff] %v313_v30  ;;  %316 = vst [vmem:[%s1037_s23 + $0x2f8] sm:$0xff] %v315_v31  ;;  %v317_v32 = vld [vmem:[%s1032_s22 + $0x600] sm:$0xff]  ;;  %v319_v33 = vld [vmem:[%s1032_s22 + $0x608] sm:$0xff] }
  0x42   : > { %v321_v34 = vld [vmem:[%s1032_s22 + $0x620] sm:$0xff]  ;;  %318 = vst [vmem:[%s1037_s23 + $0x300] sm:$0xff] %v317_v32  ;;  %320 = vst [vmem:[%s1037_s23 + $0x308] sm:$0xff] %v319_v33  ;;  %v323_v35 = vld [vmem:[%s1032_s22 + $0x628] sm:$0xff] }
  0x43   : > { %322 = vst [vmem:[%s1037_s23 + $0x310] sm:$0xff] %v321_v34  ;;  %v325_v36 = vld [vmem:[%s1032_s22 + $0x640] sm:$0xff]  ;;  %v327_v37 = vld [vmem:[%s1032_s22 + $0x648] sm:$0xff]  ;;  %324 = vst [vmem:[%s1037_s23 + $0x318] sm:$0xff] %v323_v35 }
  0x44   : > { %326 = vst [vmem:[%s1037_s23 + $0x320] sm:$0xff] %v325_v36  ;;  %328 = vst [vmem:[%s1037_s23 + $0x328] sm:$0xff] %v327_v37  ;;  %v329_v38 = vld [vmem:[%s1032_s22 + $0x660] sm:$0xff]  ;;  %v331_v39 = vld [vmem:[%s1032_s22 + $0x668] sm:$0xff] }
  0x45   : > { %v333_v40 = vld [vmem:[%s1032_s22 + $0x680] sm:$0xff]  ;;  %330 = vst [vmem:[%s1037_s23 + $0x330] sm:$0xff] %v329_v38  ;;  %332 = vst [vmem:[%s1037_s23 + $0x338] sm:$0xff] %v331_v39  ;;  %v335_v41 = vld [vmem:[%s1032_s22 + $0x688] sm:$0xff] }
  0x46   : > { %334 = vst [vmem:[%s1037_s23 + $0x340] sm:$0xff] %v333_v40  ;;  %v337_v42 = vld [vmem:[%s1032_s22 + $0x6a0] sm:$0xff]  ;;  %v339_v43 = vld [vmem:[%s1032_s22 + $0x6a8] sm:$0xff]  ;;  %336 = vst [vmem:[%s1037_s23 + $0x348] sm:$0xff] %v335_v41 }
  0x47   : > { %338 = vst [vmem:[%s1037_s23 + $0x350] sm:$0xff] %v337_v42  ;;  %340 = vst [vmem:[%s1037_s23 + $0x358] sm:$0xff] %v339_v43  ;;  %v341_v44 = vld [vmem:[%s1032_s22 + $0x6c0] sm:$0xff]  ;;  %v343_v45 = vld [vmem:[%s1032_s22 + $0x6c8] sm:$0xff] }
  0x48   : > { %v345_v46 = vld [vmem:[%s1032_s22 + $0x6e0] sm:$0xff]  ;;  %342 = vst [vmem:[%s1037_s23 + $0x360] sm:$0xff] %v341_v44  ;;  %344 = vst [vmem:[%s1037_s23 + $0x368] sm:$0xff] %v343_v45  ;;  %v347_v47 = vld [vmem:[%s1032_s22 + $0x6e8] sm:$0xff] }
  0x49   : > { %346 = vst [vmem:[%s1037_s23 + $0x370] sm:$0xff] %v345_v46  ;;  %v349_v48 = vld [vmem:[%s1032_s22 + $0x700] sm:$0xff]  ;;  %v351_v49 = vld [vmem:[%s1032_s22 + $0x708] sm:$0xff]  ;;  %348 = vst [vmem:[%s1037_s23 + $0x378] sm:$0xff] %v347_v47 }
  0x4a   : > { %350 = vst [vmem:[%s1037_s23 + $0x380] sm:$0xff] %v349_v48  ;;  %352 = vst [vmem:[%s1037_s23 + $0x388] sm:$0xff] %v351_v49  ;;  %v353_v50 = vld [vmem:[%s1032_s22 + $0x720] sm:$0xff]  ;;  %v355_v51 = vld [vmem:[%s1032_s22 + $0x728] sm:$0xff] }
  0x4b   : > { %v357_v52 = vld [vmem:[%s1032_s22 + $0x740] sm:$0xff]  ;;  %354 = vst [vmem:[%s1037_s23 + $0x390] sm:$0xff] %v353_v50  ;;  %356 = vst [vmem:[%s1037_s23 + $0x398] sm:$0xff] %v355_v51  ;;  %v359_v53 = vld [vmem:[%s1032_s22 + $0x748] sm:$0xff] }
  0x4c   : > { %358 = vst [vmem:[%s1037_s23 + $0x3a0] sm:$0xff] %v357_v52  ;;  %v361_v54 = vld [vmem:[%s1032_s22 + $0x760] sm:$0xff]  ;;  %v363_v55 = vld [vmem:[%s1032_s22 + $0x768] sm:$0xff]  ;;  %360 = vst [vmem:[%s1037_s23 + $0x3a8] sm:$0xff] %v359_v53 }
  0x4d   : > { %362 = vst [vmem:[%s1037_s23 + $0x3b0] sm:$0xff] %v361_v54  ;;  %364 = vst [vmem:[%s1037_s23 + $0x3b8] sm:$0xff] %v363_v55  ;;  %v365_v56 = vld [vmem:[%s1032_s22 + $0x780] sm:$0xff]  ;;  %v367_v57 = vld [vmem:[%s1032_s22 + $0x788] sm:$0xff] }
  0x4e   : > { %v369_v58 = vld [vmem:[%s1032_s22 + $0x7a0] sm:$0xff]  ;;  %366 = vst [vmem:[%s1037_s23 + $0x3c0] sm:$0xff] %v365_v56  ;;  %368 = vst [vmem:[%s1037_s23 + $0x3c8] sm:$0xff] %v367_v57  ;;  %v371_v59 = vld [vmem:[%s1032_s22 + $0x7a8] sm:$0xff] }
  0x4f   : > { %370 = vst [vmem:[%s1037_s23 + $0x3d0] sm:$0xff] %v369_v58  ;;  %v373_v60 = vld [vmem:[%s1032_s22 + $0x7c0] sm:$0xff]  ;;  %v375_v61 = vld [vmem:[%s1032_s22 + $0x7c8] sm:$0xff]  ;;  %372 = vst [vmem:[%s1037_s23 + $0x3d8] sm:$0xff] %v371_v59 }
  0x50   : > { %374 = vst [vmem:[%s1037_s23 + $0x3e0] sm:$0xff] %v373_v60  ;;  %376 = vst [vmem:[%s1037_s23 + $0x3e8] sm:$0xff] %v375_v61  ;;  %v377_v62 = vld [vmem:[%s1032_s22 + $0x7e0] sm:$0xff]  ;;  %v379_v63 = vld [vmem:[%s1032_s22 + $0x7e8] sm:$0xff] }
  0x51   : > { %378 = vst [vmem:[%s1037_s23 + $0x3f0] sm:$0xff] %v377_v62  ;;  %380 = vst [vmem:[%s1037_s23 + $0x3f8] sm:$0xff] %v379_v63 }
  0x52 PF: > { %p794_p5 = scmp.ge.s32.totalorder %s980_s11, 1  ;;  %p385_p6 = scmp.lt.s32.totalorder %s980_s11, 3 }
  0x54   : > { %p386_p7 = pnand %p794_p5, %p385_p6 }
  0x55   : > { %s392_s24 = sand.u32 (!%p386_p7), 1, %s972_s9   ;;  %v554_v0 = vlaneseq (!%p386_p7)  ;;  %v420_v1 = vld [vmem:[%s1453_s0] sm:$0xff] (!%p386_p7)  ;;  %v982_v2 = vmov (!%p386_p7), 1983009808   ;;  %s796_s29 = sshll.u32 (!%p386_p7), %s787_s12, 1 }
  0x56   : > { %389 = sbr.rel (%p386_p7) target bundleno = 374 (0x176), region = 47  ;;  %s795_s25 = sshll.u32 (!%p386_p7), %s392_s24, 10  ;;  %v552_v3 = vunpack.c.l.s4 (!%p386_p7), %v982_v2  ;;  %v550_v13 = vcombine.high (!%p386_p7), %v420_v1, %v420_v1 }
  0x57   : > { %v555_v4 = vshrl.u32 (!%p386_p7), %v554_v0, 7  ;;  %s1298_s28 = scalar_lea.vmem (!%p386_p7), [#allocation2], %s795_s25  ;;  %p415_p8 = scmp.lt.s32.totalorder (!%p386_p7), %s796_s29, 3 }
  0x58   : > { %v422_v5 = vld [vmem:[%s1298_s28 + $0x8] sm:$0xff] (!%p386_p7)  ;;  %v424_v6 = vld [vmem:[%s1298_s28 + $0x18] sm:$0xff] (!%p386_p7)  ;;  %v553_v8 = vunpack.c.0.s8 (!%p386_p7), %v552_v3  ;;  %v421_v11 = vld [vmem:[%s1298_s28] sm:$0xff] (!%p386_p7) }
  0x59   : > { %v486_v7 = vld [vmem:[%s1298_s28 + $0x208] sm:$0xff] (!%p386_p7)  ;;  %v802_v9 = vpack.c.bf16 (!%p386_p7), %v424_v6, %v422_v5  ;;  %v488_v10 = vld [vmem:[%s1298_s28 + $0x218] sm:$0xff] (!%p386_p7)  ;;  %v423_v12 = vld [vmem:[%s1298_s28 + $0x10] sm:$0xff] (!%p386_p7) }
  0x5a   : > { %v866_v14 = vpack.c.bf16 (!%p386_p7), %v488_v10, %v486_v7  ;;  %v804_v15 = vpack.c.bf16 (!%p386_p7), %v423_v12, %v421_v11  ;;  %v485_v16 = vld [vmem:[%s1298_s28 + $0x200] sm:$0xff] (!%p386_p7)  ;;  %v487_v17 = vld [vmem:[%s1298_s28 + $0x210] sm:$0xff] (!%p386_p7)  ;;  %v426_v18 = vld [vmem:[%s1298_s28 + $0x28] sm:$0xff] (!%p386_p7)  ;;  %v556_v19 = vsub.s32 (!%p386_p7), %v553_v8, %v555_v4 }
  0x5b   : > { %803 = vmatprep.subr.bf16.mxu1 (!%p386_p7), %v802_v9  ;;  %v868_v20 = vpack.c.bf16 (!%p386_p7), %v487_v17, %v485_v16  ;;  %v428_v21 = vld [vmem:[%s1298_s28 + $0x38] sm:$0xff] (!%p386_p7)  ;;  %v490_v22 = vld [vmem:[%s1298_s28 + $0x228] sm:$0xff] (!%p386_p7)  ;;  %v425_v26 = vld [vmem:[%s1298_s28 + $0x20] sm:$0xff] (!%p386_p7) }
  0x5c   : > { %v492_v23 = vld [vmem:[%s1298_s28 + $0x238] sm:$0xff] (!%p386_p7)  ;;  %867 = vmatprep.subr.bf16.mxu0 (!%p386_p7), %v866_v14  ;;  %805 = vmatpush1.bf16.msra.mxu1 (!%p386_p7), %v804_v15  ;;  %v806_v24 = vpack.c.bf16 (!%p386_p7), %v428_v21, %v426_v18  ;;  %v427_v27 = vld [vmem:[%s1298_s28 + $0x30] sm:$0xff] (!%p386_p7)  ;;  %v489_v28 = vld [vmem:[%s1298_s28 + $0x220] sm:$0xff] (!%p386_p7)  ;;  %v1315_v29 = vrot.slane (!%p386_p7), %v420_v1, %v556_v19  ;;  %v1320_v34 = vrot.slane (!%p386_p7), %v550_v13, %v556_v19 }
  0x5d   : > { %v870_v25 = vpack.c.bf16 %v492_v23, %v490_v22  ;;  %869 = vmatpush1.bf16.msra.mxu0 %v868_v20  ;;  %v808_v30 = vpack.c.bf16 %v427_v27, %v425_v26  ;;  %v491_v31 = vld [vmem:[%s1298_s28 + $0x230] sm:$0xff]  ;;  %v430_v32 = vld [vmem:[%s1298_s28 + $0x48] sm:$0xff]  ;;  %v432_v33 = vld [vmem:[%s1298_s28 + $0x58] sm:$0xff]  ;;  %s1460_s29 = smov (!%p415_p8, %s796_s29), 3 }
  0x5e   : > { %807 = vmatprep.subr.bf16.mxu1 %v806_v24  ;;  %v872_v35 = vpack.c.bf16 %v491_v31, %v489_v28  ;;  %v810_v36 = vpack.c.bf16 %v432_v33, %v430_v32  ;;  %v494_v37 = vld [vmem:[%s1298_s28 + $0x248] sm:$0xff]  ;;  %v496_v38 = vld [vmem:[%s1298_s28 + $0x258] sm:$0xff]  ;;  %v429_v39 = vld [vmem:[%s1298_s28 + $0x40] sm:$0xff]  ;;  %v565_v40 = vcombine.high %v1315_v29, %v1315_v29  ;;  %v566_v45 = vcombine.high %v1320_v34, %v1320_v34  ;;  %s797_s30 = sshll.u32 %s1460_s29, 1 }
  0x5f   : > { %871 = vmatprep.subr.bf16.mxu0 %v870_v25  ;;  %v874_v41 = vpack.c.bf16 %v496_v38, %v494_v37  ;;  %v431_v42 = vld [vmem:[%s1298_s28 + $0x50] sm:$0xff]  ;;  %v493_v43 = vld [vmem:[%s1298_s28 + $0x240] sm:$0xff]  ;;  %v434_v47 = vld [vmem:[%s1298_s28 + $0x68] sm:$0xff]  ;;  %s418_s5 = scalar_lea.vmem %s1455_s2, %s797_s30 }
  0x60   : > { %v495_v44 = vld [vmem:[%s1298_s28 + $0x250] sm:$0xff]  ;;  %809 = vmatpush1.bf16.msra.mxu1 %v808_v30  ;;  %v812_v46 = vpack.c.bf16 %v431_v42, %v429_v39  ;;  %v436_v48 = vld [vmem:[%s1298_s28 + $0x78] sm:$0xff]  ;;  %v498_v49 = vld [vmem:[%s1298_s28 + $0x268] sm:$0xff]  ;;  %635 = vmatprep.mubr.f32.mxu1 %v565_v40 }
  0x61   : > { %873 = vmatpush1.bf16.msra.mxu0 %v872_v35  ;;  %811 = vmatprep.subr.bf16.mxu1 %v810_v36  ;;  %v876_v50 = vpack.c.bf16 %v495_v44, %v493_v43  ;;  %v814_v51 = vpack.c.bf16 %v436_v48, %v434_v47  ;;  %v500_v52 = vld [vmem:[%s1298_s28 + $0x278] sm:$0xff]  ;;  %v433_v53 = vld [vmem:[%s1298_s28 + $0x60] sm:$0xff]  ;;  %v435_v54 = vld [vmem:[%s1298_s28 + $0x70] sm:$0xff] }
  0x62   : > { %875 = vmatprep.subr.bf16.mxu0 %v874_v41  ;;  %v878_v55 = vpack.c.bf16 %v500_v52, %v498_v49  ;;  %v497_v56 = vld [vmem:[%s1298_s28 + $0x260] sm:$0xff]  ;;  %v499_v57 = vld [vmem:[%s1298_s28 + $0x270] sm:$0xff]  ;;  %v438_v58 = vld [vmem:[%s1298_s28 + $0x88] sm:$0xff]  ;;  %706 = vmatprep.mubr.f32.mxu0 %v566_v45  ;;  %v816_v62 = vpack.c.bf16 %v435_v54, %v433_v53 }
  0x63   : > { %v440_v59 = vld [vmem:[%s1298_s28 + $0x98] sm:$0xff]  ;;  %v502_v60 = vld [vmem:[%s1298_s28 + $0x288] sm:$0xff]  ;;  %v880_v63 = vpack.c.bf16 %v499_v57, %v497_v56  ;;  %v437_v1 = vld [vmem:[%s1298_s28 + $0x80] sm:$0xff] }
  0x64   : > { %v504_v61 = vld [vmem:[%s1298_s28 + $0x298] sm:$0xff]  ;;  %813 = vmatpush1.bf16.msra.mxu1 %v812_v46  ;;  %v818_v0 = vpack.c.bf16 %v440_v59, %v438_v58  ;;  %v439_v2 = vld [vmem:[%s1298_s28 + $0x90] sm:$0xff]  ;;  %v501_v3 = vld [vmem:[%s1298_s28 + $0x280] sm:$0xff] }
  0x65   : > { %877 = vmatpush1.bf16.msra.mxu0 %v876_v50  ;;  %815 = vmatprep.subr.bf16.mxu1 %v814_v51  ;;  %v882_v4 = vpack.c.bf16 %v504_v61, %v502_v60  ;;  %v503_v5 = vld [vmem:[%s1298_s28 + $0x290] sm:$0xff]  ;;  %v442_v6 = vld [vmem:[%s1298_s28 + $0xa8] sm:$0xff]  ;;  %v444_v7 = vld [vmem:[%s1298_s28 + $0xb8] sm:$0xff]  ;;  %v820_v10 = vpack.c.bf16 %v439_v2, %v437_v1 }
  0x66   : > { %879 = vmatprep.subr.bf16.mxu0 %v878_v55  ;;  %v506_v8 = vld [vmem:[%s1298_s28 + $0x2a8] sm:$0xff]  ;;  %v508_v9 = vld [vmem:[%s1298_s28 + $0x2b8] sm:$0xff]  ;;  %v884_v11 = vpack.c.bf16 %v503_v5, %v501_v3  ;;  %v822_v12 = vpack.c.bf16 %v444_v7, %v442_v6  ;;  %v441_v13 = vld [vmem:[%s1298_s28 + $0xa0] sm:$0xff] }
  0x67   : > { %v443_v14 = vld [vmem:[%s1298_s28 + $0xb0] sm:$0xff]  ;;  %v505_v15 = vld [vmem:[%s1298_s28 + $0x2a0] sm:$0xff]  ;;  %v886_v16 = vpack.c.bf16 %v508_v9, %v506_v8  ;;  %v446_v18 = vld [vmem:[%s1298_s28 + $0xc8] sm:$0xff] }
  0x68   : > { %817 = vmatpush1.bf16.msra.mxu1 %v816_v62  ;;  %v507_v17 = vld [vmem:[%s1298_s28 + $0x2b0] sm:$0xff]  ;;  %v448_v19 = vld [vmem:[%s1298_s28 + $0xd8] sm:$0xff]  ;;  %v510_v20 = vld [vmem:[%s1298_s28 + $0x2c8] sm:$0xff]  ;;  %v824_v22 = vpack.c.bf16 %v443_v14, %v441_v13 }
  0x69   : > { %881 = vmatpush1.bf16.msra.mxu0 %v880_v63  ;;  %819 = vmatprep.subr.bf16.mxu1 %v818_v0  ;;  %v512_v21 = vld [vmem:[%s1298_s28 + $0x2d8] sm:$0xff]  ;;  %v888_v23 = vpack.c.bf16 %v507_v17, %v505_v15  ;;  %v826_v24 = vpack.c.bf16 %v448_v19, %v446_v18  ;;  %v445_v25 = vld [vmem:[%s1298_s28 + $0xc0] sm:$0xff]  ;;  %v447_v26 = vld [vmem:[%s1298_s28 + $0xd0] sm:$0xff] }
  0x6a   : > { %883 = vmatprep.subr.bf16.mxu0 %v882_v4  ;;  %v509_v27 = vld [vmem:[%s1298_s28 + $0x2c0] sm:$0xff]  ;;  %v890_v28 = vpack.c.bf16 %v512_v21, %v510_v20  ;;  %v511_v30 = vld [vmem:[%s1298_s28 + $0x2d0] sm:$0xff]  ;;  %v450_v31 = vld [vmem:[%s1298_s28 + $0xe8] sm:$0xff]  ;;  %v828_v36 = vpack.c.bf16 %v447_v26, %v445_v25 }
  0x6b   : > { %v452_v32 = vld [vmem:[%s1298_s28 + $0xf8] sm:$0xff]  ;;  %v514_v33 = vld [vmem:[%s1298_s28 + $0x2e8] sm:$0xff]  ;;  %v892_v37 = vpack.c.bf16 %v511_v30, %v509_v27  ;;  %v449_v39 = vld [vmem:[%s1298_s28 + $0xe0] sm:$0xff] }
  0x6c   : > { %821 = vmatpush1.bf16.msra.mxu1 %v820_v10  ;;  %v516_v35 = vld [vmem:[%s1298_s28 + $0x2f8] sm:$0xff]  ;;  %v830_v38 = vpack.c.bf16 %v452_v32, %v450_v31  ;;  %v451_v40 = vld [vmem:[%s1298_s28 + $0xf0] sm:$0xff]  ;;  %v513_v41 = vld [vmem:[%s1298_s28 + $0x2e0] sm:$0xff] }
  0x6d   : > { %885 = vmatpush1.bf16.msra.mxu0 %v884_v11  ;;  %823 = vmatprep.subr.bf16.mxu1 %v822_v12  ;;  %v894_v42 = vpack.c.bf16 %v516_v35, %v514_v33  ;;  %v515_v43 = vld [vmem:[%s1298_s28 + $0x2f0] sm:$0xff]  ;;  %v454_v44 = vld [vmem:[%s1298_s28 + $0x108] sm:$0xff]  ;;  %v456_v45 = vld [vmem:[%s1298_s28 + $0x118] sm:$0xff]  ;;  %v832_v48 = vpack.c.bf16 %v451_v40, %v449_v39 }
  0x6e   : > { %887 = vmatprep.subr.bf16.mxu0 %v886_v16  ;;  %v518_v46 = vld [vmem:[%s1298_s28 + $0x308] sm:$0xff]  ;;  %v520_v47 = vld [vmem:[%s1298_s28 + $0x318] sm:$0xff]  ;;  %v896_v49 = vpack.c.bf16 %v515_v43, %v513_v41  ;;  %v834_v50 = vpack.c.bf16 %v456_v45, %v454_v44  ;;  %v453_v51 = vld [vmem:[%s1298_s28 + $0x100] sm:$0xff] }
  0x6f   : > { %v455_v52 = vld [vmem:[%s1298_s28 + $0x110] sm:$0xff]  ;;  %v517_v53 = vld [vmem:[%s1298_s28 + $0x300] sm:$0xff]  ;;  %v898_v54 = vpack.c.bf16 %v520_v47, %v518_v46  ;;  %v458_v56 = vld [vmem:[%s1298_s28 + $0x128] sm:$0xff] }
  0x70   : > { %825 = vmatpush1.bf16.msra.mxu1 %v824_v22  ;;  %v519_v55 = vld [vmem:[%s1298_s28 + $0x310] sm:$0xff]  ;;  %v460_v57 = vld [vmem:[%s1298_s28 + $0x138] sm:$0xff]  ;;  %v522_v58 = vld [vmem:[%s1298_s28 + $0x328] sm:$0xff]  ;;  %v836_v60 = vpack.c.bf16 %v455_v52, %v453_v51 }
  0x71   : > { %889 = vmatpush1.bf16.msra.mxu0 %v888_v23  ;;  %827 = vmatprep.subr.bf16.mxu1 %v826_v24  ;;  %v524_v59 = vld [vmem:[%s1298_s28 + $0x338] sm:$0xff]  ;;  %v900_v61 = vpack.c.bf16 %v519_v55, %v517_v53  ;;  %v838_v62 = vpack.c.bf16 %v460_v57, %v458_v56  ;;  %v457_v63 = vld [vmem:[%s1298_s28 + $0x120] sm:$0xff]  ;;  %v459_v0 = vld [vmem:[%s1298_s28 + $0x130] sm:$0xff] }
  0x72   : > { %891 = vmatprep.subr.bf16.mxu0 %v890_v28  ;;  %v521_v1 = vld [vmem:[%s1298_s28 + $0x320] sm:$0xff]  ;;  %v902_v2 = vpack.c.bf16 %v524_v59, %v522_v58  ;;  %v523_v3 = vld [vmem:[%s1298_s28 + $0x330] sm:$0xff]  ;;  %v462_v4 = vld [vmem:[%s1298_s28 + $0x148] sm:$0xff]  ;;  %v840_v8 = vpack.c.bf16 %v459_v0, %v457_v63 }
  0x73   : > { %v464_v5 = vld [vmem:[%s1298_s28 + $0x158] sm:$0xff]  ;;  %v526_v6 = vld [vmem:[%s1298_s28 + $0x348] sm:$0xff]  ;;  %v904_v9 = vpack.c.bf16 %v523_v3, %v521_v1  ;;  %v461_v11 = vld [vmem:[%s1298_s28 + $0x140] sm:$0xff] }
  0x74   : > { %829 = vmatpush1.bf16.msra.mxu1 %v828_v36  ;;  %v528_v7 = vld [vmem:[%s1298_s28 + $0x358] sm:$0xff]  ;;  %v842_v10 = vpack.c.bf16 %v464_v5, %v462_v4  ;;  %v463_v12 = vld [vmem:[%s1298_s28 + $0x150] sm:$0xff]  ;;  %v525_v13 = vld [vmem:[%s1298_s28 + $0x340] sm:$0xff] }
  0x75   : > { %893 = vmatpush1.bf16.msra.mxu0 %v892_v37  ;;  %831 = vmatprep.subr.bf16.mxu1 %v830_v38  ;;  %v906_v14 = vpack.c.bf16 %v528_v7, %v526_v6  ;;  %v527_v15 = vld [vmem:[%s1298_s28 + $0x350] sm:$0xff]  ;;  %v466_v16 = vld [vmem:[%s1298_s28 + $0x168] sm:$0xff]  ;;  %v468_v17 = vld [vmem:[%s1298_s28 + $0x178] sm:$0xff]  ;;  %v844_v20 = vpack.c.bf16 %v463_v12, %v461_v11 }
  0x76   : > { %895 = vmatprep.subr.bf16.mxu0 %v894_v42  ;;  %v530_v18 = vld [vmem:[%s1298_s28 + $0x368] sm:$0xff]  ;;  %v532_v19 = vld [vmem:[%s1298_s28 + $0x378] sm:$0xff]  ;;  %v908_v21 = vpack.c.bf16 %v527_v15, %v525_v13  ;;  %v846_v22 = vpack.c.bf16 %v468_v17, %v466_v16  ;;  %v465_v23 = vld [vmem:[%s1298_s28 + $0x160] sm:$0xff] }
  0x77   : > { %v467_v24 = vld [vmem:[%s1298_s28 + $0x170] sm:$0xff]  ;;  %v529_v25 = vld [vmem:[%s1298_s28 + $0x360] sm:$0xff]  ;;  %v910_v26 = vpack.c.bf16 %v532_v19, %v530_v18  ;;  %v470_v28 = vld [vmem:[%s1298_s28 + $0x188] sm:$0xff] }
  0x78   : > { %833 = vmatpush1.bf16.msra.mxu1 %v832_v48  ;;  %v531_v27 = vld [vmem:[%s1298_s28 + $0x370] sm:$0xff]  ;;  %v472_v30 = vld [vmem:[%s1298_s28 + $0x198] sm:$0xff]  ;;  %v534_v31 = vld [vmem:[%s1298_s28 + $0x388] sm:$0xff]  ;;  %v848_v33 = vpack.c.bf16 %v467_v24, %v465_v23 }
  0x79   : > { %897 = vmatpush1.bf16.msra.mxu0 %v896_v49  ;;  %835 = vmatprep.subr.bf16.mxu1 %v834_v50  ;;  %v536_v32 = vld [vmem:[%s1298_s28 + $0x398] sm:$0xff]  ;;  %v912_v35 = vpack.c.bf16 %v531_v27, %v529_v25  ;;  %v850_v36 = vpack.c.bf16 %v472_v30, %v470_v28  ;;  %v469_v37 = vld [vmem:[%s1298_s28 + $0x180] sm:$0xff]  ;;  %v471_v38 = vld [vmem:[%s1298_s28 + $0x190] sm:$0xff] }
  0x7a   : > { %899 = vmatprep.subr.bf16.mxu0 %v898_v54  ;;  %v533_v39 = vld [vmem:[%s1298_s28 + $0x380] sm:$0xff]  ;;  %v914_v40 = vpack.c.bf16 %v536_v32, %v534_v31  ;;  %v535_v41 = vld [vmem:[%s1298_s28 + $0x390] sm:$0xff]  ;;  %v474_v42 = vld [vmem:[%s1298_s28 + $0x1a8] sm:$0xff]  ;;  %v852_v46 = vpack.c.bf16 %v471_v38, %v469_v37 }
  0x7b   : > { %v476_v43 = vld [vmem:[%s1298_s28 + $0x1b8] sm:$0xff]  ;;  %v538_v44 = vld [vmem:[%s1298_s28 + $0x3a8] sm:$0xff]  ;;  %v916_v47 = vpack.c.bf16 %v535_v41, %v533_v39  ;;  %v473_v49 = vld [vmem:[%s1298_s28 + $0x1a0] sm:$0xff] }
  0x7c   : > { %837 = vmatpush1.bf16.msra.mxu1 %v836_v60  ;;  %v540_v45 = vld [vmem:[%s1298_s28 + $0x3b8] sm:$0xff]  ;;  %v854_v48 = vpack.c.bf16 %v476_v43, %v474_v42  ;;  %v475_v50 = vld [vmem:[%s1298_s28 + $0x1b0] sm:$0xff]  ;;  %v537_v51 = vld [vmem:[%s1298_s28 + $0x3a0] sm:$0xff] }
  0x7d   : > { %901 = vmatpush1.bf16.msra.mxu0 %v900_v61  ;;  %839 = vmatprep.subr.bf16.mxu1 %v838_v62  ;;  %v918_v52 = vpack.c.bf16 %v540_v45, %v538_v44  ;;  %v539_v53 = vld [vmem:[%s1298_s28 + $0x3b0] sm:$0xff]  ;;  %v478_v54 = vld [vmem:[%s1298_s28 + $0x1c8] sm:$0xff]  ;;  %v480_v55 = vld [vmem:[%s1298_s28 + $0x1d8] sm:$0xff]  ;;  %v856_v58 = vpack.c.bf16 %v475_v50, %v473_v49 }
  0x7e   : > { %903 = vmatprep.subr.bf16.mxu0 %v902_v2  ;;  %v542_v56 = vld [vmem:[%s1298_s28 + $0x3c8] sm:$0xff]  ;;  %v544_v57 = vld [vmem:[%s1298_s28 + $0x3d8] sm:$0xff]  ;;  %v920_v59 = vpack.c.bf16 %v539_v53, %v537_v51  ;;  %v858_v60 = vpack.c.bf16 %v480_v55, %v478_v54  ;;  %v477_v61 = vld [vmem:[%s1298_s28 + $0x1c0] sm:$0xff] }
  0x7f   : > { %v479_v62 = vld [vmem:[%s1298_s28 + $0x1d0] sm:$0xff]  ;;  %v541_v63 = vld [vmem:[%s1298_s28 + $0x3c0] sm:$0xff]  ;;  %v922_v0 = vpack.c.bf16 %v544_v57, %v542_v56  ;;  %v482_v2 = vld [vmem:[%s1298_s28 + $0x1e8] sm:$0xff] }
  0x80   : > { %841 = vmatpush1.bf16.msra.mxu1 %v840_v8  ;;  %v543_v1 = vld [vmem:[%s1298_s28 + $0x3d0] sm:$0xff]  ;;  %v484_v3 = vld [vmem:[%s1298_s28 + $0x1f8] sm:$0xff]  ;;  %v546_v4 = vld [vmem:[%s1298_s28 + $0x3e8] sm:$0xff]  ;;  %v860_v6 = vpack.c.bf16 %v479_v62, %v477_v61 }
  0x81   : > { %905 = vmatpush1.bf16.msra.mxu0 %v904_v9  ;;  %843 = vmatprep.subr.bf16.mxu1 %v842_v10  ;;  %v548_v5 = vld [vmem:[%s1298_s28 + $0x3f8] sm:$0xff]  ;;  %v924_v7 = vpack.c.bf16 %v543_v1, %v541_v63  ;;  %v862_v8 = vpack.c.bf16 %v484_v3, %v482_v2  ;;  %v481_v9 = vld [vmem:[%s1298_s28 + $0x1e0] sm:$0xff]  ;;  %v483_v10 = vld [vmem:[%s1298_s28 + $0x1f0] sm:$0xff] }
  0x82   : > { %907 = vmatprep.subr.bf16.mxu0 %v906_v14  ;;  %v926_v11 = vpack.c.bf16 %v548_v5, %v546_v4  ;;  %v545_v12 = vld [vmem:[%s1298_s28 + $0x3e0] sm:$0xff]  ;;  %v547_v13 = vld [vmem:[%s1298_s28 + $0x3f0] sm:$0xff]  ;;  %v864_v14 = vpack.c.bf16 %v483_v10, %v481_v9 }
  0x83   : > { %v928_v15 = vpack.c.bf16 %v547_v13, %v545_v12 }
  0x84   : > { %845 = vmatpush1.bf16.msra.mxu1 %v844_v20 }
  0x85   : > { %909 = vmatpush1.bf16.msra.mxu0 %v908_v21  ;;  %847 = vmatprep.subr.bf16.mxu1 %v846_v22 }
  0x86   : > { %911 = vmatprep.subr.bf16.mxu0 %v910_v26 }
  0x88   : > { %849 = vmatpush1.bf16.msra.mxu1 %v848_v33 }
  0x89   : > { %913 = vmatpush1.bf16.msra.mxu0 %v912_v35  ;;  %851 = vmatprep.subr.bf16.mxu1 %v850_v36 }
  0x8a   : > { %915 = vmatprep.subr.bf16.mxu0 %v914_v40 }
  0x8c   : > { %853 = vmatpush1.bf16.msra.mxu1 %v852_v46 }
  0x8d   : > { %917 = vmatpush1.bf16.msra.mxu0 %v916_v47  ;;  %855 = vmatprep.subr.bf16.mxu1 %v854_v48 }
  0x8e   : > { %919 = vmatprep.subr.bf16.mxu0 %v918_v52 }
  0x90   : > { %857 = vmatpush1.bf16.msra.mxu1 %v856_v58 }
  0x91   : > { %921 = vmatpush1.bf16.msra.mxu0 %v920_v59  ;;  %859 = vmatprep.subr.bf16.mxu1 %v858_v60 }
  0x92   : > { %923 = vmatprep.subr.bf16.mxu0 %v922_v0 }
  0x94   : > { %861 = vmatpush1.bf16.msra.mxu1 %v860_v6 }
  0x95   : > { %925 = vmatpush1.bf16.msra.mxu0 %v924_v7  ;;  %863 = vmatprep.subr.bf16.mxu1 %v862_v8 }
  0x96   : > { %927 = vmatprep.subr.bf16.mxu0 %v926_v11 }
  0x98   : > { %865 = vmatpush1.bf16.msra.mxu1 %v864_v14 }
  0x99   : > { %929 = vmatpush1.bf16.msra.mxu0 %v928_v15 }
  0x9b   : > { %636 = vmatmul.mubr.f32.vlgmr.msra.gmra.mrb[0].mxu1 %v1315_v29 }
  0x9c   : > { %707 = vmatmul.mubr.f32.vlgmr.msra.gmra.mrb[0].mxu0 %v1320_v34 }
 0x16e   : > { %v637_v16 = vpop.f32.mrb[0].mxu1 }
 0x16f   : > { %v708_v17 = vpop.f32.mrb[0].mxu0  ;;  %v639_v18 = vpop.f32.mrb[1].mxu1 }
 0x170   : > { %v709_v19 = vadd.f32 %v708_v17, %v637_v16  ;;  %v710_v20 = vpop.f32.mrb[1].mxu0 }
 0x171   : > { %v711_v21 = vadd.f32 %v710_v20, %v639_v18 }
 0x173   : > { %v715_v22 = vcombine.low %v709_v19, %v711_v21 }
 0x175   : > { %798 = vst.sshfl [vmem:[%s418_s5] sm:$0x33 pattern:$0x76325410] %v715_v22 }
 0x176 PF: > { %p9_p9 = scmp.ge.s32.totalorder %s1015_s13, 4   ;;  %s1456_s9 = smov %s976_s10 }
 0x177   : > { %s1457_s10 = smov %s1024_s16  ;;  %s1458_s11 = smov %s1015_s13 }
 0x178   :  { %11 = sbr.rel (!%p9_p9) target bundleno = 2 (0x2), region = 86 }

// kernel: trans_net_forward.9
= control target key start
LH: loop header
LB: loop body
LE: loop exit
PB: predicated region body
PF: predicated region fallthrough
CT: control target
= control target key end

     0   :  { %s612_s15 = smov 0   ;;  %s614_s16 = smov 0   ;;  %s677_s0 = inlined_call_operand.vmem [shape: f32[2,8,256], index: 0, kind: input, shape index: {}]   ;;  %s678_s1 = inlined_call_operand.vmem [shape: f32[8,8], index: 1, kind: input, shape index: {}]   ;;  %s679_s2 = inlined_call_operand.vmem [shape: f32[8,1], index: 2, kind: input, shape index: {}]   ;;  %s680_s3 = inlined_call_operand.vmem [shape: f32[2,8,256], index: 3, kind: input, shape index: {}]   ;;  %s681_s4 = inlined_call_operand.vmem [shape: f32[2,8,256], index: 4, kind: output, shape index: {}]  }
   0x1   :  { %s616_s17 = smov 0   ;;  %s618_s18 = smov 0  }
   0x2   :  { %s620_s19 = smov 0  }
   0x3 LB: > { %s23_s20 = sadd.s32 1, %s574_s17  ;;  %s26_s21 = sadd.s32 1, %s578_s18  ;;  %s582_s19 = sphi %s620_s19, %s14_s19   ;;  %s578_s18 = sphi %s618_s18, %s685_s18   ;;  %s574_s17 = sphi %s616_s17, %s684_s17   ;;  %s570_s16 = sphi %s614_s16, %s683_s16   ;;  %s566_s15 = sphi %s612_s15, %s682_s15  }
   0x4   : > { %p24_p0 = scmp.ge.s32.totalorder %s23_s20, 2  ;;  %p477_p1 = scmp.ge.s32.totalorder %s582_s19, 1 }
   0x5   : > { %p196_p2 = scmp.lt.s32.totalorder %s582_s19, 5 }
   0x6   : > { %s687_s20 = smov (%p24_p0, %s23_s20), 0  ;;  %s689_s21 = smov (!%p24_p0, %s26_s21), %s578_s18 }
   0x7   : > { %p197_p3 = pnand %p477_p1, %p196_p2  ;;  %p28_p4 = scmp.ge.s32.totalorder %s689_s21, 2 }
   0x8   : > { %p236_p5 = scmp.lt.s32.totalorder (!%p197_p3), %s570_s16, 1  ;;  %p238_p6 = scmp.lt.s32.totalorder (!%p197_p3), %s566_s15, 1  ;;  %v584_v0 = vmov (!%p197_p3), 0.0   ;;  %vm585_vm0 = vmmov (!%p197_p3), 0   ;;  %v262_v1 = vld [vmem:[%s679_s2] sm:$0xff] (!%p197_p3)  ;;  %v586_v2 = vmov (!%p197_p3), 0  }
   0x9   : > { %s691_s21 = smov (%p28_p4, %s689_s21), 0  ;;  %200 = sbr.rel (%p197_p3) target bundleno = 283 (0x11b), region = 36 }
   0xa   : > { %491 = vmatprep.subr.mxu0 (!%p197_p3), %v584_v0  ;;  %493 = vmatprep.mubr.msk.f32.mxu0 (!%p197_p3), %vm585_vm0, %v584_v0  ;;  %v261_v3 = vld [vmem:[%s678_s1] sm:$0xff] (!%p197_p3)  ;;  %vm268_vm1 = vcmask (!%p197_p3), 64512  }
   0xb   : > { %539 = vset.pattern.permute.xlu0 (!%p197_p3), %v586_v2 }
   0xc   : > { %265 = vperm.xlu0 (!%p197_p3), %539, %v262_v1  }
  0x10   : > { %s693_s16 = smov (!%p236_p5, %s570_s16), 1  ;;  %s695_s15 = smov (!%p238_p6, %s566_s15), 1 }
  0x11   : > { %s478_s24 = sshll.u32 %s693_s16, 1 }
  0x12   : > { %s241_s25 = sadd.s32 %s478_s24, %s695_s15 }
  0x13   : > { %s645_s26 = sshll.u32 %s241_s25, 3 }
  0x14   : > { %s243_s29 = scalar_lea.vmem %s677_s0, %s645_s26  ;;  %s251_s8 = scalar_lea.vmem %s680_s3, %s645_s26 }
  0x15   : > { %v260_v4 = vld [vmem:[%s243_s29] sm:$0xff]  ;;  %s259_s11 = scalar_lea.vmem %s681_s4, %s645_s26 }
  0x16   : > { %492 = vmatpush3.msra.mxu0 %v260_v4  ;;  %v342_v7 = vld [vmem:[%s251_s8] sm:$0xff] }
  0x17   : > { %494 = vmatmul.mubr.msk.f32.vlgmr.msra.gmra.mrb[0].mxu0 %vm268_vm1, %v261_v3 }
  0x8b   : > { %v266_v5 = vpop.permute.xlu0 %265 }
  0xea   : > { %v338_v6 = vpop.f32.mrb[0].mxu0 }
  0xeb   : > { %v339_v8 = vadd.f32 %v338_v6, %v266_v5  ;;  %v495_v9 = vpop.f32.mrb[1].mxu0 }
  0xed   : > { %v343_v10 = vadd.f32 %v342_v7, %v339_v8 }
  0xef   : > { %v344_v11 = vand.u32 2147483647, %v343_v10  ;;  %v358_v15 = vmul.f32 %v343_v10, %v343_v10  ;;  %v363_v29 = vmul.f32 0.5, %v343_v10 }
  0xf1   : > { %v345_v12 = vmul.f32 0.70710677, %v344_v11  ;;  %v359_v18 = vmul.f32 -0.5, %v358_v15  ;;  %v362_v28 = vmul.f32 0.5, %v344_v11 }
  0xf3   : > { %v346_v13 = vmul.f32 0.3275911, %v345_v12  ;;  %v360_v21 = vmul.f32 1.442695, %v359_v18  ;;  %v364_v32 = vadd.f32 %v363_v29, %v362_v28 }
  0xf5   : > { %v347_v14 = vadd.f32 1.0, %v346_v13 }
  0xf7   : > { %540 = vrcp.f32 %v347_v14 }
  0xf8   : > { %542 = vpow2.f32 %v360_v21 }
 0x101   : > { %v541_v16 = vpop.eup %540 }
 0x102   : > { %v349_v17 = vmul.f32 1.0614054, %v541_v16  ;;  %v543_v31 = vpop.eup %542 }
 0x104   : > { %v485_v19 = vadd.f32 -1.4531521, %v349_v17 }
 0x106   : > { %v351_v20 = vmul.f32 %v541_v16, %v485_v19 }
 0x108   : > { %v352_v22 = vadd.f32 1.4214138, %v351_v20 }
 0x10a   : > { %v353_v23 = vmul.f32 %v541_v16, %v352_v22 }
 0x10c   : > { %v486_v24 = vadd.f32 -0.28449672, %v353_v23 }
 0x10e   : > { %v355_v25 = vmul.f32 %v541_v16, %v486_v24 }
 0x110   : > { %v356_v26 = vadd.f32 0.2548296, %v355_v25 }
 0x112   : > { %v357_v27 = vmul.f32 %v541_v16, %v356_v26 }
 0x114   : > { %v365_v30 = vmul.f32 %v362_v28, %v357_v27 }
 0x116   : > { %v366_v33 = vmul.f32 %v543_v31, %v365_v30 }
 0x118   : > { %v367_v34 = vsub.f32 %v364_v32, %v366_v33 }
 0x11a   : > { %368 = vst [vmem:[%s259_s11] sm:$0xff] %v367_v34 }
 0x11b PF: > { %s14_s19 = sadd.s32 1, %s582_s19   ;;  %s682_s15 = smov %s574_s17 }
 0x11c   : > { %p11_p7 = scmp.ge.s32.totalorder %s14_s19, 6   ;;  %s683_s16 = smov %s578_s18 }
 0x11d   : > { %s684_s17 = smov %s687_s20  ;;  %s685_s18 = smov %s691_s21 }
 0x11e   :  { %13 = sbr.rel (!%p11_p7) target bundleno = 3 (0x3), region = 69 }

// kernel: trans_net_forward.11
= control target key start
LH: loop header
LB: loop body
LE: loop exit
PB: predicated region body
PF: predicated region fallthrough
CT: control target
= control target key end

     0   :  { %s582_s15 = smov 0   ;;  %s584_s16 = smov 0   ;;  %s642_s0 = inlined_call_operand.vmem [shape: f32[2,8,256], index: 0, kind: input, shape index: {}]   ;;  %s643_s1 = inlined_call_operand.vmem [shape: f32[8,8], index: 1, kind: input, shape index: {}]   ;;  %s644_s2 = inlined_call_operand.vmem [shape: f32[8,1], index: 2, kind: input, shape index: {}]   ;;  %s645_s3 = inlined_call_operand.vmem [shape: f32[2,8,256], index: 3, kind: input, shape index: {}]   ;;  %s646_s4 = inlined_call_operand.vmem [shape: f32[2,8,256], index: 4, kind: output, shape index: {}]  }
   0x1   :  { %s586_s17 = smov 0   ;;  %s588_s18 = smov 0  }
   0x2   :  { %s590_s19 = smov 0  }
   0x3 LB: > { %s23_s20 = sadd.s32 1, %s544_s17  ;;  %s26_s21 = sadd.s32 1, %s548_s18  ;;  %s552_s19 = sphi %s590_s19, %s14_s19   ;;  %s548_s18 = sphi %s588_s18, %s650_s18   ;;  %s544_s17 = sphi %s586_s17, %s649_s17   ;;  %s540_s16 = sphi %s584_s16, %s648_s16   ;;  %s536_s15 = sphi %s582_s15, %s647_s15  }
   0x4   : > { %p24_p0 = scmp.ge.s32.totalorder %s23_s20, 2  ;;  %p453_p1 = scmp.ge.s32.totalorder %s552_s19, 1 }
   0x5   : > { %p196_p2 = scmp.lt.s32.totalorder %s552_s19, 5 }
   0x6   : > { %s652_s20 = smov (%p24_p0, %s23_s20), 0  ;;  %s654_s21 = smov (!%p24_p0, %s26_s21), %s548_s18 }
   0x7   : > { %p197_p3 = pnand %p453_p1, %p196_p2  ;;  %p28_p4 = scmp.ge.s32.totalorder %s654_s21, 2 }
   0x8   : > { %p236_p5 = scmp.lt.s32.totalorder (!%p197_p3), %s540_s16, 1  ;;  %p238_p6 = scmp.lt.s32.totalorder (!%p197_p3), %s536_s15, 1  ;;  %v554_v0 = vmov (!%p197_p3), 0.0   ;;  %vm555_vm0 = vmmov (!%p197_p3), 0   ;;  %v262_v1 = vld [vmem:[%s644_s2] sm:$0xff] (!%p197_p3)  ;;  %v556_v2 = vmov (!%p197_p3), 0  }
   0x9   : > { %s656_s21 = smov (%p28_p4, %s654_s21), 0  ;;  %200 = sbr.rel (%p197_p3) target bundleno = 240 (0xf0), region = 36 }
   0xa   : > { %465 = vmatprep.subr.mxu0 (!%p197_p3), %v554_v0  ;;  %467 = vmatprep.mubr.msk.f32.mxu0 (!%p197_p3), %vm555_vm0, %v554_v0  ;;  %v261_v3 = vld [vmem:[%s643_s1] sm:$0xff] (!%p197_p3)  ;;  %vm268_vm1 = vcmask (!%p197_p3), 64512  }
   0xb   : > { %513 = vset.pattern.permute.xlu0 (!%p197_p3), %v556_v2 }
   0xc   : > { %265 = vperm.xlu0 (!%p197_p3), %513, %v262_v1  }
  0x10   : > { %s658_s16 = smov (!%p236_p5, %s540_s16), 1  ;;  %s660_s15 = smov (!%p238_p6, %s536_s15), 1 }
  0x11   : > { %s454_s24 = sshll.u32 %s658_s16, 1 }
  0x12   : > { %s241_s25 = sadd.s32 %s454_s24, %s660_s15 }
  0x13   : > { %s455_s26 = sshll.u32 %s241_s25, 3 }
  0x14   : > { %s243_s29 = scalar_lea.vmem %s642_s0, %s455_s26  ;;  %s251_s8 = scalar_lea.vmem %s645_s3, %s455_s26 }
  0x15   : > { %v260_v4 = vld [vmem:[%s243_s29] sm:$0xff]  ;;  %s259_s11 = scalar_lea.vmem %s646_s4, %s455_s26 }
  0x16   : > { %466 = vmatpush3.msra.mxu0 %v260_v4  ;;  %v342_v7 = vld [vmem:[%s251_s8] sm:$0xff] }
  0x17   : > { %468 = vmatmul.mubr.msk.f32.vlgmr.msra.gmra.mrb[0].mxu0 %vm268_vm1, %v261_v3 }
  0x8b   : > { %v266_v5 = vpop.permute.xlu0 %265 }
  0xea   : > { %v338_v6 = vpop.f32.mrb[0].mxu0 }
  0xeb   : > { %v339_v8 = vadd.f32 %v338_v6, %v266_v5  ;;  %v469_v9 = vpop.f32.mrb[1].mxu0 }
  0xed   : > { %v343_v10 = vadd.f32 %v342_v7, %v339_v8 }
  0xef   : > { %344 = vst [vmem:[%s259_s11] sm:$0xff] %v343_v10 }
  0xf0 PF: > { %s14_s19 = sadd.s32 1, %s552_s19   ;;  %s647_s15 = smov %s544_s17 }
  0xf1   : > { %p11_p7 = scmp.ge.s32.totalorder %s14_s19, 6   ;;  %s648_s16 = smov %s548_s18 }
  0xf2   : > { %s649_s17 = smov %s652_s20  ;;  %s650_s18 = smov %s656_s21 }
  0xf3   :  { %13 = sbr.rel (!%p11_p7) target bundleno = 3 (0x3), region = 69 }

</bundles_post_ra>
